<compile_context>
chip_gen: v5e
topology: v5e:2x2
jax: 0.10.0
libtpu: 0.0.40
codegen_flags: <defaults>
</compile_context>

<pallas_src>
import numpy as np
import jax
import jax.numpy as jnp
from jax import lax
from jax.experimental import pallas as pl
from jax.experimental.pallas import tpu as pltpu

# ---- problem sizes (small, consistent with the module) ----
K = 3                     # spatial kernel size (odd)
C = 4                     # input channels
EXP = 32                  # expansion channels
OUP = 8                   # output channels
H = W = 16                # spatial
N = 2                     # batch
SE_HID = (2 * EXP) // 4   # SE reduction = 4
PAD = (K - 1) // 2
NHW = N * H * W

# ---- packed parameter slab layouts -------------------------------------------
# pE slab: EXP(=32)-lane wide rows
R_W1 = 0                  # rows 0:4    conv1 weight (C, EXP), BN1-folded
R_W2 = 4                  # rows 4:7    conv2 depthwise taps (K, EXP), BN2-folded
R_W3 = 8                  # rows 8:11   conv3 depthwise taps (K, EXP), BN3-folded
R_B1 = 12                 # folded conv1 bias
R_B2 = 13                 # folded conv2 bias
R_B3 = 14                 # folded conv3 bias
R_BSE1 = 15               # SE fc1 bias (cols >= SE_HID are zero)
R_BSE2A = 16              # SE fc2 bias, first-half channels
R_BSE2B = 17              # SE fc2 bias, second-half channels
R_WSE2A = 24              # rows 24:56  SE fc2 weight (x1 half), rows >= SE_HID zero
R_WSE2B = 56              # rows 56:88  SE fc2 weight (x2 half)
R_WSE1 = 88               # rows 88:152 SE fc1 weight, cols >= SE_HID zero
PE_ROWS = 152

# pO slab: 128-lane wide rows (only the first OUP columns are non-zero)
R_W4A = 0                 # rows 0:32   conv4 weight for the x1 half, BN4-folded
R_W4B = EXP               # rows 32:64  conv4 weight for the x2 half
R_B4 = 2 * EXP            # row 64      folded conv4 bias
PO_ROWS = 72


def _hsigmoid(x):
    return jnp.clip(x + 3.0, 0.0, 6.0) / 6.0


# ------------------------- Pallas kernel (whole batch in one step) ------------
def fuse_kernel(x_ref, pe_ref, po_ref, o_ref):
    # unpack the parameter slabs (static sublane slices of a resident VMEM ref)
    w1f = pe_ref[R_W1:R_W1 + C, :]                    # (C, EXP)
    w2f = pe_ref[R_W2:R_W2 + K, :]                    # (K, EXP)
    w3f = pe_ref[R_W3:R_W3 + K, :]                    # (K, EXP)
    b1 = pe_ref[R_B1:R_B1 + 1, :]                     # (1, EXP)
    b2 = pe_ref[R_B2:R_B2 + 1, :]
    b3 = pe_ref[R_B3:R_B3 + 1, :]
    bse1 = pe_ref[R_BSE1:R_BSE1 + 1, :]
    bse2a = pe_ref[R_BSE2A:R_BSE2A + 1, :]
    bse2b = pe_ref[R_BSE2B:R_BSE2B + 1, :]
    wse2a = pe_ref[R_WSE2A:R_WSE2A + EXP, :]          # (EXP, EXP) row-padded
    wse2b = pe_ref[R_WSE2B:R_WSE2B + EXP, :]
    wse1 = pe_ref[R_WSE1:R_WSE1 + 2 * EXP, :]         # (2*EXP, EXP) col-padded
    w4a = po_ref[R_W4A:R_W4A + EXP, :]                # (EXP, 128)
    w4b = po_ref[R_W4B:R_W4B + EXP, :]
    b4 = po_ref[R_B4:R_B4 + 1, :]                     # (1, 128)

    x = x_ref[...]                                    # (N*H*W, C)

    # conv1 (1x1, C->EXP) + folded BN1 + ReLU
    h = jnp.dot(x, w1f, preferred_element_type=jnp.float32) + b1
    h = jnp.maximum(h, 0.0)                           # (N*H*W, EXP)

    NH = N * H
    # conv2: depthwise (1, K) along W + folded BN2.
    # Shift along W = roll of the flat (N*H*W, EXP) tensor along rows (a plain
    # 2-D sublane rotate, XLU).  Rows that bled across a W boundary (or the
    # global wrap-around) are exactly the positions zeroed by the edge mask.
    w_idx = lax.broadcasted_iota(jnp.int32, (W, EXP), 0)   # W position per row
    x1 = None
    for k in range(K):                                # static unrolled taps
        off = k - PAD
        if off == 0:
            tap = h.reshape(NH, W, EXP)
        else:
            rolled = pltpu.roll(h, (-off) % NHW, axis=0)   # jnp.roll semantics
            valid = jnp.logical_and(w_idx + off >= 0, w_idx + off < W)
            tap = jnp.where(valid, rolled.reshape(NH, W, EXP), 0.0)
        term = tap * w2f[k:k + 1, :]
        x1 = term if x1 is None else x1 + term
    x1 = (x1 + b2).reshape(N, H * W, EXP)

    # conv3: depthwise (K, 1) along H + folded BN3.
    # H is an outer (non-vreg) axis here, so pad+slice along it is cheap.
    h4 = h.reshape(N, H, W, EXP)
    zrow = jnp.zeros((N, PAD, W, EXP), jnp.float32)
    hp = jnp.concatenate([zrow, h4, zrow], axis=1)    # (N, H+2*PAD, W, EXP)
    x2 = None
    for k in range(K):
        term = hp[:, k:k + H] * w3f[k:k + 1, :]
        x2 = term if x2 is None else x2 + term
    x2 = (x2 + b3).reshape(N, H * W, EXP)

    # SE over the (virtually concatenated) [x1 | x2] channels
    inv_hw = 1.0 / float(H * W)
    y1 = jnp.sum(x1, axis=1) * inv_hw                 # (N, EXP)
    y2 = jnp.sum(x2, axis=1) * inv_hw                 # (N, EXP)
    yc = jnp.concatenate([y1, y2], axis=-1)           # (N, 2*EXP) -- tiny
    z = jnp.dot(yc, wse1, preferred_element_type=jnp.float32) + bse1
    z = jnp.maximum(z, 0.0)                           # (N, EXP); cols>=SE_HID are 0
    sa = _hsigmoid(jnp.dot(z, wse2a, preferred_element_type=jnp.float32) + bse2a)
    sb = _hsigmoid(jnp.dot(z, wse2b, preferred_element_type=jnp.float32) + bse2b)

    # channel scale + trailing hsigmoid.  (The following NL=ReLU in the PyTorch
    # forward is a mathematical no-op since hsigmoid >= 0 -- dropped.)
    xa = _hsigmoid(x1 * sa.reshape(N, 1, EXP))
    xb = _hsigmoid(x2 * sb.reshape(N, 1, EXP))

    # conv4 (1x1, 2*EXP->OUP, split per branch) + folded BN4.
    # Weights are zero-padded to 128 output lanes -> fully dense stores & DMA.
    out = (jnp.dot(xa.reshape(NHW, EXP), w4a, preferred_element_type=jnp.float32)
           + jnp.dot(xb.reshape(NHW, EXP), w4b, preferred_element_type=jnp.float32)
           + b4)
    o_ref[...] = out                                  # (N*H*W, 128)


# ------------------------------- wrapper --------------------------------------
def pack_params(params):
    """Fold inference BN + conv biases into the weights and pack everything into
    two lane-aligned parameter slabs (done once, outside the kernel)."""
    (w1, b1, s1, t1, w2, b2, s2, t2, w3, b3, s3, t3,
     wse1, bse1, wse2, bse2, w4, b4, s4, t4) = params

    w1f, bias1 = w1 * s1, b1 * s1 + t1
    w2f, bias2 = w2 * s2, b2 * s2 + t2
    w3f, bias3 = w3 * s3, b3 * s3 + t3
    w4f, bias4 = w4 * s4, b4 * s4 + t4

    pe = jnp.zeros((PE_ROWS, EXP), jnp.float32)
    pe = pe.at[R_W1:R_W1 + C].set(w1f)
    pe = pe.at[R_W2:R_W2 + K].set(w2f)
    pe = pe.at[R_W3:R_W3 + K].set(w3f)
    pe = pe.at[R_B1].set(bias1[0])
    pe = pe.at[R_B2].set(bias2[0])
    pe = pe.at[R_B3].set(bias3[0])
    pe = pe.at[R_BSE1, :SE_HID].set(bse1[0])
    pe = pe.at[R_BSE2A].set(bse2[0, :EXP])
    pe = pe.at[R_BSE2B].set(bse2[0, EXP:])
    pe = pe.at[R_WSE2A:R_WSE2A + SE_HID].set(wse2[:, :EXP])
    pe = pe.at[R_WSE2B:R_WSE2B + SE_HID].set(wse2[:, EXP:])
    pe = pe.at[R_WSE1:R_WSE1 + 2 * EXP, :SE_HID].set(wse1)

    po = jnp.zeros((PO_ROWS, 128), jnp.float32)
    po = po.at[R_W4A:R_W4A + EXP, :OUP].set(w4f[:EXP])
    po = po.at[R_W4B:R_W4B + EXP, :OUP].set(w4f[EXP:])
    po = po.at[R_B4, :OUP].set(bias4[0])
    return pe, po


def fuse_block(x_nhwc, packed):
    pe, po = packed
    x2d = x_nhwc.reshape(NHW, C)                       # free (contiguous) reshape
    # Single grid step for the whole batch: on v5e/v6e (one TC) the grid is a
    # serial loop, so N=2 steps only added pipeline overhead.  On v7x with a
    # larger batch, a leading "parallel" batch axis could shard across the 2 TCs.
    out = pl.pallas_call(
        fuse_kernel,
        out_shape=jax.ShapeDtypeStruct((NHW, 128), jnp.float32),
        grid_spec=pltpu.PrefetchScalarGridSpec(
            num_scalar_prefetch=0,
            grid=(1,),
            in_specs=[
                pl.BlockSpec((NHW, C), lambda i: (0, 0)),
                pl.BlockSpec((PE_ROWS, EXP), lambda i: (0, 0)),
                pl.BlockSpec((PO_ROWS, 128), lambda i: (0, 0)),
            ],
            out_specs=pl.BlockSpec((NHW, 128), lambda i: (0, 0)),
        ),
        compiler_params=pltpu.CompilerParams(
            dimension_semantics=("arbitrary",)),
    )(x2d, pe, po)
    return out[:, :OUP].reshape(N, H, W, OUP)


# --------------------------- pure-JAX reference --------------------------------
def reference(x_nhwc, params):
    (w1, b1, s1, t1, w2, b2, s2, t2, w3, b3, s3, t3,
     wse1, bse1, wse2, bse2, w4, b4, s4, t4) = params

    def dn(lhs_shape, rhs_shape):
        return lax.conv_dimension_numbers(lhs_shape, rhs_shape,
                                          ('NHWC', 'HWIO', 'NHWC'))

    # conv1 + bn1 + ReLU
    wk1 = w1.reshape(1, 1, C, EXP)
    h = lax.conv_general_dilated(x_nhwc, wk1, (1, 1), [(0, 0), (0, 0)],
                                 dimension_numbers=dn(x_nhwc.shape, wk1.shape))
    h = h + b1.reshape(1, 1, 1, EXP)
    h = h * s1.reshape(1, 1, 1, EXP) + t1.reshape(1, 1, 1, EXP)
    h = jnp.maximum(h, 0.0)

    # depthwise conv2 (1, K)
    wk2 = w2.reshape(1, K, 1, EXP)
    x1 = lax.conv_general_dilated(h, wk2, (1, 1), [(0, 0), (PAD, PAD)],
                                  dimension_numbers=dn(h.shape, wk2.shape),
                                  feature_group_count=EXP)
    x1 = x1 + b2.reshape(1, 1, 1, EXP)
    x1 = x1 * s2.reshape(1, 1, 1, EXP) + t2.reshape(1, 1, 1, EXP)

    # depthwise conv3 (K, 1)
    wk3 = w3.reshape(K, 1, 1, EXP)
    x2 = lax.conv_general_dilated(h, wk3, (1, 1), [(PAD, PAD), (0, 0)],
                                  dimension_numbers=dn(h.shape, wk3.shape),
                                  feature_group_count=EXP)
    x2 = x2 + b3.reshape(1, 1, 1, EXP)
    x2 = x2 * s3.reshape(1, 1, 1, EXP) + t3.reshape(1, 1, 1, EXP)

    xc = jnp.concatenate([x1, x2], axis=-1)            # (N, H, W, 2*EXP)

    y = jnp.mean(xc, axis=(1, 2))                      # (N, 2*EXP)
    y = jnp.maximum(y @ wse1 + bse1, 0.0)
    y = _hsigmoid(y @ wse2 + bse2)
    xc = xc * y[:, None, None, :]

    xc = _hsigmoid(xc)
    xc = jnp.maximum(xc, 0.0)                          # NL (no-op numerically)

    out = jnp.einsum('nhwc,co->nhwo', xc, w4) + b4.reshape(1, 1, 1, OUP)
    out = out * s4.reshape(1, 1, 1, OUP) + t4.reshape(1, 1, 1, OUP)
    return out


# ------------------------------ params -----------------------------------------
def make_params(key):
    ks = jax.random.split(key, 32)
    i = iter(range(32))
    eps = 1e-5

    def bn_fold(kg, kb, km, kv, c):
        gamma = 1.0 + 0.1 * jax.random.normal(kg, (1, c), jnp.float32)
        beta = 0.1 * jax.random.normal(kb, (1, c), jnp.float32)
        mean = 0.1 * jax.random.normal(km, (1, c), jnp.float32)
        var = jnp.abs(jax.random.normal(kv, (1, c), jnp.float32)) + 0.5
        scale = gamma / jnp.sqrt(var + eps)
        bias = beta - mean * scale
        return scale, bias

    w1 = 0.2 * jax.random.normal(ks[next(i)], (C, EXP), jnp.float32)
    b1 = 0.1 * jax.random.normal(ks[next(i)], (1, EXP), jnp.float32)
    s1, t1 = bn_fold(ks[next(i)], ks[next(i)], ks[next(i)], ks[next(i)], EXP)

    w2 = 0.2 * jax.random.normal(ks[next(i)], (K, EXP), jnp.float32)
    b2 = 0.1 * jax.random.normal(ks[next(i)], (1, EXP), jnp.float32)
    s2, t2 = bn_fold(ks[next(i)], ks[next(i)], ks[next(i)], ks[next(i)], EXP)

    w3 = 0.2 * jax.random.normal(ks[next(i)], (K, EXP), jnp.float32)
    b3 = 0.1 * jax.random.normal(ks[next(i)], (1, EXP), jnp.float32)
    s3, t3 = bn_fold(ks[next(i)], ks[next(i)], ks[next(i)], ks[next(i)], EXP)

    wse1 = 0.2 * jax.random.normal(ks[next(i)], (2 * EXP, SE_HID), jnp.float32)
    bse1 = 0.1 * jax.random.normal(ks[next(i)], (1, SE_HID), jnp.float32)
    wse2 = 0.2 * jax.random.normal(ks[next(i)], (SE_HID, 2 * EXP), jnp.float32)
    bse2 = 0.1 * jax.random.normal(ks[next(i)], (1, 2 * EXP), jnp.float32)

    w4 = 0.2 * jax.random.normal(ks[next(i)], (2 * EXP, OUP), jnp.float32)
    b4 = 0.1 * jax.random.normal(ks[next(i)], (1, OUP), jnp.float32)
    s4, t4 = bn_fold(ks[next(i)], ks[next(i)], ks[next(i)], ks[next(i)], OUP)

    return (w1, b1, s1, t1, w2, b2, s2, t2, w3, b3, s3, t3,
            wse1, bse1, wse2, bse2, w4, b4, s4, t4)


if __name__ == "__main__":
    key = jax.random.PRNGKey(0)
    kx, kp = jax.random.split(key)
    # PyTorch-equivalent input would be NCHW (2, 4, 16, 16); kernel uses NHWC.
    x_nchw = jax.random.normal(kx, (N, C, H, W), jnp.float32)
    x_nhwc = jnp.transpose(x_nchw, (0, 2, 3, 1))
    params = make_params(kp)

    packed = pack_params(params)          # fold BN/biases + pack slabs (once)
    out = jax.block_until_ready(fuse_block(x_nhwc, packed))

    ref = jax.block_until_ready(reference(x_nhwc, params))
    np.testing.assert_allclose(np.asarray(out), np.asarray(ref),
                               rtol=1e-4, atol=1e-4)
    print("KERNEL_OK")
</pallas_src>

<mosaic_0001>
module attributes {stable_mosaic.version = 11 : i64} {
  func.func @fuse_kernel(%arg0: i32, %arg1: memref<512x4xf32, #tpu.memory_space<vmem>>, %arg2: memref<152x32xf32, #tpu.memory_space<vmem>>, %arg3: memref<72x128xf32, #tpu.memory_space<vmem>>, %arg4: memref<512x128xf32, #tpu.memory_space<vmem>>) attributes {dimension_semantics = [#tpu.dimension_semantics<arbitrary>], iteration_bounds = array<i64: 1>, scalar_prefetch = 0 : i64, scratch_operands = 0 : i64, tpu.core_type = #tpu.core_type<tc>, window_params = [{pipeline_mode = #tpu.pipeline_mode<synchronous>, transform_indices = @transform_0, window_bounds = array<i64: 512, 4>}, {pipeline_mode = #tpu.pipeline_mode<synchronous>, transform_indices = @transform_1, window_bounds = array<i64: 152, 32>}, {pipeline_mode = #tpu.pipeline_mode<synchronous>, transform_indices = @transform_2, window_bounds = array<i64: 72, 128>}, {pipeline_mode = #tpu.pipeline_mode<synchronous>, transform_indices = @transform_3, window_bounds = array<i64: 512, 128>}]} {
    %c0 = arith.constant 0 : index
    %c0_0 = arith.constant 0 : index
    %0 = vector.load %arg2[%c0, %c0_0] : memref<152x32xf32, #tpu.memory_space<vmem>>, vector<4x32xf32>
    %c4 = arith.constant 4 : index
    %c0_1 = arith.constant 0 : index
    %1 = vector.load %arg2[%c4, %c0_1] : memref<152x32xf32, #tpu.memory_space<vmem>>, vector<3x32xf32>
    %c8 = arith.constant 8 : index
    %c0_2 = arith.constant 0 : index
    %2 = vector.load %arg2[%c8, %c0_2] : memref<152x32xf32, #tpu.memory_space<vmem>>, vector<3x32xf32>
    %c12 = arith.constant 12 : index
    %c0_3 = arith.constant 0 : index
    %3 = vector.load %arg2[%c12, %c0_3] : memref<152x32xf32, #tpu.memory_space<vmem>>, vector<1x32xf32>
    %c13 = arith.constant 13 : index
    %c0_4 = arith.constant 0 : index
    %4 = vector.load %arg2[%c13, %c0_4] : memref<152x32xf32, #tpu.memory_space<vmem>>, vector<1x32xf32>
    %c14 = arith.constant 14 : index
    %c0_5 = arith.constant 0 : index
    %5 = vector.load %arg2[%c14, %c0_5] : memref<152x32xf32, #tpu.memory_space<vmem>>, vector<1x32xf32>
    %c15 = arith.constant 15 : index
    %c0_6 = arith.constant 0 : index
    %6 = vector.load %arg2[%c15, %c0_6] : memref<152x32xf32, #tpu.memory_space<vmem>>, vector<1x32xf32>
    %c16 = arith.constant 16 : index
    %c0_7 = arith.constant 0 : index
    %7 = vector.load %arg2[%c16, %c0_7] : memref<152x32xf32, #tpu.memory_space<vmem>>, vector<1x32xf32>
    %c17 = arith.constant 17 : index
    %c0_8 = arith.constant 0 : index
    %8 = vector.load %arg2[%c17, %c0_8] : memref<152x32xf32, #tpu.memory_space<vmem>>, vector<1x32xf32>
    %c24 = arith.constant 24 : index
    %c0_9 = arith.constant 0 : index
    %9 = vector.load %arg2[%c24, %c0_9] : memref<152x32xf32, #tpu.memory_space<vmem>>, vector<32x32xf32>
    %c56 = arith.constant 56 : index
    %c0_10 = arith.constant 0 : index
    %10 = vector.load %arg2[%c56, %c0_10] : memref<152x32xf32, #tpu.memory_space<vmem>>, vector<32x32xf32>
    %c88 = arith.constant 88 : index
    %c0_11 = arith.constant 0 : index
    %11 = vector.load %arg2[%c88, %c0_11] : memref<152x32xf32, #tpu.memory_space<vmem>>, vector<64x32xf32>
    %c0_12 = arith.constant 0 : index
    %c0_13 = arith.constant 0 : index
    %12 = vector.load %arg3[%c0_12, %c0_13] : memref<72x128xf32, #tpu.memory_space<vmem>>, vector<32x128xf32>
    %c32 = arith.constant 32 : index
    %c0_14 = arith.constant 0 : index
    %13 = vector.load %arg3[%c32, %c0_14] : memref<72x128xf32, #tpu.memory_space<vmem>>, vector<32x128xf32>
    %c64 = arith.constant 64 : index
    %c0_15 = arith.constant 0 : index
    %14 = vector.load %arg3[%c64, %c0_15] : memref<72x128xf32, #tpu.memory_space<vmem>>, vector<1x128xf32>
    %c0_16 = arith.constant 0 : index
    %c0_17 = arith.constant 0 : index
    %15 = vector.load %arg1[%c0_16, %c0_17] : memref<512x4xf32, #tpu.memory_space<vmem>>, vector<512x4xf32>
    %cst = arith.constant dense<0.000000e+00> : vector<512x32xf32>
    %16 = tpu.matmul %15, %0, %cst {dimension_numbers = #tpu.dot_dimension_numbers<[1], [0], [0], [1], [0, 0, 1, 1], [], []>} : vector<512x4xf32>, vector<4x32xf32>, vector<512x32xf32> -> vector<512x32xf32>
    %17 = vector.broadcast %3 : vector<1x32xf32> to vector<512x32xf32>
    %18 = arith.addf %16, %17 : vector<512x32xf32>
    %cst_18 = arith.constant 0.000000e+00 : f32
    %19 = vector.broadcast %cst_18 : f32 to vector<512x32xf32>
    %20 = arith.maximumf %18, %19 : vector<512x32xf32>
    %21 = tpu.iota {dimensions = array<i32: 0>} : vector<16x32xi32>
    %c1_i32 = arith.constant 1 : i32
    %22 = tpu.dynamic_rotate %20 by %c1_i32 dim 0 : vector<512x32xf32>, i32 -> vector<512x32xf32>
    %c-1_i32 = arith.constant -1 : i32
    %23 = vector.broadcast %c-1_i32 : i32 to vector<16x32xi32>
    %24 = arith.addi %21, %23 : vector<16x32xi32>
    %c0_i32 = arith.constant 0 : i32
    %25 = vector.broadcast %c0_i32 : i32 to vector<16x32xi32>
    %26 = arith.cmpi sge, %24, %25 : vector<16x32xi32>
    %c-1_i32_19 = arith.constant -1 : i32
    %27 = vector.broadcast %c-1_i32_19 : i32 to vector<16x32xi32>
    %28 = arith.addi %21, %27 : vector<16x32xi32>
    %c16_i32 = arith.constant 16 : i32
    %29 = vector.broadcast %c16_i32 : i32 to vector<16x32xi32>
    %30 = arith.cmpi slt, %28, %29 : vector<16x32xi32>
    %31 = arith.andi %26, %30 : vector<16x32xi1>
    %32 = vector.shape_cast %22 : vector<512x32xf32> to vector<32x16x32xf32>
    %cst_20 = arith.constant 0.000000e+00 : f32
    %33 = vector.shape_cast %31 : vector<16x32xi1> to vector<1x16x32xi1>
    %34 = vector.broadcast %33 : vector<1x16x32xi1> to vector<32x16x32xi1>
    %35 = vector.broadcast %cst_20 : f32 to vector<32x16x32xf32>
    %36 = arith.select %34, %32, %35 : vector<32x16x32xi1>, vector<32x16x32xf32>
    %37 = vector.extract_strided_slice %1 {offsets = [0, 0], sizes = [1, 32], strides = [1, 1]} : vector<3x32xf32> to vector<1x32xf32>
    %38 = vector.shape_cast %37 : vector<1x32xf32> to vector<1x1x32xf32>
    %39 = vector.broadcast %38 : vector<1x1x32xf32> to vector<32x16x32xf32>
    %40 = arith.mulf %36, %39 : vector<32x16x32xf32>
    %41 = vector.shape_cast %20 : vector<512x32xf32> to vector<32x16x32xf32>
    %42 = vector.extract_strided_slice %1 {offsets = [1, 0], sizes = [1, 32], strides = [1, 1]} : vector<3x32xf32> to vector<1x32xf32>
    %43 = vector.shape_cast %42 : vector<1x32xf32> to vector<1x1x32xf32>
    %44 = vector.broadcast %43 : vector<1x1x32xf32> to vector<32x16x32xf32>
    %45 = arith.mulf %41, %44 : vector<32x16x32xf32>
    %46 = arith.addf %40, %45 : vector<32x16x32xf32>
    %c511_i32 = arith.constant 511 : i32
    %47 = tpu.dynamic_rotate %20 by %c511_i32 dim 0 : vector<512x32xf32>, i32 -> vector<512x32xf32>
    %c1_i32_21 = arith.constant 1 : i32
    %48 = vector.broadcast %c1_i32_21 : i32 to vector<16x32xi32>
    %49 = arith.addi %21, %48 : vector<16x32xi32>
    %c0_i32_22 = arith.constant 0 : i32
    %50 = vector.broadcast %c0_i32_22 : i32 to vector<16x32xi32>
    %51 = arith.cmpi sge, %49, %50 : vector<16x32xi32>
    %c1_i32_23 = arith.constant 1 : i32
    %52 = vector.broadcast %c1_i32_23 : i32 to vector<16x32xi32>
    %53 = arith.addi %21, %52 : vector<16x32xi32>
    %c16_i32_24 = arith.constant 16 : i32
    %54 = vector.broadcast %c16_i32_24 : i32 to vector<16x32xi32>
    %55 = arith.cmpi slt, %53, %54 : vector<16x32xi32>
    %56 = arith.andi %51, %55 : vector<16x32xi1>
    %57 = vector.shape_cast %47 : vector<512x32xf32> to vector<32x16x32xf32>
    %cst_25 = arith.constant 0.000000e+00 : f32
    %58 = vector.shape_cast %56 : vector<16x32xi1> to vector<1x16x32xi1>
    %59 = vector.broadcast %58 : vector<1x16x32xi1> to vector<32x16x32xi1>
    %60 = vector.broadcast %cst_25 : f32 to vector<32x16x32xf32>
    %61 = arith.select %59, %57, %60 : vector<32x16x32xi1>, vector<32x16x32xf32>
    %62 = vector.extract_strided_slice %1 {offsets = [2, 0], sizes = [1, 32], strides = [1, 1]} : vector<3x32xf32> to vector<1x32xf32>
    %63 = vector.shape_cast %62 : vector<1x32xf32> to vector<1x1x32xf32>
    %64 = vector.broadcast %63 : vector<1x1x32xf32> to vector<32x16x32xf32>
    %65 = arith.mulf %61, %64 : vector<32x16x32xf32>
    %66 = arith.addf %46, %65 : vector<32x16x32xf32>
    %67 = vector.shape_cast %4 : vector<1x32xf32> to vector<1x1x32xf32>
    %68 = vector.broadcast %67 : vector<1x1x32xf32> to vector<32x16x32xf32>
    %69 = arith.addf %66, %68 : vector<32x16x32xf32>
    %70 = vector.shape_cast %69 : vector<32x16x32xf32> to vector<2x256x32xf32>
    %71 = vector.shape_cast %20 : vector<512x32xf32> to vector<2x16x16x32xf32>
    %cst_26 = arith.constant 0.000000e+00 : f32
    %72 = vector.broadcast %cst_26 : f32 to vector<2x1x16x32xf32>
    %73 = tpu.concatenate %72, %71, %72 in 1 : vector<2x1x16x32xf32>, vector<2x16x16x32xf32>, vector<2x1x16x32xf32> -> vector<2x18x16x32xf32>
    %74 = vector.extract_strided_slice %73 {offsets = [0, 0, 0, 0], sizes = [2, 16, 16, 32], strides = [1, 1, 1, 1]} : vector<2x18x16x32xf32> to vector<2x16x16x32xf32>
    %75 = vector.extract_strided_slice %2 {offsets = [0, 0], sizes = [1, 32], strides = [1, 1]} : vector<3x32xf32> to vector<1x32xf32>
    %76 = vector.shape_cast %75 : vector<1x32xf32> to vector<1x1x1x32xf32>
    %77 = vector.broadcast %76 : vector<1x1x1x32xf32> to vector<2x16x16x32xf32>
    %78 = arith.mulf %74, %77 : vector<2x16x16x32xf32>
    %79 = vector.extract_strided_slice %73 {offsets = [0, 1, 0, 0], sizes = [2, 16, 16, 32], strides = [1, 1, 1, 1]} : vector<2x18x16x32xf32> to vector<2x16x16x32xf32>
    %80 = vector.extract_strided_slice %2 {offsets = [1, 0], sizes = [1, 32], strides = [1, 1]} : vector<3x32xf32> to vector<1x32xf32>
    %81 = vector.shape_cast %80 : vector<1x32xf32> to vector<1x1x1x32xf32>
    %82 = vector.broadcast %81 : vector<1x1x1x32xf32> to vector<2x16x16x32xf32>
    %83 = arith.mulf %79, %82 : vector<2x16x16x32xf32>
    %84 = arith.addf %78, %83 : vector<2x16x16x32xf32>
    %85 = vector.extract_strided_slice %73 {offsets = [0, 2, 0, 0], sizes = [2, 16, 16, 32], strides = [1, 1, 1, 1]} : vector<2x18x16x32xf32> to vector<2x16x16x32xf32>
    %86 = vector.extract_strided_slice %2 {offsets = [2, 0], sizes = [1, 32], strides = [1, 1]} : vector<3x32xf32> to vector<1x32xf32>
    %87 = vector.shape_cast %86 : vector<1x32xf32> to vector<1x1x1x32xf32>
    %88 = vector.broadcast %87 : vector<1x1x1x32xf32> to vector<2x16x16x32xf32>
    %89 = arith.mulf %85, %88 : vector<2x16x16x32xf32>
    %90 = arith.addf %84, %89 : vector<2x16x16x32xf32>
    %91 = vector.shape_cast %5 : vector<1x32xf32> to vector<1x1x1x32xf32>
    %92 = vector.broadcast %91 : vector<1x1x1x32xf32> to vector<2x16x16x32xf32>
    %93 = arith.addf %90, %92 : vector<2x16x16x32xf32>
    %94 = vector.shape_cast %93 : vector<2x16x16x32xf32> to vector<2x256x32xf32>
    %cst_27 = arith.constant dense<0.000000e+00> : vector<2x32xf32>
    %95 = vector.multi_reduction <add>, %70, %cst_27 [1] : vector<2x256x32xf32> to vector<2x32xf32>
    %cst_28 = arith.constant 3.906250e-03 : f32
    %96 = vector.broadcast %cst_28 : f32 to vector<2x32xf32>
    %97 = arith.mulf %95, %96 : vector<2x32xf32>
    %cst_29 = arith.constant dense<0.000000e+00> : vector<2x32xf32>
    %98 = vector.multi_reduction <add>, %94, %cst_29 [1] : vector<2x256x32xf32> to vector<2x32xf32>
    %cst_30 = arith.constant 3.906250e-03 : f32
    %99 = vector.broadcast %cst_30 : f32 to vector<2x32xf32>
    %100 = arith.mulf %98, %99 : vector<2x32xf32>
    %101 = tpu.concatenate %97, %100 in 1 : vector<2x32xf32>, vector<2x32xf32> -> vector<2x64xf32>
    %cst_31 = arith.constant dense<0.000000e+00> : vector<2x32xf32>
    %102 = tpu.matmul %101, %11, %cst_31 {dimension_numbers = #tpu.dot_dimension_numbers<[1], [0], [0], [1], [0, 0, 1, 1], [], []>} : vector<2x64xf32>, vector<64x32xf32>, vector<2x32xf32> -> vector<2x32xf32>
    %103 = vector.broadcast %6 : vector<1x32xf32> to vector<2x32xf32>
    %104 = arith.addf %102, %103 : vector<2x32xf32>
    %cst_32 = arith.constant 0.000000e+00 : f32
    %105 = vector.broadcast %cst_32 : f32 to vector<2x32xf32>
    %106 = arith.maximumf %104, %105 : vector<2x32xf32>
    %cst_33 = arith.constant dense<0.000000e+00> : vector<2x32xf32>
    %107 = tpu.matmul %106, %9, %cst_33 {dimension_numbers = #tpu.dot_dimension_numbers<[1], [0], [0], [1], [0, 0, 1, 1], [], []>} : vector<2x32xf32>, vector<32x32xf32>, vector<2x32xf32> -> vector<2x32xf32>
    %108 = vector.broadcast %7 : vector<1x32xf32> to vector<2x32xf32>
    %109 = arith.addf %107, %108 : vector<2x32xf32>
    %cst_34 = arith.constant 3.000000e+00 : f32
    %110 = vector.broadcast %cst_34 : f32 to vector<2x32xf32>
    %111 = arith.addf %109, %110 : vector<2x32xf32>
    %cst_35 = arith.constant 0.000000e+00 : f32
    %cst_36 = arith.constant 6.000000e+00 : f32
    %112 = vector.broadcast %cst_35 : f32 to vector<2x32xf32>
    %113 = arith.maximumf %112, %111 : vector<2x32xf32>
    %114 = vector.broadcast %cst_36 : f32 to vector<2x32xf32>
    %115 = arith.minimumf %114, %113 : vector<2x32xf32>
    %cst_37 = arith.constant 6.000000e+00 : f32
    %116 = vector.broadcast %cst_37 : f32 to vector<2x32xf32>
    %117 = arith.divf %115, %116 : vector<2x32xf32>
    %cst_38 = arith.constant dense<0.000000e+00> : vector<2x32xf32>
    %118 = tpu.matmul %106, %10, %cst_38 {dimension_numbers = #tpu.dot_dimension_numbers<[1], [0], [0], [1], [0, 0, 1, 1], [], []>} : vector<2x32xf32>, vector<32x32xf32>, vector<2x32xf32> -> vector<2x32xf32>
    %119 = vector.broadcast %8 : vector<1x32xf32> to vector<2x32xf32>
    %120 = arith.addf %118, %119 : vector<2x32xf32>
    %cst_39 = arith.constant 3.000000e+00 : f32
    %121 = vector.broadcast %cst_39 : f32 to vector<2x32xf32>
    %122 = arith.addf %120, %121 : vector<2x32xf32>
    %cst_40 = arith.constant 0.000000e+00 : f32
    %cst_41 = arith.constant 6.000000e+00 : f32
    %123 = vector.broadcast %cst_40 : f32 to vector<2x32xf32>
    %124 = arith.maximumf %123, %122 : vector<2x32xf32>
    %125 = vector.broadcast %cst_41 : f32 to vector<2x32xf32>
    %126 = arith.minimumf %125, %124 : vector<2x32xf32>
    %cst_42 = arith.constant 6.000000e+00 : f32
    %127 = vector.broadcast %cst_42 : f32 to vector<2x32xf32>
    %128 = arith.divf %126, %127 : vector<2x32xf32>
    %129 = vector.shape_cast %117 : vector<2x32xf32> to vector<2x1x32xf32>
    %130 = vector.broadcast %129 : vector<2x1x32xf32> to vector<2x256x32xf32>
    %131 = arith.mulf %70, %130 : vector<2x256x32xf32>
    %cst_43 = arith.constant 3.000000e+00 : f32
    %132 = vector.broadcast %cst_43 : f32 to vector<2x256x32xf32>
    %133 = arith.addf %131, %132 : vector<2x256x32xf32>
    %cst_44 = arith.constant 0.000000e+00 : f32
    %cst_45 = arith.constant 6.000000e+00 : f32
    %134 = vector.broadcast %cst_44 : f32 to vector<2x256x32xf32>
    %135 = arith.maximumf %134, %133 : vector<2x256x32xf32>
    %136 = vector.broadcast %cst_45 : f32 to vector<2x256x32xf32>
    %137 = arith.minimumf %136, %135 : vector<2x256x32xf32>
    %cst_46 = arith.constant 6.000000e+00 : f32
    %138 = vector.broadcast %cst_46 : f32 to vector<2x256x32xf32>
    %139 = arith.divf %137, %138 : vector<2x256x32xf32>
    %140 = vector.shape_cast %128 : vector<2x32xf32> to vector<2x1x32xf32>
    %141 = vector.broadcast %140 : vector<2x1x32xf32> to vector<2x256x32xf32>
    %142 = arith.mulf %94, %141 : vector<2x256x32xf32>
    %cst_47 = arith.constant 3.000000e+00 : f32
    %143 = vector.broadcast %cst_47 : f32 to vector<2x256x32xf32>
    %144 = arith.addf %142, %143 : vector<2x256x32xf32>
    %cst_48 = arith.constant 0.000000e+00 : f32
    %cst_49 = arith.constant 6.000000e+00 : f32
    %145 = vector.broadcast %cst_48 : f32 to vector<2x256x32xf32>
    %146 = arith.maximumf %145, %144 : vector<2x256x32xf32>
    %147 = vector.broadcast %cst_49 : f32 to vector<2x256x32xf32>
    %148 = arith.minimumf %147, %146 : vector<2x256x32xf32>
    %cst_50 = arith.constant 6.000000e+00 : f32
    %149 = vector.broadcast %cst_50 : f32 to vector<2x256x32xf32>
    %150 = arith.divf %148, %149 : vector<2x256x32xf32>
    %151 = vector.shape_cast %139 : vector<2x256x32xf32> to vector<512x32xf32>
    %cst_51 = arith.constant dense<0.000000e+00> : vector<512x128xf32>
    %152 = tpu.matmul %151, %12, %cst_51 {dimension_numbers = #tpu.dot_dimension_numbers<[1], [0], [0], [1], [0, 0, 1, 1], [], []>} : vector<512x32xf32>, vector<32x128xf32>, vector<512x128xf32> -> vector<512x128xf32>
    %153 = vector.shape_cast %150 : vector<2x256x32xf32> to vector<512x32xf32>
    %cst_52 = arith.constant dense<0.000000e+00> : vector<512x128xf32>
    %154 = tpu.matmul %153, %13, %cst_52 {dimension_numbers = #tpu.dot_dimension_numbers<[1], [0], [0], [1], [0, 0, 1, 1], [], []>} : vector<512x32xf32>, vector<32x128xf32>, vector<512x128xf32> -> vector<512x128xf32>
    %155 = arith.addf %152, %154 : vector<512x128xf32>
    %156 = vector.broadcast %14 : vector<1x128xf32> to vector<512x128xf32>
    %157 = arith.addf %155, %156 : vector<512x128xf32>
    %c0_53 = arith.constant 0 : index
    %c0_54 = arith.constant 0 : index
    %158 = vector.load %arg4[%c0_53, %c0_54] : memref<512x128xf32, #tpu.memory_space<vmem>>, vector<512x128xf32>
    tpu.vector_store %arg4[%c0_53, %c0_54], %157 {strides = array<i32>} : memref<512x128xf32, #tpu.memory_space<vmem>>, vector<512x128xf32>,
    return
  }
  func.func @transform_0(%arg0: i32) -> (i32, i32) {
    %c0_i32 = arith.constant 0 : i32
    %c0_i32_0 = arith.constant 0 : i32
    %c0_i32_1 = arith.constant 0 : i32
    return %c0_i32, %c0_i32_0 : i32, i32
  }
  func.func @transform_1(%arg0: i32) -> (i32, i32) {
    %c0_i32 = arith.constant 0 : i32
    %c0_i32_0 = arith.constant 0 : i32
    %c0_i32_1 = arith.constant 0 : i32
    return %c0_i32, %c0_i32_0 : i32, i32
  }
  func.func @transform_2(%arg0: i32) -> (i32, i32) {
    %c0_i32 = arith.constant 0 : i32
    %c0_i32_0 = arith.constant 0 : i32
    %c0_i32_1 = arith.constant 0 : i32
    return %c0_i32, %c0_i32_0 : i32, i32
  }
  func.func @transform_3(%arg0: i32) -> (i32, i32) {
    %c0_i32 = arith.constant 0 : i32
    %c0_i32_0 = arith.constant 0 : i32
    %c0_i32_1 = arith.constant 0 : i32
    return %c0_i32, %c0_i32_0 : i32, i32
  }
}

</mosaic_0001>

<bundles_post_ra>
// kernel: tpu_custom_call.1
= control target key start
LH: loop header
LB: loop body
LE: loop exit
PB: predicated region body
PF: predicated region fallthrough
CT: control target
= control target key end

     0   :  { %vm307_vm0 = vcmask 1043456   ;;  %vm114_vm1 = vcmask 31744   ;;  %s7322_s0 = inlined_call_operand.vmem [shape: f32[512,4], index: 0, kind: input, shape index: {}]   ;;  %s7323_s1 = inlined_call_operand.vmem [shape: f32[152,32], index: 1, kind: input, shape index: {}]   ;;  %s7324_s2 = inlined_call_operand.vmem [shape: f32[72,128], index: 2, kind: input, shape index: {}]   ;;  %s7325_s3 = inlined_call_operand.hbm [shape: f32[512,128], index: 3, kind: output, shape index: {}]  }
   0x1   :  { %v15_v0 = vld [vmem:[%s7323_s1] sm:$0xf]  ;;  %v99_v2 = vld [vmem:[%s7322_s0 + $0x190] sm:$0xff] }
   0x2   :  { %v49_v1 = vld [vmem:[%s7322_s0] sm:$0xff]  ;;  %3747 = vmatpush.msk.msra.mxu0 %vm307_vm0, %v15_v0  ;;  %3943 = vmatpush.msk.msra.mxu1 %vm307_vm0, %v15_v0 }
   0x3   :  { %3748 = vmatmul.msk.f32.vlgmr.msra.gmra.mxu0 %vm114_vm1, %v49_v1  ;;  %3798 = vmatmul.msk.f32.vlgmr.msra.gmra.mxu1 %vm114_vm1, %v99_v2 }
   0x4   :  { %8 = vsyncpa [#allocation3], 0  ;;  %v50_v3 = vld [vmem:[%s7322_s0 + $0x8] sm:$0xff]  ;;  %v100_v4 = vld [vmem:[%s7322_s0 + $0x198] sm:$0xff]  ;;  %v584_v35 = vlaneseq  ;;  %vm1767_vm6 = vcmask 261120   ;;  %vm2050_vm7 = vcmask 1041409  }
   0x5   :  { %v51_v5 = vld [vmem:[%s7322_s0 + $0x10] sm:$0xff]  ;;  %v101_v6 = vld [vmem:[%s7322_s0 + $0x1a0] sm:$0xff]  ;;  %v52_v7 = vld [vmem:[%s7322_s0 + $0x18] sm:$0xff]  ;;  %s3996_s11 = smov 32   ;;  %vm2061_vm8 = vcmask 523264   ;;  %s3735_s27 = sshll.u32 %s7325_s3, 4  ;;  %s3736_s27 = int_to_ptr.hbm [resolvable:$true] %s3735_s27 }
   0x6   :  { %v102_v8 = vld [vmem:[%s7322_s0 + $0x1a8] sm:$0xff]  ;;  %v53_v9 = vld [vmem:[%s7322_s0 + $0x20] sm:$0xff]  ;;  %v103_v10 = vld [vmem:[%s7322_s0 + $0x1b0] sm:$0xff]  ;;  %v4158_v39 = vshrl.u32 %v584_v35, 7  ;;  %s3999_s28 = smov 128   ;;  %s4000_s29 = smov 8  }
   0x7   :  { %v54_v11 = vld [vmem:[%s7322_s0 + $0x28] sm:$0xff]  ;;  %v104_v12 = vld [vmem:[%s7322_s0 + $0x1b8] sm:$0xff]  ;;  %v55_v13 = vld [vmem:[%s7322_s0 + $0x30] sm:$0xff] }
   0x8   :  { %v105_v14 = vld [vmem:[%s7322_s0 + $0x1c0] sm:$0xff]  ;;  %v56_v15 = vld [vmem:[%s7322_s0 + $0x38] sm:$0xff]  ;;  %v106_v16 = vld [vmem:[%s7322_s0 + $0x1c8] sm:$0xff]  ;;  %vm651_vm2 = vcmp.lt.s32.totalorder %v4158_v39, 1  ;;  %vm1050_vm3 = vcmp.lt.s32.totalorder %v4158_v39, 7  ;;  %v586_v53 = vadd.s32 8, %v4158_v39 }
   0x9   :  { %v57_v17 = vld [vmem:[%s7322_s0 + $0x40] sm:$0xff]  ;;  %v107_v18 = vld [vmem:[%s7322_s0 + $0x1d0] sm:$0xff]  ;;  %v58_v19 = vld [vmem:[%s7322_s0 + $0x48] sm:$0xff] }
   0xa   :  { %v108_v20 = vld [vmem:[%s7322_s0 + $0x1d8] sm:$0xff]  ;;  %v59_v21 = vld [vmem:[%s7322_s0 + $0x50] sm:$0xff]  ;;  %v109_v22 = vld [vmem:[%s7322_s0 + $0x1e0] sm:$0xff] }
   0xb   :  { %3749 = vmatmul.msk.f32.gmra.mxu0 %vm114_vm1, %v50_v3  ;;  %3799 = vmatmul.msk.f32.gmra.mxu1 %vm114_vm1, %v100_v4  ;;  %v60_v23 = vld [vmem:[%s7322_s0 + $0x58] sm:$0xff]  ;;  %v110_v24 = vld [vmem:[%s7322_s0 + $0x1e8] sm:$0xff]  ;;  %v61_v25 = vld [vmem:[%s7322_s0 + $0x60] sm:$0xff]  ;;  %v4209_v3 = vadd.s32 4294967295, %v4158_v39 }
   0xc   :  { %v111_v26 = vld [vmem:[%s7322_s0 + $0x1f0] sm:$0xff]  ;;  %v62_v27 = vld [vmem:[%s7322_s0 + $0x68] sm:$0xff]  ;;  %v112_v28 = vld [vmem:[%s7322_s0 + $0x1f8] sm:$0xff] }
   0xd   :  { %v63_v29 = vld [vmem:[%s7322_s0 + $0x70] sm:$0xff]  ;;  %v64_v30 = vld [vmem:[%s7322_s0 + $0x78] sm:$0xff]  ;;  %v4147_v31 = vld [vmem:[%s7323_s1 + $0xc] ss:$0 sm:$0xff]  ;;  %vm718_vm4 = vcmp.ge.s32.totalorder %v4209_v3, 0 }
   0xe   :  { %v65_v34 = vld [vmem:[%s7322_s0 + $0x80] sm:$0xff]  ;;  %v66_v44 = vld [vmem:[%s7322_s0 + $0x88] sm:$0xff]  ;;  %v67_v4 = vld [vmem:[%s7322_s0 + $0x90] sm:$0xff] }
   0xf   :  { %v16_v38 = vld [vmem:[%s7323_s1 + $0x4] sm:$0x7] }
  0x10   :  { %v4169_v47 = vperm.slane %v16_v38, 1  ;;  %v4174_v49 = vperm.slane %v16_v38, 0 }
  0x13   :  { %3750 = vmatmul.msk.f32.gmra.mxu0 %vm114_vm1, %v51_v5  ;;  %3800 = vmatmul.msk.f32.gmra.mxu1 %vm114_vm1, %v101_v6 }
  0x1b   :  { %3751 = vmatmul.msk.f32.gmra.mxu0 %vm114_vm1, %v52_v7  ;;  %3801 = vmatmul.msk.f32.gmra.mxu1 %vm114_vm1, %v102_v8  ;;  %v4222_v8 = vadd.s32 1, %v586_v53 }
  0x1d   :  { %vm1120_vm5 = vcmp.lt.s32.totalorder %v4222_v8, 16 }
  0x23   :  { %3752 = vmatmul.msk.f32.gmra.mxu0 %vm114_vm1, %v53_v9  ;;  %3802 = vmatmul.msk.f32.gmra.mxu1 %vm114_vm1, %v103_v10 }
  0x2b   :  { %3753 = vmatmul.msk.f32.gmra.mxu0 %vm114_vm1, %v54_v11  ;;  %3803 = vmatmul.msk.f32.gmra.mxu1 %vm114_vm1, %v104_v12 }
  0x33   :  { %3754 = vmatmul.msk.f32.gmra.mxu0 %vm114_vm1, %v55_v13  ;;  %3804 = vmatmul.msk.f32.gmra.mxu1 %vm114_vm1, %v105_v14 }
  0x3b   :  { %3755 = vmatmul.msk.f32.gmra.mxu0 %vm114_vm1, %v56_v15  ;;  %3805 = vmatmul.msk.f32.gmra.mxu1 %vm114_vm1, %v106_v16 }
  0x43   :  { %3756 = vmatmul.msk.f32.gmra.mxu0 %vm114_vm1, %v57_v17  ;;  %3806 = vmatmul.msk.f32.gmra.mxu1 %vm114_vm1, %v107_v18  ;;  %v4235_v18 = vperm.slane %v16_v38, 2 }
  0x4b   :  { %3757 = vmatmul.msk.f32.gmra.mxu0 %vm114_vm1, %v58_v19  ;;  %3807 = vmatmul.msk.f32.gmra.mxu1 %vm114_vm1, %v108_v20 }
  0x53   :  { %3758 = vmatmul.msk.f32.gmra.mxu0 %vm114_vm1, %v59_v21  ;;  %3808 = vmatmul.msk.f32.gmra.mxu1 %vm114_vm1, %v109_v22 }
  0x5b   :  { %3759 = vmatmul.msk.f32.gmra.mxu0 %vm114_vm1, %v60_v23  ;;  %3809 = vmatmul.msk.f32.gmra.mxu1 %vm114_vm1, %v110_v24 }
  0x63   :  { %3760 = vmatmul.msk.f32.gmra.mxu0 %vm114_vm1, %v61_v25  ;;  %3810 = vmatmul.msk.f32.gmra.mxu1 %vm114_vm1, %v111_v26 }
  0x6b   :  { %3761 = vmatmul.msk.f32.gmra.mxu0 %vm114_vm1, %v62_v27  ;;  %3811 = vmatmul.msk.f32.gmra.mxu1 %vm114_vm1, %v112_v28  ;;  %v68_v27 = vld [vmem:[%s7322_s0 + $0x98] sm:$0xff] }
  0x73   :  { %3762 = vmatmul.msk.f32.gmra.mxu0 %vm114_vm1, %v63_v29 }
  0x7b   :  { %3763 = vmatmul.msk.f32.gmra.mxu0 %vm114_vm1, %v64_v30 }
  0x80   :  { %v328_v32 = vpop.f32.mrf.mxu0  ;;  %v478_v33 = vpop.f32.mrf.mxu1 }
  0x81   :  { %v329_v36 = vadd.f32 %v4147_v31, %v328_v32  ;;  %v479_v37 = vadd.f32 %v4147_v31, %v478_v33 }
  0x83   :  { %3764 = vmatmul.msk.f32.gmra.mxu0 %vm114_vm1, %v65_v34  ;;  %v4160_v40 = vmax.f32 %v329_v36, 0.0  ;;  %v4162_v41 = vmax.f32 %v479_v37, 0.0 }
  0x85   :  { %v7329_v51 = vrot.slane %v4160_v40, 7  ;;  %v7327_v52 = vrot.slane %v4162_v41, 7  ;;  %v7328_v54 = vrot.slane %v4160_v40, 1  ;;  %v7326_v55 = vrot.slane %v4162_v41, 1 }
  0x88   :  { %v331_v42 = vpop.f32.mrf.mxu0  ;;  %v481_v43 = vpop.f32.mrf.mxu1 }
  0x89   :  { %v332_v45 = vadd.f32 %v4147_v31, %v331_v42  ;;  %v482_v46 = vadd.f32 %v4147_v31, %v481_v43 }
  0x8b   :  { %v4171_v48 = vmax.f32 %v332_v45, 0.0  ;;  %v4176_v50 = vmax.f32 %v482_v46, 0.0  ;;  %3765 = vmatmul.msk.f32.gmra.mxu0 %vm114_vm1, %v66_v44 }
  0x8d   :  { %v588_v56 = vrot.slane %v4171_v48, 7  ;;  %v987_v57 = vrot.slane %v4171_v48, 1  ;;  %v638_v58 = vrot.slane %v4176_v50, 7  ;;  %v1037_v59 = vrot.slane %v4176_v50, 1 }
  0x8e   :  { %v909_v62 = vmul.f32 %v4169_v47, %v4176_v50  ;;  %v859_v0 = vmul.f32 %v4169_v47, %v4171_v48 }
  0x8f   :  { %v714_v60 = vsel %vm651_vm2, %v7329_v51, %v588_v56  ;;  %v4197_v61 = vsel %vm1050_vm3, %v7328_v54, %v987_v57  ;;  %v664_v1 = vsel %vm651_vm2, %v7327_v52, %v638_v58  ;;  %v4219_v6 = vsel %vm1050_vm3, %v7326_v55, %v1037_v59 }
  0x90   :  { %v794_v63 = vmul.f32 %v4174_v49, %v714_v60  ;;  %v334_v2 = vpop.f32.mrf.mxu0  ;;  %v844_v5 = vmul.f32 %v4174_v49, %v664_v1  ;;  %v484_v9 = vpop.f32.mrf.mxu1  ;;  %v69_v60 = vld [vmem:[%s7322_s0 + $0xa0] sm:$0xff] }
  0x91   :  { %v335_v7 = vadd.f32 %v4147_v31, %v334_v2  ;;  %v485_v11 = vadd.f32 %v4147_v31, %v484_v9 }
  0x92   :  { %v923_v10 = vadd.f32 %v859_v0, %v794_v63  ;;  %v973_v12 = vadd.f32 %v909_v62, %v844_v5 }
  0x93   :  { %v4225_v13 = vmax.f32 %v335_v7, 0.0  ;;  %3766 = vmatmul.msk.f32.gmra.mxu0 %vm114_vm1, %v67_v4  ;;  %v4228_v14 = vmax.f32 %v485_v11, 0.0 }
  0x95   :  { %v589_v15 = vrot.slane %v4225_v13, 7  ;;  %v988_v16 = vrot.slane %v4225_v13, 1  ;;  %v639_v17 = vrot.slane %v4228_v14, 7  ;;  %v1038_v21 = vrot.slane %v4228_v14, 1 }
  0x96   :  { %v860_v23 = vmul.f32 %v4169_v47, %v4225_v13  ;;  %v910_v25 = vmul.f32 %v4169_v47, %v4228_v14 }
  0x97   :  { %v713_v19 = vsel %vm651_vm2, %v588_v56, %v589_v15  ;;  %v1112_v20 = vsel %vm1050_vm3, %v987_v57, %v988_v16  ;;  %v663_v30 = vsel %vm651_vm2, %v638_v58, %v639_v17  ;;  %v1062_v32 = vsel %vm1050_vm3, %v1037_v59, %v1038_v21 }
  0x98   :  { %v730_v22 = vsel %vm718_vm4, %v713_v19, 0.0  ;;  %v1128_v24 = vsel %vm1120_vm5, %v1112_v20, 0.0  ;;  %v337_v26 = vpop.f32.mrf.mxu0  ;;  %v780_v33 = vsel %vm718_vm4, %v663_v30, 0.0  ;;  %v1178_v34 = vsel %vm1120_vm5, %v1062_v32, 0.0  ;;  %v487_v43 = vpop.f32.mrf.mxu1 }
  0x99   :  { %v795_v28 = vmul.f32 %v4174_v49, %v730_v22  ;;  %v1193_v29 = vmul.f32 %v4235_v18, %v1128_v24  ;;  %v845_v37 = vmul.f32 %v4174_v49, %v780_v33  ;;  %v1243_v38 = vmul.f32 %v4235_v18, %v1178_v34 }
  0x9a   :  { %v338_v42 = vadd.f32 %v4147_v31, %v337_v26  ;;  %v488_v46 = vadd.f32 %v4147_v31, %v487_v43 }
  0x9b   :  { %v924_v35 = vadd.f32 %v860_v23, %v795_v28  ;;  %v4263_v36 = vadd.f32 %v1193_v29, %v923_v10  ;;  %3767 = vmatmul.msk.f32.gmra.mxu0 %vm114_vm1, %v68_v27  ;;  %v974_v44 = vadd.f32 %v910_v25, %v845_v37  ;;  %v4269_v45 = vadd.f32 %v1243_v38, %v973_v12 }
  0x9c   :  { %v4272_v53 = vmax.f32 %v338_v42, 0.0  ;;  %v4274_v56 = vmax.f32 %v488_v46, 0.0 }
  0x9d   :  { %7437 = vst [vmem:[#allocation5_spill] sm:$0xff] %v4263_v36 }
  0x9e   :  { %7438 = vst [vmem:[#allocation6_spill] sm:$0xff] %v4269_v45  ;;  %v590_v57 = vrot.slane %v4272_v53, 7  ;;  %v989_v58 = vrot.slane %v4272_v53, 1  ;;  %v640_v62 = vrot.slane %v4274_v56, 7  ;;  %v1039_v1 = vrot.slane %v4274_v56, 1 }
  0x9f   :  { %v861_v4 = vmul.f32 %v4169_v47, %v4272_v53  ;;  %v911_v7 = vmul.f32 %v4169_v47, %v4274_v56 }
  0xa0   :  { %v340_v59 = vpop.f32.mrf.mxu0  ;;  %v712_v63 = vsel %vm651_vm2, %v589_v15, %v590_v57  ;;  %v1111_v0 = vsel %vm1050_vm3, %v988_v16, %v989_v58  ;;  %v662_v9 = vsel %vm651_vm2, %v639_v17, %v640_v62  ;;  %v1061_v10 = vsel %vm1050_vm3, %v1038_v21, %v1039_v1  ;;  %v490_v20 = vpop.f32.mrf.mxu1  ;;  %v70_v21 = vld [vmem:[%s7322_s0 + $0xa8] sm:$0xff] }
  0xa1   :  { %v796_v2 = vmul.f32 %v4174_v49, %v712_v63  ;;  %v1194_v5 = vmul.f32 %v4235_v18, %v1111_v0  ;;  %v846_v15 = vmul.f32 %v4174_v49, %v662_v9  ;;  %v1244_v16 = vmul.f32 %v4235_v18, %v1061_v10 }
  0xa2   :  { %v341_v19 = vadd.f32 %v4147_v31, %v340_v59  ;;  %v491_v23 = vadd.f32 %v4147_v31, %v490_v20 }
  0xa3   :  { %3768 = vmatmul.msk.f32.gmra.mxu0 %vm114_vm1, %v69_v60  ;;  %v925_v11 = vadd.f32 %v861_v4, %v796_v2  ;;  %v4298_v12 = vadd.f32 %v1194_v5, %v924_v35  ;;  %v975_v22 = vadd.f32 %v911_v7, %v846_v15  ;;  %v4304_v24 = vadd.f32 %v1244_v16, %v974_v44 }
  0xa4   :  { %v4306_v25 = vmax.f32 %v341_v19, 0.0  ;;  %v4311_v26 = vmax.f32 %v491_v23, 0.0 }
  0xa5   :  { %7439 = vst [vmem:[#allocation7_spill] sm:$0xff] %v4298_v12 }
  0xa6   :  { %7440 = vst [vmem:[#allocation8_spill] sm:$0xff] %v4304_v24  ;;  %v591_v27 = vrot.slane %v4306_v25, 7  ;;  %v990_v28 = vrot.slane %v4306_v25, 1  ;;  %v641_v29 = vrot.slane %v4311_v26, 7  ;;  %v862_v34 = vmul.f32 %v4169_v47, %v4306_v25 }
  0xa7   :  { %v912_v37 = vmul.f32 %v4169_v47, %v4311_v26  ;;  %v1040_v44 = vrot.slane %v4311_v26, 1 }
  0xa8   :  { %v343_v17 = vpop.f32.mrf.mxu0  ;;  %v711_v30 = vsel %vm651_vm2, %v590_v57, %v591_v27  ;;  %v1110_v32 = vsel %vm1050_vm3, %v989_v58, %v990_v28  ;;  %v661_v43 = vsel %vm651_vm2, %v640_v62, %v641_v29  ;;  %v493_v0 = vpop.f32.mrf.mxu1  ;;  %v71_v62 = vld [vmem:[%s7322_s0 + $0xb0] sm:$0xff] }
  0xa9   :  { %v732_v33 = vsel %vm718_vm4, %v711_v30, 0.0  ;;  %v1130_v35 = vsel %vm1120_vm5, %v1110_v32, 0.0  ;;  %v782_v46 = vsel %vm718_vm4, %v661_v43, 0.0  ;;  %v344_v57 = vadd.f32 %v4147_v31, %v343_v17  ;;  %v17_v17 = vld [vmem:[%s7323_s1 + $0x8] sm:$0x7] }
  0xaa   :  { %v797_v38 = vmul.f32 %v4174_v49, %v732_v33  ;;  %v1195_v42 = vmul.f32 %v4235_v18, %v1130_v35  ;;  %v847_v60 = vmul.f32 %v4174_v49, %v782_v46  ;;  %v1060_v63 = vsel %vm1050_vm3, %v1039_v1, %v1040_v44 }
  0xab   :  { %3769 = vmatmul.msk.f32.gmra.mxu0 %vm114_vm1, %v70_v21  ;;  %v1180_v4 = vsel %vm1120_vm5, %v1060_v63, 0.0  ;;  %v494_v5 = vadd.f32 %v4147_v31, %v493_v0  ;;  %v4349_v10 = vmax.f32 %v344_v57, 0.0  ;;  %v4382_v46 = vperm.slane %v17_v17, 1 }
  0xac   :  { %v926_v58 = vadd.f32 %v862_v34, %v797_v38  ;;  %v4337_v59 = vadd.f32 %v1195_v42, %v925_v11  ;;  %v976_v7 = vadd.f32 %v912_v37, %v847_v60  ;;  %v1245_v9 = vmul.f32 %v4235_v18, %v1180_v4 }
  0xad   :  { %v592_v1 = vrot.slane %v4349_v10, 7  ;;  %v991_v15 = vrot.slane %v4349_v10, 1  ;;  %v4356_v16 = vmax.f32 %v494_v5, 0.0  ;;  %v863_v21 = vmul.f32 %v4169_v47, %v4349_v10 }
  0xae   :  { %7441 = vst [vmem:[#allocation9_spill] sm:$0xff] %v4337_v59  ;;  %v4352_v11 = vadd.f32 %v1245_v9, %v975_v22 }
  0xaf   :  { %v710_v19 = vsel %vm651_vm2, %v591_v27, %v592_v1  ;;  %v1109_v20 = vsel %vm1050_vm3, %v990_v28, %v991_v15  ;;  %v642_v23 = vrot.slane %v4356_v16, 7  ;;  %v72_v27 = vld [vmem:[%s7322_s0 + $0xb8] sm:$0xff]  ;;  %v913_v34 = vmul.f32 %v4169_v47, %v4356_v16 }
  0xb0   :  { %v346_v2 = vpop.f32.mrf.mxu0  ;;  %7442 = vst [vmem:[#allocation10_spill] sm:$0xff] %v4352_v11  ;;  %v798_v22 = vmul.f32 %v4174_v49, %v710_v19  ;;  %v1196_v30 = vmul.f32 %v4235_v18, %v1109_v20  ;;  %v1041_v35 = vrot.slane %v4356_v16, 1  ;;  %v496_v43 = vpop.f32.mrf.mxu1 }
  0xb1   :  { %v347_v32 = vadd.f32 %v4147_v31, %v346_v2  ;;  %v660_v28 = vsel %vm651_vm2, %v641_v29, %v642_v23  ;;  %v497_v60 = vadd.f32 %v4147_v31, %v496_v43  ;;  %v4391_v2 = vperm.slane %v17_v17, 0 }
  0xb2   :  { %v927_v37 = vadd.f32 %v863_v21, %v798_v22  ;;  %v4379_v38 = vadd.f32 %v1196_v30, %v926_v58  ;;  %v848_v42 = vmul.f32 %v4174_v49, %v660_v28  ;;  %v1059_v57 = vsel %vm1050_vm3, %v1040_v44, %v1041_v35  ;;  %v73_v30 = vld [vmem:[%s7322_s0 + $0xc0] sm:$0xff] }
  0xb3   :  { %3770 = vmatmul.msk.f32.gmra.mxu0 %vm114_vm1, %v71_v62  ;;  %v1246_v63 = vmul.f32 %v4235_v18, %v1059_v57  ;;  %v4389_v0 = vmax.f32 %v347_v32, 0.0  ;;  %v1452_v58 = vmul.f32 %v4382_v46, %v4306_v25  ;;  %v4395_v62 = vperm.slane %v17_v17, 2 }
  0xb4   :  { %7443 = vst [vmem:[#allocation11_spill] sm:$0xff] %v4379_v38  ;;  %v977_v29 = vadd.f32 %v913_v34, %v848_v42  ;;  %v1389_v5 = vmul.f32 %v4391_v2, %v4225_v13  ;;  %v4403_v19 = vmax.f32 %v497_v60, 0.0  ;;  %v1391_v20 = vmul.f32 %v4391_v2, %v4306_v25 }
  0xb5   :  { %v4397_v4 = vadd.f32 %v1246_v63, %v976_v7  ;;  %v593_v44 = vrot.slane %v4389_v0, 7  ;;  %v992_v9 = vrot.slane %v4389_v0, 1  ;;  %v1454_v17 = vmul.f32 %v4382_v46, %v4389_v0 }
  0xb6   :  { %7445 = vst [vmem:[#allocation13_spill] sm:$0xff] %v4403_v19  ;;  %v1581_v7 = vmul.f32 %v4395_v62, %v4389_v0  ;;  %v1516_v32 = vadd.f32 %v1452_v58, %v1389_v5  ;;  %v864_v42 = vmul.f32 %v4169_v47, %v4389_v0 }
  0xb7   :  { %7444 = vst [vmem:[#allocation12_spill] sm:$0xff] %v4397_v4  ;;  %v709_v22 = vsel %vm651_vm2, %v592_v1, %v593_v44  ;;  %v1108_v28 = vsel %vm1050_vm3, %v991_v15, %v992_v9  ;;  %v643_v1 = vrot.slane %v4403_v19, 7  ;;  %v4426_v57 = vadd.f32 %v1454_v17, %v1391_v20 }
  0xb8   :  { %v349_v33 = vpop.f32.mrf.mxu0  ;;  %v1132_v43 = vsel %vm1120_vm5, %v1108_v28, 0.0  ;;  %v4429_v63 = vadd.f32 %v1581_v7, %v1516_v32  ;;  %v914_v15 = vmul.f32 %v4169_v47, %v4403_v19  ;;  %v499_v7 = vpop.f32.mrf.mxu1 }
  0xb9   :  { %v1197_v60 = vmul.f32 %v4235_v18, %v1132_v43  ;;  %v659_v58 = vsel %vm651_vm2, %v642_v23, %v643_v1  ;;  %v350_v23 = vadd.f32 %v4147_v31, %v349_v33  ;;  %v1390_v33 = vmul.f32 %v4391_v2, %v4272_v53 }
  0xbb   :  { %3771 = vmatmul.msk.f32.gmra.mxu0 %vm114_vm1, %v72_v27  ;;  %v734_v27 = vsel %vm718_vm4, %v709_v22, 0.0  ;;  %v784_v22 = vsel %vm718_vm4, %v659_v58, 0.0  ;;  %v4439_v20 = vadd.f32 %v1197_v60, %v927_v37  ;;  %v74_v60 = vld [vmem:[%s7322_s0 + $0xc8] sm:$0xff]  ;;  %v4454_v58 = vmax.f32 %v350_v23, 0.0 }
  0xbc   :  { %v799_v34 = vmul.f32 %v4174_v49, %v734_v27  ;;  %v1042_v27 = vrot.slane %v4403_v19, 1  ;;  %v849_v17 = vmul.f32 %v4174_v49, %v784_v22 }
  0xbd   :  { %7446 = vst [vmem:[#allocation14_spill] sm:$0xff] %v4439_v20  ;;  %v993_v22 = vrot.slane %v4454_v58, 1 }
  0xbe   :  { %v928_v5 = vadd.f32 %v864_v42, %v799_v34  ;;  %v1058_v32 = vsel %vm1050_vm3, %v1041_v35, %v1042_v27  ;;  %v978_v28 = vadd.f32 %v914_v15, %v849_v17  ;;  %v500_v34 = vadd.f32 %v4147_v31, %v499_v7 }
  0xbf   :  { %v1453_v42 = vmul.f32 %v4382_v46, %v4349_v10  ;;  %v594_v15 = vrot.slane %v4454_v58, 7 }
  0xc0   :  { %v352_v21 = vpop.f32.mrf.mxu0  ;;  %v4462_v17 = vmax.f32 %v500_v34, 0.0  ;;  %v502_v52 = vpop.f32.mrf.mxu1 }
  0xc1   :  { %v1517_v7 = vadd.f32 %v1453_v42, %v1390_v33  ;;  %v353_v23 = vadd.f32 %v4147_v31, %v352_v21  ;;  %v503_v4 = vadd.f32 %v4147_v31, %v502_v52 }
  0xc2   :  { %7448 = vst [vmem:[#allocation16_spill] sm:$0xff] %v4462_v17  ;;  %v644_v34 = vrot.slane %v4462_v17, 7  ;;  %v915_v21 = vmul.f32 %v4169_v47, %v4462_v17  ;;  %v1043_v33 = vrot.slane %v4462_v17, 1 }
  0xc3   :  { %3772 = vmatmul.msk.f32.gmra.mxu0 %vm114_vm1, %v73_v30  ;;  %v1182_v30 = vsel %vm1120_vm5, %v1058_v32, 0.0  ;;  %v1582_v32 = vmul.f32 %v4395_v62, %v4454_v58 }
  0xc4   :  { %v1247_v37 = vmul.f32 %v4235_v18, %v1182_v30  ;;  %v708_v30 = vsel %vm651_vm2, %v593_v44, %v594_v15  ;;  %v658_v44 = vsel %vm651_vm2, %v643_v1, %v644_v34 }
  0xc5   :  { %v800_v55 = vmul.f32 %v4174_v49, %v708_v30  ;;  %v4492_v30 = vmax.f32 %v353_v23, 0.0 }
  0xc6   :  { %v4458_v35 = vadd.f32 %v1247_v37, %v977_v29  ;;  %v865_v29 = vmul.f32 %v4169_v47, %v4454_v58  ;;  %v1107_v37 = vsel %vm1050_vm3, %v992_v9, %v993_v22  ;;  %v850_v9 = vmul.f32 %v4174_v49, %v658_v44 }
  0xc7   :  { %v1198_v42 = vmul.f32 %v4235_v18, %v1107_v37  ;;  %v1456_v23 = vmul.f32 %v4382_v46, %v4492_v30  ;;  %v1583_v52 = vmul.f32 %v4395_v62, %v4492_v30  ;;  %v4513_v44 = vmax.f32 %v503_v4, 0.0 }
  0xc8   :  { %v355_v43 = vpop.f32.mrf.mxu0  ;;  %7447 = vst [vmem:[#allocation15_spill] sm:$0xff] %v4458_v35  ;;  %v929_v54 = vadd.f32 %v865_v29, %v800_v55  ;;  %v979_v37 = vadd.f32 %v915_v21, %v850_v9  ;;  %v595_v55 = vrot.slane %v4492_v30, 7  ;;  %v994_v29 = vrot.slane %v4492_v30, 1  ;;  %v505_v11 = vpop.f32.mrf.mxu1 }
  0xc9   :  { %v4484_v51 = vadd.f32 %v1198_v42, %v928_v5  ;;  %v1393_v42 = vmul.f32 %v4391_v2, %v4389_v0  ;;  %7451 = vst [vmem:[#allocation19_spill] sm:$0xff] %v4513_v44  ;;  %v356_v9 = vadd.f32 %v4147_v31, %v355_v43  ;;  %v645_v4 = vrot.slane %v4513_v44, 7  ;;  %v76_v43 = vld [vmem:[%s7322_s0 + $0xd8] sm:$0xff] }
  0xcb   :  { %3773 = vmatmul.msk.f32.gmra.mxu0 %vm114_vm1, %v74_v60  ;;  %v4477_v60 = vadd.f32 %v1582_v32, %v1517_v7  ;;  %7449 = vst [vmem:[#allocation17_spill] sm:$0xff] %v4484_v51  ;;  %v75_v7 = vld [vmem:[%s7322_s0 + $0xd0] sm:$0xff]  ;;  %v1057_v32 = vsel %vm1050_vm3, %v1042_v27, %v1043_v33  ;;  %v707_v27 = vsel %vm651_vm2, %v594_v15, %v595_v55 }
  0xcc   :  { %v1248_v1 = vmul.f32 %v4235_v18, %v1057_v32  ;;  %v736_v21 = vsel %vm718_vm4, %v707_v27, 0.0  ;;  %v866_v15 = vmul.f32 %v4169_v47, %v4492_v30  ;;  %v4521_v32 = vadd.f32 %v1456_v23, %v1393_v42 }
  0xcd   :  { %v801_v0 = vmul.f32 %v4174_v49, %v736_v21  ;;  %v4525_v27 = vadd.f32 %v1583_v52, %v4426_v57  ;;  %v657_v42 = vsel %vm651_vm2, %v644_v34, %v645_v4  ;;  %v916_v57 = vmul.f32 %v4169_v47, %v4513_v44 }
  0xce   :  { %v4498_v5 = vadd.f32 %v1248_v1, %v978_v28  ;;  %v1106_v28 = vsel %vm1050_vm3, %v993_v22, %v994_v29  ;;  %v786_v23 = vsel %vm718_vm4, %v657_v42, 0.0 }
  0xcf   :  { %v930_v21 = vadd.f32 %v866_v15, %v801_v0  ;;  %v851_v0 = vmul.f32 %v4174_v49, %v786_v23 }
  0xd0   :  { %v358_v35 = vpop.f32.mrf.mxu0  ;;  %7450 = vst [vmem:[#allocation18_spill] sm:$0xff] %v4498_v5  ;;  %v1044_v5 = vrot.slane %v4513_v44, 1 }
  0xd2   :  { %v1056_v52 = vsel %vm1050_vm3, %v1043_v33, %v1044_v5 }
  0xd3   :  { %3774 = vmatmul.msk.f32.gmra.mxu0 %vm114_vm1, %v75_v7  ;;  %v1134_v7 = vsel %vm1120_vm5, %v1106_v28, 0.0  ;;  %v4542_v28 = vmax.f32 %v356_v9, 0.0 }
  0xd4   :  { %v1199_v1 = vmul.f32 %v4235_v18, %v1134_v7  ;;  %v980_v7 = vadd.f32 %v916_v57, %v851_v0  ;;  %v77_v57 = vld [vmem:[%s7322_s0 + $0xe0] sm:$0xff] }
  0xd5   :  { %v596_v15 = vrot.slane %v4542_v28, 7 }
  0xd6   :  { %v4532_v24 = vadd.f32 %v1199_v1, %v929_v54  ;;  %v1184_v54 = vsel %vm1120_vm5, %v1056_v52, 0.0  ;;  %v995_v1 = vrot.slane %v4542_v28, 1 }
  0xd7   :  { %v1249_v34 = vmul.f32 %v4235_v18, %v1184_v54  ;;  %v706_v33 = vsel %vm651_vm2, %v595_v55, %v596_v15  ;;  %v359_v54 = vadd.f32 %v4147_v31, %v358_v35 }
  0xd8   :  { %v361_v22 = vpop.f32.mrf.mxu0  ;;  %7452 = vst [vmem:[#allocation20_spill] sm:$0xff] %v4532_v24  ;;  %v802_v9 = vmul.f32 %v4174_v49, %v706_v33  ;;  %v1105_v23 = vsel %vm1050_vm3, %v994_v29, %v995_v1 }
  0xd9   :  { %v4551_v42 = vadd.f32 %v1249_v34, %v979_v37  ;;  %v1200_v0 = vmul.f32 %v4235_v18, %v1105_v23  ;;  %v506_v37 = vadd.f32 %v4147_v31, %v505_v11  ;;  %v4573_v24 = vmax.f32 %v359_v54, 0.0 }
  0xdb   :  { %3775 = vmatmul.msk.f32.gmra.mxu0 %vm114_vm1, %v76_v43  ;;  %7453 = vst [vmem:[#allocation21_spill] sm:$0xff] %v4551_v42  ;;  %v867_v43 = vmul.f32 %v4169_v47, %v4542_v28  ;;  %v4566_v34 = vadd.f32 %v1200_v0, %v930_v21  ;;  %v4568_v33 = vmax.f32 %v506_v37, 0.0  ;;  %v508_v42 = vpop.f32.mrf.mxu1  ;;  %v996_v37 = vrot.slane %v4573_v24, 1 }
  0xdc   :  { %v509_v23 = vadd.f32 %v4147_v31, %v508_v42  ;;  %v597_v42 = vrot.slane %v4573_v24, 7 }
  0xdd   :  { %v931_v55 = vadd.f32 %v867_v43, %v802_v9  ;;  %7454 = vst [vmem:[#allocation22_spill] sm:$0xff] %v4566_v34  ;;  %v646_v29 = vrot.slane %v4568_v33, 7  ;;  %v1045_v45 = vrot.slane %v4568_v33, 1  ;;  %v917_v11 = vmul.f32 %v4169_v47, %v4568_v33 }
  0xde   :  { %7455 = vst [vmem:[#allocation23_spill] sm:$0xff] %v4568_v33  ;;  %v1395_v9 = vmul.f32 %v4391_v2, %v4492_v30  ;;  %v4590_v54 = vmax.f32 %v509_v23, 0.0  ;;  %v868_v30 = vmul.f32 %v4169_v47, %v4573_v24  ;;  %v705_v23 = vsel %vm651_vm2, %v596_v15, %v597_v42 }
  0xdf   :  { %v656_v35 = vsel %vm651_vm2, %v645_v4, %v646_v29  ;;  %v1055_v21 = vsel %vm1050_vm3, %v1044_v5, %v1045_v45  ;;  %v362_v4 = vadd.f32 %v4147_v31, %v361_v22  ;;  %v1104_v22 = vsel %vm1050_vm3, %v995_v1, %v996_v37 }
  0xe0   :  { %v364_v52 = vpop.f32.mrf.mxu0  ;;  %v852_v43 = vmul.f32 %v4174_v49, %v656_v35  ;;  %7456 = vst [vmem:[#allocation24_spill] sm:$0xff] %v4590_v54  ;;  %v1458_v35 = vmul.f32 %v4382_v46, %v4573_v24  ;;  %v918_v15 = vmul.f32 %v4169_v47, %v4590_v54 }
  0xe2   :  { %v4593_v34 = vadd.f32 %v917_v11, %v852_v43  ;;  %v647_v11 = vrot.slane %v4590_v54, 7  ;;  %v738_v43 = vsel %vm718_vm4, %v705_v23, 0.0 }
  0xe3   :  { %3776 = vmatmul.msk.f32.gmra.mxu0 %vm114_vm1, %v77_v57  ;;  %v1250_v57 = vmul.f32 %v4235_v18, %v1055_v21  ;;  %v78_v21 = vld [vmem:[%s7322_s0 + $0xe8] sm:$0xff]  ;;  %v803_v51 = vmul.f32 %v4174_v49, %v738_v43  ;;  %v511_v38 = vpop.f32.mrf.mxu1 }
  0xe4   :  { %7457 = vst [vmem:[#allocation25_spill] sm:$0xff] %v4593_v34  ;;  %v81_v34 = vld [vmem:[%s7322_s0 + $0x100] sm:$0xff] }
  0xe5   :  { %v4595_v5 = vadd.f32 %v1250_v57, %v980_v7  ;;  %v1585_v7 = vmul.f32 %v4395_v62, %v4573_v24  ;;  %v1136_v57 = vsel %vm1120_vm5, %v1104_v22, 0.0  ;;  %v1046_v22 = vrot.slane %v4590_v54, 1 }
  0xe6   :  { %v1201_v1 = vmul.f32 %v4235_v18, %v1136_v57  ;;  %v932_v43 = vadd.f32 %v868_v30, %v803_v51 }
  0xe7   :  { %7458 = vst [vmem:[#allocation26_spill] sm:$0xff] %v4595_v5  ;;  %v1522_v5 = vadd.f32 %v1458_v35, %v1395_v9  ;;  %v4621_v20 = vadd.f32 %v1585_v7, %v4521_v32  ;;  %v512_v9 = vadd.f32 %v4147_v31, %v511_v38  ;;  %v1457_v35 = vmul.f32 %v4382_v46, %v4542_v28 }
  0xe8   :  { %v4586_v0 = vpop.f32.mrf.mxu0  ;;  %v4631_v59 = vadd.f32 %v1201_v1, %v931_v55  ;;  %v4636_v7 = vsel %vm1050_vm3, %v1045_v45, %v1046_v22  ;;  %v79_v55 = vld [vmem:[%s7322_s0 + $0xf0] sm:$0xff] }
  0xe9   :  { %7460 = vst [vmem:[#allocation28_spill] sm:$0xff] %v4636_v7  ;;  %v4647_v51 = vmax.f32 %v512_v9, 0.0 }
  0xea   :  { %7459 = vst [vmem:[#allocation27_spill] sm:$0xff] %v4631_v59 }
  0xeb   :  { %3777 = vmatmul.msk.f32.gmra.mxu0 %vm114_vm1, %v78_v21  ;;  %v655_v21 = vsel %vm651_vm2, %v646_v29, %v647_v11  ;;  %v4638_v29 = vmax.f32 %v362_v4, 0.0  ;;  %7462 = vst [vmem:[#allocation30_spill] sm:$0xff] %v4647_v51  ;;  %v365_v4 = vadd.f32 %v4147_v31, %v364_v52  ;;  %v648_v9 = vrot.slane %v4647_v51, 7  ;;  %v514_v33 = vpop.f32.mrf.mxu1 }
  0xec   :  { %v788_v23 = vsel %vm718_vm4, %v655_v21, 0.0  ;;  %v1394_v21 = vmul.f32 %v4391_v2, %v4454_v58  ;;  %v919_v52 = vmul.f32 %v4169_v47, %v4647_v51 }
  0xed   :  { %v853_v32 = vmul.f32 %v4174_v49, %v788_v23  ;;  %v598_v12 = vrot.slane %v4638_v29, 7  ;;  %v997_v45 = vrot.slane %v4638_v29, 1  ;;  %v1586_v23 = vmul.f32 %v4395_v62, %v4638_v29 }
  0xee   :  { %v1521_v30 = vadd.f32 %v1457_v35, %v1394_v21  ;;  %v1047_v21 = vrot.slane %v4647_v51, 1  ;;  %v654_v59 = vsel %vm651_vm2, %v647_v11, %v648_v9  ;;  %v80_v11 = vld [vmem:[%s7322_s0 + $0xf8] sm:$0xff] }
  0xef   :  { %v4644_v38 = vadd.f32 %v918_v15, %v853_v32  ;;  %v704_v1 = vsel %vm651_vm2, %v597_v42, %v598_v12  ;;  %v869_v15 = vmul.f32 %v4169_v47, %v4638_v29  ;;  %v1103_v35 = vsel %vm1050_vm3, %v996_v37, %v997_v45 }
  0xf0   :  { %v4640_v57 = vpop.f32.mrf.mxu0  ;;  %v804_v32 = vmul.f32 %v4174_v49, %v704_v1  ;;  %v1202_v42 = vmul.f32 %v4235_v18, %v1103_v35  ;;  %v854_v54 = vmul.f32 %v4174_v49, %v654_v59  ;;  %v4676_v1 = vsel %vm1050_vm3, %v1046_v22, %v1047_v21 }
  0xf1   :  { %7461 = vst [vmem:[#allocation29_spill] sm:$0xff] %v4644_v38  ;;  %v4682_v38 = vmax.f32 %v365_v4, 0.0  ;;  %v1397_v22 = vmul.f32 %v4391_v2, %v4573_v24 }
  0xf2   :  { %v933_v36 = vadd.f32 %v869_v15, %v804_v32  ;;  %7463 = vst [vmem:[#allocation31_spill] sm:$0xff] %v4676_v1  ;;  %v4678_v37 = vadd.f32 %v1202_v42, %v932_v43  ;;  %v983_v51 = vadd.f32 %v919_v52, %v854_v54  ;;  %v368_v32 = vadd.f32 %v4147_v31, %v4586_v0 }
  0xf3   :  { %3778 = vmatmul.msk.f32.gmra.mxu0 %vm114_vm1, %v79_v55  ;;  %v4669_v55 = vadd.f32 %v1586_v23, %v1521_v30  ;;  %v515_v30 = vadd.f32 %v4147_v31, %v514_v33  ;;  %v599_v59 = vrot.slane %v4682_v38, 7  ;;  %v998_v15 = vrot.slane %v4682_v38, 1 }
  0xf4   :  { %7464 = vst [vmem:[#allocation32_spill] sm:$0xff] %v4678_v37  ;;  %v1460_v54 = vmul.f32 %v4382_v46, %v4682_v38  ;;  %v1587_v43 = vmul.f32 %v4395_v62, %v4682_v38  ;;  %v1459_v0 = vmul.f32 %v4382_v46, %v4638_v29 }
  0xf5   :  { %v703_v33 = vsel %vm651_vm2, %v598_v12, %v599_v59  ;;  %v1102_v4 = vsel %vm1050_vm3, %v997_v45, %v998_v15  ;;  %v4701_v23 = vmax.f32 %v515_v30, 0.0  ;;  %v870_v45 = vmul.f32 %v4169_v47, %v4682_v38 }
  0xf6   :  { %v740_v24 = vsel %vm718_vm4, %v703_v33, 0.0  ;;  %v1138_v35 = vsel %vm1120_vm5, %v1102_v4, 0.0  ;;  %v4709_v52 = vadd.f32 %v1460_v54, %v1397_v22  ;;  %v4711_v42 = vadd.f32 %v1587_v43, %v1522_v5 }
  0xf7   :  { %7465 = vst [vmem:[#allocation33_spill] sm:$0xff] %v4701_v23  ;;  %v805_v12 = vmul.f32 %v4174_v49, %v740_v24  ;;  %v1203_v30 = vmul.f32 %v4235_v18, %v1138_v35  ;;  %v920_v33 = vmul.f32 %v4169_v47, %v4701_v23  ;;  %v1048_v22 = vrot.slane %v4701_v23, 1 }
  0xf8   :  { %v4680_v44 = vpop.f32.mrf.mxu0  ;;  %v4727_v24 = vmax.f32 %v368_v32, 0.0 }
  0xf9   :  { %v934_v5 = vadd.f32 %v870_v45, %v805_v12  ;;  %v4723_v43 = vadd.f32 %v1203_v30, %v933_v36  ;;  %v1052_v37 = vsel %vm1050_vm3, %v1047_v21, %v1048_v22  ;;  %v1396_v12 = vmul.f32 %v4391_v2, %v4542_v28  ;;  %v517_v30 = vpop.f32.mrf.mxu1 }
  0xfa   :  { %v600_v45 = vrot.slane %v4727_v24, 7  ;;  %v1398_v21 = vmul.f32 %v4391_v2, %v4638_v29 }
  0xfb   :  { %3779 = vmatmul.msk.f32.gmra.mxu0 %vm114_vm1, %v80_v11  ;;  %v649_v11 = vrot.slane %v4701_v23, 7  ;;  %7466 = vst [vmem:[#allocation34_spill] sm:$0xff] %v4723_v43  ;;  %v999_v23 = vrot.slane %v4727_v24, 1 }
  0xfd   :  { %v653_v4 = vsel %vm651_vm2, %v648_v9, %v649_v11  ;;  %v1188_v9 = vsel %vm1120_vm5, %v1052_v37, 0.0  ;;  %v702_v37 = vsel %vm651_vm2, %v599_v59, %v600_v45  ;;  %v1101_v29 = vsel %vm1050_vm3, %v998_v15, %v999_v23  ;;  %v82_v15 = vld [vmem:[%s7322_s0 + $0x108] sm:$0xff] }
  0xfe   :  { %v790_v35 = vsel %vm718_vm4, %v653_v4, 0.0  ;;  %v1253_v32 = vmul.f32 %v4235_v18, %v1188_v9  ;;  %v1523_v4 = vadd.f32 %v1459_v0, %v1396_v12  ;;  %v806_v9 = vmul.f32 %v4174_v49, %v702_v37 }
  0xff   :  { %v855_v36 = vmul.f32 %v4174_v49, %v790_v35  ;;  %v1461_v35 = vmul.f32 %v4382_v46, %v4727_v24  ;;  %v1588_v0 = vmul.f32 %v4395_v62, %v4727_v24  ;;  %v371_v37 = vadd.f32 %v4147_v31, %v4640_v57 }
 0x100   :  { %v376_v54 = vpop.f32.mrf.mxu0  ;;  %v4749_v1 = vadd.f32 %v1253_v32, %v983_v51  ;;  %v518_v51 = vadd.f32 %v4147_v31, %v517_v30  ;;  %v7471_v57 = vrot.slane %v4160_v40, 7 }
 0x101   :  { %v4746_v43 = vadd.f32 %v920_v33, %v855_v36  ;;  %v1204_v33 = vmul.f32 %v4235_v18, %v1101_v29  ;;  %v4764_v12 = vadd.f32 %v1461_v35, %v1398_v21  ;;  %v4766_v32 = vadd.f32 %v1588_v0, %v1523_v4 }
 0x102   :  { %7468 = vst [vmem:[#allocation36_spill] sm:$0xff] %v4749_v1  ;;  %v4768_v1 = vmax.f32 %v518_v51, 0.0  ;;  %v858_v29 = vmul.f32 %v4169_v47, %v4160_v40 }
 0x103   :  { %3780 = vmatmul.msk.f32.gmra.mxu0 %vm114_vm1, %v81_v34  ;;  %7467 = vst [vmem:[#allocation35_spill] sm:$0xff] %v4746_v43  ;;  %v871_v34 = vmul.f32 %v4169_v47, %v4727_v24  ;;  %v4772_v43 = vadd.f32 %v1204_v33, %v934_v5  ;;  %v1399_v33 = vmul.f32 %v4391_v2, %v4682_v38 }
 0x104   :  { %7469 = vst [vmem:[#allocation37_spill] sm:$0xff] %v4768_v1  ;;  %v650_v30 = vrot.slane %v4768_v1, 7  ;;  %v1049_v21 = vrot.slane %v4768_v1, 1  ;;  %v921_v4 = vmul.f32 %v4169_v47, %v4768_v1 }
 0x105   :  { %v935_v36 = vadd.f32 %v871_v34, %v806_v9  ;;  %7470 = vst [vmem:[#allocation38_spill] sm:$0xff] %v4772_v43  ;;  %v534_v34 = vmax.f32 %v371_v37, 0.0 }
 0x106   :  { %v652_v35 = vsel %vm651_vm2, %v649_v11, %v650_v30  ;;  %v715_v5 = vsel %vm651_vm2, %v650_v30, %v7471_v57  ;;  %v4790_v9 = vsel %vm1050_vm3, %v1048_v22, %v1049_v21  ;;  %v1192_v11 = vmul.f32 %v4235_v18, %v4197_v61 }
 0x107   :  { %7472 = vst [vmem:[#allocation39_spill] sm:$0xff] %v4790_v9  ;;  %v728_v0 = vsel %vm718_vm4, %v715_v5, 0.0  ;;  %v856_v51 = vmul.f32 %v4174_v49, %v652_v35  ;;  %v601_v5 = vrot.slane %v534_v34, 7  ;;  %v374_v35 = vadd.f32 %v4147_v31, %v4680_v44  ;;  %v83_v44 = vld [vmem:[%s7322_s0 + $0x110] sm:$0xff] }
 0x108   :  { %v379_v59 = vpop.f32.mrf.mxu0  ;;  %v793_v37 = vmul.f32 %v4174_v49, %v728_v0  ;;  %v1000_v1 = vrot.slane %v534_v34, 1  ;;  %v377_v0 = vadd.f32 %v4147_v31, %v376_v54 }
 0x109   :  { %v985_v30 = vadd.f32 %v921_v4, %v856_v51  ;;  %v701_v9 = vsel %vm651_vm2, %v600_v45, %v601_v5  ;;  %v1462_v4 = vmul.f32 %v4382_v46, %v534_v34  ;;  %v1589_v51 = vmul.f32 %v4395_v62, %v534_v34 }
 0x10a   :  { %v922_v61 = vadd.f32 %v858_v29, %v793_v37  ;;  %v742_v54 = vsel %vm718_vm4, %v701_v9, 0.0  ;;  %v1100_v45 = vsel %vm1050_vm3, %v999_v23, %v1000_v1 }
 0x10b   :  { %3781 = vmatmul.msk.f32.gmra.mxu0 %vm114_vm1, %v82_v15  ;;  %v7473_v15 = vrot.slane %v4160_v40, 1  ;;  %v807_v37 = vmul.f32 %v4174_v49, %v742_v54  ;;  %v4835_v7 = vadd.f32 %v1589_v51, %v4709_v52 }
 0x10d   :  { %v1114_v22 = vsel %vm1050_vm3, %v1049_v21, %v7473_v15  ;;  %v872_v21 = vmul.f32 %v4169_v47, %v534_v34  ;;  %v4822_v15 = vadd.f32 %v1192_v11, %v922_v61 }
 0x10e   :  { %v1190_v57 = vsel %vm1120_vm5, %v1114_v22, 0.0  ;;  %v1140_v22 = vsel %vm1120_vm5, %v1100_v45, 0.0  ;;  %v1400_v45 = vmul.f32 %v4391_v2, %v4727_v24  ;;  %v84_v24 = vld [vmem:[%s7322_s0 + $0x118] sm:$0xff] }
 0x10f   :  { %v1255_v38 = vmul.f32 %v4235_v18, %v1190_v57  ;;  %7474 = vst [vmem:[#allocation40_spill] sm:$0xff] %v4822_v15  ;;  %v1526_v57 = vadd.f32 %v1462_v4, %v1399_v33  ;;  %v1205_v11 = vmul.f32 %v4235_v18, %v1140_v22  ;;  %v936_v61 = vadd.f32 %v872_v21, %v807_v37 }
 0x110   :  { %v4810_v43 = vpop.f32.mrf.mxu0 }
 0x111   :  { %v4824_v29 = vadd.f32 %v1255_v38, %v985_v30  ;;  %v4838_v30 = vmax.f32 %v374_v35, 0.0  ;;  %v4840_v9 = vadd.f32 %v1205_v11, %v935_v36  ;;  %v536_v38 = vmax.f32 %v377_v0, 0.0 }
 0x112   :  { %v380_v35 = vadd.f32 %v4147_v31, %v379_v59 }
 0x113   :  { %7475 = vst [vmem:[#allocation41_spill] sm:$0xff] %v4824_v29  ;;  %3782 = vmatmul.msk.f32.gmra.mxu0 %vm114_vm1, %v83_v44  ;;  %v602_v23 = vrot.slane %v4838_v30, 7  ;;  %v1001_v44 = vrot.slane %v4838_v30, 1  ;;  %v1463_v33 = vmul.f32 %v4382_v46, %v4838_v30  ;;  %v873_v21 = vmul.f32 %v4169_v47, %v4838_v30 }
 0x114   :  { %7476 = vst [vmem:[#allocation42_spill] sm:$0xff] %v4840_v9  ;;  %v1590_v4 = vmul.f32 %v4395_v62, %v4838_v30  ;;  %v603_v59 = vrot.slane %v536_v38, 7  ;;  %v1401_v29 = vmul.f32 %v4391_v2, %v534_v34 }
 0x115   :  { %v700_v52 = vsel %vm651_vm2, %v601_v5, %v602_v23  ;;  %v1099_v0 = vsel %vm1050_vm3, %v1000_v1, %v1001_v44  ;;  %v4862_v51 = vadd.f32 %v1463_v33, %v1400_v45  ;;  %v1464_v45 = vmul.f32 %v4382_v46, %v536_v38 }
 0x116   :  { %v808_v36 = vmul.f32 %v4174_v49, %v700_v52  ;;  %v1206_v5 = vmul.f32 %v4235_v18, %v1099_v0  ;;  %v4866_v22 = vadd.f32 %v1590_v4, %v4764_v12  ;;  %v699_v1 = vsel %vm651_vm2, %v602_v23, %v603_v59 }
 0x117   :  { %7477 = vst [vmem:[#allocation43_spill] sm:$0xff] %v4862_v51  ;;  %v1002_v52 = vrot.slane %v536_v38, 1  ;;  %v744_v0 = vsel %vm718_vm4, %v699_v1, 0.0  ;;  %v4876_v33 = vmax.f32 %v380_v35, 0.0  ;;  %v874_v12 = vmul.f32 %v4169_v47, %v536_v38 }
 0x118   :  { %v385_v54 = vpop.f32.mrf.mxu0  ;;  %v937_v37 = vadd.f32 %v873_v21, %v808_v36  ;;  %v4868_v11 = vadd.f32 %v1206_v5, %v936_v61  ;;  %v809_v36 = vmul.f32 %v4174_v49, %v744_v0  ;;  %v1591_v21 = vmul.f32 %v4395_v62, %v536_v38  ;;  %v85_v0 = vld [vmem:[%s7322_s0 + $0x120] sm:$0xff] }
 0x119   :  { %v1098_v61 = vsel %vm1050_vm3, %v1001_v44, %v1002_v52  ;;  %v1528_v34 = vadd.f32 %v1464_v45, %v1401_v29  ;;  %v604_v35 = vrot.slane %v4876_v33, 7  ;;  %v1003_v44 = vrot.slane %v4876_v33, 1 }
 0x11a   :  { %7478 = vst [vmem:[#allocation44_spill] sm:$0xff] %v4868_v11  ;;  %v1142_v23 = vsel %vm1120_vm5, %v1098_v61, 0.0  ;;  %v4886_v1 = vadd.f32 %v1591_v21, %v1526_v57  ;;  %v383_v61 = vadd.f32 %v4147_v31, %v4810_v43  ;;  %v875_v45 = vmul.f32 %v4169_v47, %v4876_v33  ;;  %v86_v43 = vld [vmem:[%s7322_s0 + $0x128] sm:$0xff] }
 0x11b   :  { %3783 = vmatmul.msk.f32.gmra.mxu0 %vm114_vm1, %v84_v24  ;;  %v938_v24 = vadd.f32 %v874_v12, %v809_v36  ;;  %v1207_v5 = vmul.f32 %v4235_v18, %v1142_v23  ;;  %v698_v29 = vsel %vm651_vm2, %v603_v59, %v604_v35  ;;  %v1097_v36 = vsel %vm1050_vm3, %v1002_v52, %v1003_v44 }
 0x11c   :  { %7479 = vst [vmem:[#allocation45_spill] sm:$0xff] %v4886_v1  ;;  %v810_v57 = vmul.f32 %v4174_v49, %v698_v29  ;;  %v538_v21 = vmax.f32 %v383_v61, 0.0  ;;  %v4915_v29 = vld [vmem:[%s7323_s1 + $0xc] ss:$0 sm:$0xff]  ;;  %v1403_v61 = vmul.f32 %v4391_v2, %v536_v38 }
 0x11d   :  { %v4892_v11 = vadd.f32 %v1207_v5, %v937_v37  ;;  %v1208_v37 = vmul.f32 %v4235_v18, %v1097_v36  ;;  %v386_v52 = vadd.f32 %v4915_v29, %v385_v54 }
 0x11e   :  { %v939_v12 = vadd.f32 %v875_v45, %v810_v57  ;;  %v605_v59 = vrot.slane %v538_v21, 7  ;;  %v1004_v5 = vrot.slane %v538_v21, 1  ;;  %v1593_v45 = vmul.f32 %v4395_v62, %v538_v21 }
 0x11f   :  { %7480 = vst [vmem:[#allocation46_spill] sm:$0xff] %v4892_v11  ;;  %v4906_v23 = vadd.f32 %v1208_v37, %v938_v24  ;;  %v876_v37 = vmul.f32 %v4169_v47, %v538_v21 }
 0x120   :  { %v388_v4 = vpop.f32.mrf.mxu0  ;;  %v697_v24 = vsel %vm651_vm2, %v604_v35, %v605_v59  ;;  %v1096_v57 = vsel %vm1050_vm3, %v1003_v44, %v1004_v5  ;;  %v4932_v11 = vadd.f32 %v1593_v45, %v1528_v34  ;;  %v539_v44 = vmax.f32 %v386_v52, 0.0 }
 0x121   :  { %7481 = vst [vmem:[#allocation47_spill] sm:$0xff] %v4906_v23  ;;  %v746_v36 = vsel %vm718_vm4, %v697_v24, 0.0  ;;  %v1144_v54 = vsel %vm1120_vm5, %v1096_v57, 0.0  ;;  %v389_v19 = vadd.f32 %v4915_v29, %v388_v4  ;;  %v87_v57 = vld [vmem:[%s7322_s0 + $0x130] sm:$0xff]  ;;  %v1402_v34 = vmul.f32 %v4391_v2, %v4838_v30 }
 0x122   :  { %v811_v38 = vmul.f32 %v4174_v49, %v746_v36  ;;  %v1209_v23 = vmul.f32 %v4235_v18, %v1144_v54  ;;  %7482 = vst [vmem:[#allocation48_spill] sm:$0xff] %v4932_v11  ;;  %v606_v24 = vrot.slane %v539_v44, 7  ;;  %v1005_v17 = vrot.slane %v539_v44, 1 }
 0x123   :  { %3784 = vmatmul.msk.f32.gmra.mxu0 %vm114_vm1, %v85_v0  ;;  %v1466_v0 = vmul.f32 %v4382_v46, %v538_v21  ;;  %v877_v52 = vmul.f32 %v4169_v47, %v539_v44  ;;  %v1594_v36 = vmul.f32 %v4395_v62, %v539_v44  ;;  %v540_v30 = vmax.f32 %v389_v19, 0.0 }
 0x124   :  { %v940_v9 = vadd.f32 %v876_v37, %v811_v38  ;;  %v4934_v15 = vadd.f32 %v1209_v23, %v939_v12  ;;  %v1095_v12 = vsel %vm1050_vm3, %v1004_v5, %v1005_v17  ;;  %v1405_v38 = vmul.f32 %v4391_v2, %v538_v21 }
 0x125   :  { %v1530_v35 = vadd.f32 %v1466_v0, %v1403_v61  ;;  %v696_v0 = vsel %vm651_vm2, %v605_v59, %v606_v24  ;;  %v1210_v4 = vmul.f32 %v4235_v18, %v1095_v12  ;;  %v607_v5 = vrot.slane %v540_v30, 7 }
 0x126   :  { %7483 = vst [vmem:[#allocation49_spill] sm:$0xff] %v4934_v15  ;;  %v812_v23 = vmul.f32 %v4174_v49, %v696_v0  ;;  %v1006_v0 = vrot.slane %v540_v30, 1  ;;  %v1468_v15 = vmul.f32 %v4382_v46, %v540_v30 }
 0x127   :  { %v4954_v54 = vadd.f32 %v1210_v4, %v940_v9  ;;  %v88_v9 = vld [vmem:[%s7322_s0 + $0x138] sm:$0xff] }
 0x128   :  { %v391_v31 = vpop.f32.mrf.mxu0  ;;  %v941_v37 = vadd.f32 %v877_v52, %v812_v23  ;;  %v1094_v23 = vsel %vm1050_vm3, %v1005_v17, %v1006_v0  ;;  %v1532_v52 = vadd.f32 %v1468_v15, %v1405_v38 }
 0x129   :  { %v392_v61 = vadd.f32 %v4915_v29, %v391_v31  ;;  %7484 = vst [vmem:[#allocation50_spill] sm:$0xff] %v4954_v54  ;;  %v1467_v31 = vmul.f32 %v4382_v46, %v539_v44 }
 0x12b   :  { %3785 = vmatmul.msk.f32.gmra.mxu0 %vm114_vm1, %v86_v43  ;;  %v1465_v43 = vmul.f32 %v4382_v46, %v4876_v33  ;;  %v541_v12 = vmax.f32 %v392_v61, 0.0  ;;  %v1146_v61 = vsel %vm1120_vm5, %v1094_v23, 0.0 }
 0x12d   :  { %v1529_v45 = vadd.f32 %v1465_v43, %v1402_v34  ;;  %v695_v43 = vsel %vm651_vm2, %v606_v24, %v607_v5  ;;  %v1404_v34 = vmul.f32 %v4391_v2, %v4876_v33  ;;  %v878_v24 = vmul.f32 %v4169_v47, %v540_v30 }
 0x12e   :  { %v748_v21 = vsel %vm718_vm4, %v695_v43, 0.0  ;;  %v1406_v43 = vmul.f32 %v4391_v2, %v539_v44  ;;  %v1007_v38 = vrot.slane %v541_v12, 1  ;;  %v879_v23 = vmul.f32 %v4169_v47, %v541_v12 }
 0x12f   :  { %v4956_v59 = vadd.f32 %v1594_v36, %v1529_v45  ;;  %v813_v4 = vmul.f32 %v4174_v49, %v748_v21  ;;  %v1211_v36 = vmul.f32 %v4235_v18, %v1146_v61  ;;  %v1531_v17 = vadd.f32 %v1467_v31, %v1404_v34  ;;  %v89_v61 = vld [vmem:[%s7322_s0 + $0x140] sm:$0xff] }
 0x130   :  { %v394_v51 = vpop.f32.mrf.mxu0 }
 0x131   :  { %7485 = vst [vmem:[#allocation51_spill] sm:$0xff] %v4956_v59  ;;  %v395_v45 = vadd.f32 %v4915_v29, %v394_v51  ;;  %v608_v59 = vrot.slane %v541_v12, 7  ;;  %v942_v15 = vadd.f32 %v878_v24, %v813_v4  ;;  %v4983_v21 = vadd.f32 %v1211_v36, %v941_v37 }
 0x132   :  { %v1469_v51 = vmul.f32 %v4382_v46, %v541_v12 }
 0x133   :  { %3786 = vmatmul.msk.f32.gmra.mxu0 %vm114_vm1, %v87_v57  ;;  %v1595_v57 = vmul.f32 %v4395_v62, %v540_v30  ;;  %7487 = vst [vmem:[#allocation53_spill] sm:$0xff] %v4983_v21  ;;  %v694_v11 = vsel %vm651_vm2, %v607_v5, %v608_v59  ;;  %v542_v44 = vmax.f32 %v395_v45, 0.0  ;;  %v1407_v45 = vmul.f32 %v4391_v2, %v540_v30 }
 0x134   :  { %v1533_v34 = vadd.f32 %v1469_v51, %v1406_v43 }
 0x135   :  { %v4979_v54 = vadd.f32 %v1595_v57, %v1530_v35  ;;  %v814_v35 = vmul.f32 %v4174_v49, %v694_v11  ;;  %v1093_v57 = vsel %vm1050_vm3, %v1006_v0, %v1007_v38  ;;  %v609_v24 = vrot.slane %v542_v44, 7 }
 0x136   :  { %v1212_v31 = vmul.f32 %v4235_v18, %v1093_v57  ;;  %v1008_v11 = vrot.slane %v542_v44, 1 }
 0x137   :  { %7486 = vst [vmem:[#allocation52_spill] sm:$0xff] %v4979_v54  ;;  %v943_v37 = vadd.f32 %v879_v23, %v814_v35  ;;  %v693_v0 = vsel %vm651_vm2, %v608_v59, %v609_v24  ;;  %v1470_v23 = vmul.f32 %v4382_v46, %v542_v44  ;;  %v1597_v59 = vmul.f32 %v4395_v62, %v542_v44 }
 0x138   :  { %v397_v19 = vpop.f32.mrf.mxu0  ;;  %v4999_v36 = vadd.f32 %v1212_v31, %v942_v15  ;;  %v750_v43 = vsel %vm718_vm4, %v693_v0, 0.0  ;;  %v880_v15 = vmul.f32 %v4169_v47, %v542_v44 }
 0x139   :  { %v815_v51 = vmul.f32 %v4174_v49, %v750_v43  ;;  %v1534_v57 = vadd.f32 %v1470_v23, %v1407_v45  ;;  %v5016_v31 = vadd.f32 %v1597_v59, %v1532_v52  ;;  %v1408_v45 = vmul.f32 %v4391_v2, %v541_v12 }
 0x13a   :  { %7489 = vst [vmem:[#allocation55_spill] sm:$0xff] %v4999_v36  ;;  %v1409_v59 = vmul.f32 %v4391_v2, %v542_v44 }
 0x13b   :  { %3787 = vmatmul.msk.f32.gmra.mxu0 %vm114_vm1, %v88_v9  ;;  %v1596_v9 = vmul.f32 %v4395_v62, %v541_v12  ;;  %7490 = vst [vmem:[#allocation56_spill] sm:$0xff] %v5016_v31  ;;  %v1451_v31 = vmul.f32 %v4382_v46, %v4272_v53 }
 0x13d   :  { %v4994_v4 = vadd.f32 %v1596_v9, %v1531_v17  ;;  %v1092_v17 = vsel %vm1050_vm3, %v1007_v38, %v1008_v11  ;;  %v944_v9 = vadd.f32 %v880_v15, %v815_v51  ;;  %v398_v38 = vadd.f32 %v4915_v29, %v397_v19 }
 0x13e   :  { %v1148_v35 = vsel %vm1120_vm5, %v1092_v17, 0.0  ;;  %v90_v17 = vld [vmem:[%s7322_s0 + $0x148] sm:$0xff] }
 0x13f   :  { %7488 = vst [vmem:[#allocation54_spill] sm:$0xff] %v4994_v4  ;;  %v1213_v30 = vmul.f32 %v4235_v18, %v1148_v35  ;;  %v543_v43 = vmax.f32 %v398_v38, 0.0 }
 0x140   :  { %v400_v5 = vpop.f32.mrf.mxu0 }
 0x141   :  { %v5019_v0 = vadd.f32 %v1213_v30, %v943_v37  ;;  %v610_v4 = vrot.slane %v543_v43, 7  ;;  %v1009_v54 = vrot.slane %v543_v43, 1  ;;  %v1471_v52 = vmul.f32 %v4382_v46, %v543_v43 }
 0x142   :  { %v881_v37 = vmul.f32 %v4169_v47, %v543_v43  ;;  %v1598_v23 = vmul.f32 %v4395_v62, %v543_v43 }
 0x143   :  { %3788 = vmatmul.msk.f32.gmra.mxu0 %vm114_vm1, %v89_v61  ;;  %7491 = vst [vmem:[#allocation57_spill] sm:$0xff] %v5019_v0  ;;  %v401_v61 = vadd.f32 %v4915_v29, %v400_v5  ;;  %v692_v19 = vsel %vm651_vm2, %v609_v24, %v610_v4  ;;  %v1091_v5 = vsel %vm1050_vm3, %v1008_v11, %v1009_v54 }
 0x144   :  { %v816_v51 = vmul.f32 %v4174_v49, %v692_v19  ;;  %v1214_v15 = vmul.f32 %v4235_v18, %v1091_v5  ;;  %v5036_v35 = vadd.f32 %v1471_v52, %v1408_v45  ;;  %v5039_v30 = vadd.f32 %v1598_v23, %v1533_v34 }
 0x145   :  { %v544_v21 = vmax.f32 %v401_v61, 0.0 }
 0x146   :  { %7492 = vst [vmem:[#allocation58_spill] sm:$0xff] %v5036_v35  ;;  %v945_v61 = vadd.f32 %v881_v37, %v816_v51 }
 0x147   :  { %v611_v12 = vrot.slane %v544_v21, 7  ;;  %7493 = vst [vmem:[#allocation59_spill] sm:$0xff] %v5039_v30  ;;  %v1010_v38 = vrot.slane %v544_v21, 1  ;;  %v1472_v19 = vmul.f32 %v4382_v46, %v544_v21  ;;  %v1599_v44 = vmul.f32 %v4395_v62, %v544_v21 }
 0x148   :  { %v403_v36 = vpop.f32.mrf.mxu0  ;;  %v882_v37 = vmul.f32 %v4169_v47, %v544_v21 }
 0x149   :  { %v404_v24 = vadd.f32 %v4915_v29, %v403_v36  ;;  %v691_v11 = vsel %vm651_vm2, %v610_v4, %v611_v12  ;;  %v1090_v52 = vsel %vm1050_vm3, %v1009_v54, %v1010_v38  ;;  %v91_v36 = vld [vmem:[%s7322_s0 + $0x150] sm:$0xff]  ;;  %v1536_v5 = vadd.f32 %v1472_v19, %v1409_v59 }
 0x14a   :  { %v752_v45 = vsel %vm718_vm4, %v691_v11, 0.0  ;;  %v1150_v4 = vsel %vm1120_vm5, %v1090_v52, 0.0  ;;  %v5060_v51 = vadd.f32 %v1599_v44, %v1534_v57 }
 0x14b   :  { %3789 = vmatmul.msk.f32.gmra.mxu0 %vm114_vm1, %v90_v17  ;;  %v5042_v17 = vadd.f32 %v1214_v15, %v944_v9  ;;  %v817_v9 = vmul.f32 %v4174_v49, %v752_v45  ;;  %v1215_v23 = vmul.f32 %v4235_v18, %v1150_v4  ;;  %v5062_v54 = vmax.f32 %v404_v24, 0.0 }
 0x14c   :  { %7495 = vst [vmem:[#allocation61_spill] sm:$0xff] %v5060_v51  ;;  %v1411_v4 = vmul.f32 %v4391_v2, %v544_v21 }
 0x14d   :  { %7494 = vst [vmem:[#allocation60_spill] sm:$0xff] %v5042_v17  ;;  %v946_v15 = vadd.f32 %v882_v37, %v817_v9  ;;  %v5065_v11 = vadd.f32 %v1215_v23, %v945_v61  ;;  %v612_v17 = vrot.slane %v5062_v54, 7  ;;  %v1011_v0 = vrot.slane %v5062_v54, 1 }
 0x14e   :  { %7496 = vst [vmem:[#allocation62_spill] sm:$0xff] %v5062_v54  ;;  %v883_v57 = vmul.f32 %v4169_v47, %v5062_v54 }
 0x14f   :  { %7497 = vst [vmem:[#allocation63_spill] sm:$0xff] %v5065_v11  ;;  %v690_v59 = vsel %vm651_vm2, %v611_v12, %v612_v17  ;;  %v1089_v24 = vsel %vm1050_vm3, %v1010_v38, %v1011_v0 }
 0x150   :  { %v406_v34 = vpop.f32.mrf.mxu0  ;;  %v818_v19 = vmul.f32 %v4174_v49, %v690_v59  ;;  %v1216_v61 = vmul.f32 %v4235_v18, %v1089_v24  ;;  %v1473_v24 = vmul.f32 %v4382_v46, %v5062_v54 }
 0x151   :  { %v407_v45 = vadd.f32 %v4915_v29, %v406_v34  ;;  %v92_v34 = vld [vmem:[%s7322_s0 + $0x158] sm:$0xff] }
 0x152   :  { %v5082_v12 = vadd.f32 %v1216_v61, %v946_v15 }
 0x153   :  { %3790 = vmatmul.msk.f32.gmra.mxu0 %vm114_vm1, %v91_v36  ;;  %v546_v52 = vmax.f32 %v407_v45, 0.0  ;;  %v947_v36 = vadd.f32 %v883_v57, %v818_v19  ;;  %v1410_v45 = vmul.f32 %v4391_v2, %v543_v43 }
 0x154   :  { %7498 = vst [vmem:[#allocation64_spill] sm:$0xff] %v5082_v12 }
 0x155   :  { %v613_v37 = vrot.slane %v546_v52, 7  ;;  %v1012_v23 = vrot.slane %v546_v52, 1  ;;  %v1474_v59 = vmul.f32 %v4382_v46, %v546_v52  ;;  %v1601_v38 = vmul.f32 %v4395_v62, %v546_v52 }
 0x156   :  { %v884_v21 = vmul.f32 %v4169_v47, %v546_v52  ;;  %v1537_v35 = vadd.f32 %v1473_v24, %v1410_v45 }
 0x157   :  { %v689_v19 = vsel %vm651_vm2, %v612_v17, %v613_v37  ;;  %v1088_v61 = vsel %vm1050_vm3, %v1011_v0, %v1012_v23  ;;  %v5101_v12 = vadd.f32 %v1601_v38, %v1536_v5 }
 0x158   :  { %v409_v44 = vpop.f32.mrf.mxu0  ;;  %v754_v57 = vsel %vm718_vm4, %v689_v19, 0.0  ;;  %v1152_v43 = vsel %vm1120_vm5, %v1088_v61, 0.0 }
 0x159   :  { %v410_v9 = vadd.f32 %v4915_v29, %v409_v44  ;;  %v1538_v44 = vadd.f32 %v1474_v59, %v1411_v4  ;;  %7499 = vst [vmem:[#allocation65_spill] sm:$0xff] %v5101_v12  ;;  %v1217_v17 = vmul.f32 %v4235_v18, %v1152_v43  ;;  %v93_v4 = vld [vmem:[%s7322_s0 + $0x160] sm:$0xff] }
 0x15b   :  { %3791 = vmatmul.msk.f32.gmra.mxu0 %vm114_vm1, %v92_v34  ;;  %v547_v15 = vmax.f32 %v410_v9, 0.0  ;;  %v819_v34 = vmul.f32 %v4174_v49, %v754_v57  ;;  %v5110_v59 = vadd.f32 %v1217_v17, %v947_v36 }
 0x15d   :  { %v614_v11 = vrot.slane %v547_v15, 7  ;;  %v1013_v9 = vrot.slane %v547_v15, 1  ;;  %v948_v51 = vadd.f32 %v884_v21, %v819_v34  ;;  %v885_v30 = vmul.f32 %v4169_v47, %v547_v15  ;;  %7500 = vst [vmem:[#allocation66_spill] sm:$0xff] %v5110_v59 }
 0x15e   :  { %v1602_v45 = vmul.f32 %v4395_v62, %v547_v15  ;;  %v1413_v34 = vmul.f32 %v4391_v2, %v546_v52 }
 0x15f   :  { %v688_v19 = vsel %vm651_vm2, %v613_v37, %v614_v11  ;;  %v1087_v38 = vsel %vm1050_vm3, %v1012_v23, %v1013_v9 }
 0x160   :  { %v412_v0 = vpop.f32.mrf.mxu0  ;;  %v820_v5 = vmul.f32 %v4174_v49, %v688_v19  ;;  %v1218_v24 = vmul.f32 %v4235_v18, %v1087_v38  ;;  %v5118_v21 = vadd.f32 %v1602_v45, %v1537_v35 }
 0x161   :  { %v413_v37 = vadd.f32 %v4915_v29, %v412_v0 }
 0x162   :  { %v949_v57 = vadd.f32 %v885_v30, %v820_v5  ;;  %7501 = vst [vmem:[#allocation67_spill] sm:$0xff] %v5118_v21  ;;  %v5121_v61 = vadd.f32 %v1218_v24, %v948_v51  ;;  %v94_v51 = vld [vmem:[%s7322_s0 + $0x168] sm:$0xff] }
 0x163   :  { %3792 = vmatmul.msk.f32.gmra.mxu0 %vm114_vm1, %v93_v4  ;;  %v548_v36 = vmax.f32 %v413_v37, 0.0 }
 0x164   :  { %7502 = vst [vmem:[#allocation68_spill] sm:$0xff] %v5121_v61 }
 0x165   :  { %v615_v43 = vrot.slane %v548_v36, 7  ;;  %v1014_v17 = vrot.slane %v548_v36, 1  ;;  %v1476_v23 = vmul.f32 %v4382_v46, %v548_v36  ;;  %v1603_v19 = vmul.f32 %v4395_v62, %v548_v36 }
 0x166   :  { %v886_v24 = vmul.f32 %v4169_v47, %v548_v36 }
 0x167   :  { %v687_v38 = vsel %vm651_vm2, %v614_v11, %v615_v43  ;;  %v1086_v35 = vsel %vm1050_vm3, %v1013_v9, %v1014_v17  ;;  %v1540_v0 = vadd.f32 %v1476_v23, %v1413_v34  ;;  %v5137_v5 = vadd.f32 %v1603_v19, %v1538_v44 }
 0x168   :  { %v415_v30 = vpop.f32.mrf.mxu0  ;;  %v756_v52 = vsel %vm718_vm4, %v687_v38, 0.0  ;;  %v1154_v4 = vsel %vm1120_vm5, %v1086_v35, 0.0  ;;  %v1475_v11 = vmul.f32 %v4382_v46, %v547_v15  ;;  %v1412_v34 = vmul.f32 %v4391_v2, %v5062_v54 }
 0x169   :  { %7503 = vst [vmem:[#allocation69_spill] sm:$0xff] %v5137_v5  ;;  %v416_v45 = vadd.f32 %v4915_v29, %v415_v30  ;;  %v821_v9 = vmul.f32 %v4174_v49, %v756_v52  ;;  %v1219_v37 = vmul.f32 %v4235_v18, %v1154_v4  ;;  %v1414_v44 = vmul.f32 %v4391_v2, %v547_v15 }
 0x16a   :  { %v1539_v52 = vadd.f32 %v1475_v11, %v1412_v34  ;;  %v95_v11 = vld [vmem:[%s7322_s0 + $0x170] sm:$0xff] }
 0x16b   :  { %v549_v61 = vmax.f32 %v416_v45, 0.0  ;;  %3793 = vmatmul.msk.f32.gmra.mxu0 %vm114_vm1, %v94_v51  ;;  %v950_v23 = vadd.f32 %v886_v24, %v821_v9  ;;  %v5147_v38 = vadd.f32 %v1219_v37, %v949_v57 }
 0x16d   :  { %7504 = vst [vmem:[#allocation70_spill] sm:$0xff] %v5147_v38  ;;  %v616_v19 = vrot.slane %v549_v61, 7  ;;  %v1015_v35 = vrot.slane %v549_v61, 1  ;;  %v1477_v30 = vmul.f32 %v4382_v46, %v549_v61  ;;  %v1604_v59 = vmul.f32 %v4395_v62, %v549_v61 }
 0x16e   :  { %v887_v57 = vmul.f32 %v4169_v47, %v549_v61 }
 0x16f   :  { %v686_v4 = vsel %vm651_vm2, %v615_v43, %v616_v19  ;;  %v1085_v51 = vsel %vm1050_vm3, %v1014_v17, %v1015_v35  ;;  %v1541_v45 = vadd.f32 %v1477_v30, %v1414_v44  ;;  %v5159_v24 = vadd.f32 %v1604_v59, %v1539_v52 }
 0x170   :  { %v822_v9 = vmul.f32 %v4174_v49, %v686_v4  ;;  %v1220_v15 = vmul.f32 %v4235_v18, %v1085_v51  ;;  %v418_v37 = vpop.f32.mrf.mxu0  ;;  %v1415_v4 = vmul.f32 %v4391_v2, %v548_v36 }
 0x171   :  { %7505 = vst [vmem:[#allocation71_spill] sm:$0xff] %v5159_v24  ;;  %v419_v34 = vadd.f32 %v4915_v29, %v418_v37 }
 0x172   :  { %v951_v43 = vadd.f32 %v887_v57, %v822_v9  ;;  %v5165_v38 = vadd.f32 %v1220_v15, %v950_v23 }
 0x173   :  { %v550_v17 = vmax.f32 %v419_v34, 0.0  ;;  %3794 = vmatmul.msk.f32.gmra.mxu0 %vm114_vm1, %v95_v11  ;;  %v96_v11 = vld [vmem:[%s7322_s0 + $0x178] sm:$0xff] }
 0x174   :  { %7506 = vst [vmem:[#allocation72_spill] sm:$0xff] %v5165_v38 }
 0x175   :  { %v617_v44 = vrot.slane %v550_v17, 7  ;;  %v1016_v30 = vrot.slane %v550_v17, 1  ;;  %v1478_v59 = vmul.f32 %v4382_v46, %v550_v17  ;;  %v1605_v52 = vmul.f32 %v4395_v62, %v550_v17 }
 0x176   :  { %v888_v34 = vmul.f32 %v4169_v47, %v550_v17 }
 0x177   :  { %v685_v51 = vsel %vm651_vm2, %v616_v19, %v617_v44  ;;  %v1084_v37 = vsel %vm1050_vm3, %v1015_v35, %v1016_v30  ;;  %v5175_v9 = vadd.f32 %v1478_v59, %v1415_v4  ;;  %v5181_v15 = vadd.f32 %v1605_v52, %v1540_v0 }
 0x178   :  { %v758_v23 = vsel %vm718_vm4, %v685_v51, 0.0  ;;  %v1156_v57 = vsel %vm1120_vm5, %v1084_v37, 0.0  ;;  %v421_v36 = vpop.f32.mrf.mxu0  ;;  %v1416_v37 = vmul.f32 %v4391_v2, %v549_v61 }
 0x179   :  { %7507 = vst [vmem:[#allocation73_spill] sm:$0xff] %v5175_v9  ;;  %v823_v19 = vmul.f32 %v4174_v49, %v758_v23  ;;  %v1221_v35 = vmul.f32 %v4235_v18, %v1156_v57  ;;  %v422_v4 = vadd.f32 %v4915_v29, %v421_v36 }
 0x17a   :  { %7508 = vst [vmem:[#allocation74_spill] sm:$0xff] %v5181_v15 }
 0x17b   :  { %v952_v59 = vadd.f32 %v888_v34, %v823_v19  ;;  %v5190_v51 = vadd.f32 %v1221_v35, %v951_v43  ;;  %v551_v38 = vmax.f32 %v422_v4, 0.0  ;;  %3795 = vmatmul.msk.f32.gmra.mxu0 %vm114_vm1, %v96_v11  ;;  %v97_v35 = vld [vmem:[%s7322_s0 + $0x180] sm:$0xff] }
 0x17d   :  { %7509 = vst [vmem:[#allocation75_spill] sm:$0xff] %v5190_v51  ;;  %v618_v0 = vrot.slane %v551_v38, 7  ;;  %v1017_v52 = vrot.slane %v551_v38, 1  ;;  %v1479_v9 = vmul.f32 %v4382_v46, %v551_v38  ;;  %v1606_v23 = vmul.f32 %v4395_v62, %v551_v38 }
 0x17e   :  { %v889_v11 = vmul.f32 %v4169_v47, %v551_v38 }
 0x17f   :  { %v684_v17 = vsel %vm651_vm2, %v617_v44, %v618_v0  ;;  %v1083_v57 = vsel %vm1050_vm3, %v1016_v30, %v1017_v52  ;;  %v5200_v36 = vadd.f32 %v1479_v9, %v1416_v37  ;;  %v5205_v34 = vadd.f32 %v1606_v23, %v1541_v45 }
 0x180   :  { %v824_v43 = vmul.f32 %v4174_v49, %v684_v17  ;;  %v1222_v19 = vmul.f32 %v4235_v18, %v1083_v57  ;;  %v424_v61 = vpop.f32.mrf.mxu0 }
 0x181   :  { %7510 = vst [vmem:[#allocation76_spill] sm:$0xff] %v5200_v36  ;;  %v425_v44 = vadd.f32 %v4915_v29, %v424_v61 }
 0x182   :  { %7511 = vst [vmem:[#allocation77_spill] sm:$0xff] %v5205_v34  ;;  %v953_v4 = vadd.f32 %v889_v11, %v824_v43  ;;  %v5211_v51 = vadd.f32 %v1222_v19, %v952_v59  ;;  %v98_v59 = vld [vmem:[%s7322_s0 + $0x188] sm:$0xff] }
 0x183   :  { %v552_v30 = vmax.f32 %v425_v44, 0.0  ;;  %3796 = vmatmul.msk.f32.gmra.mxu0 %vm114_vm1, %v97_v35 }
 0x184   :  { %7512 = vst [vmem:[#allocation78_spill] sm:$0xff] %v5211_v51 }
 0x185   :  { %v619_v9 = vrot.slane %v552_v30, 7  ;;  %v1018_v37 = vrot.slane %v552_v30, 1  ;;  %v890_v11 = vmul.f32 %v4169_v47, %v552_v30 }
 0x187   :  { %v683_v38 = vsel %vm651_vm2, %v618_v0, %v619_v9  ;;  %v1082_v45 = vsel %vm1050_vm3, %v1017_v52, %v1018_v37 }
 0x188   :  { %v760_v23 = vsel %vm718_vm4, %v683_v38, 0.0  ;;  %v1158_v17 = vsel %vm1120_vm5, %v1082_v45, 0.0  ;;  %v427_v57 = vpop.f32.mrf.mxu0 }
 0x189   :  { %v825_v43 = vmul.f32 %v4174_v49, %v760_v23  ;;  %v1223_v0 = vmul.f32 %v4235_v18, %v1158_v17  ;;  %v428_v19 = vadd.f32 %v4915_v29, %v427_v57 }
 0x18b   :  { %v954_v52 = vadd.f32 %v890_v11, %v825_v43  ;;  %v553_v61 = vmax.f32 %v428_v19, 0.0  ;;  %3797 = vmatmul.msk.f32.gmra.mxu0 %vm114_vm1, %v98_v59  ;;  %v5230_v35 = vadd.f32 %v1223_v0, %v953_v4  ;;  %v1480_v4 = vmul.f32 %v4382_v46, %v552_v30 }
 0x18d   :  { %7513 = vst [vmem:[#allocation79_spill] sm:$0xff] %v5230_v35  ;;  %v620_v44 = vrot.slane %v553_v61, 7  ;;  %v1019_v38 = vrot.slane %v553_v61, 1  ;;  %v891_v17 = vmul.f32 %v4169_v47, %v553_v61 }
 0x18f   :  { %v682_v45 = vsel %vm651_vm2, %v619_v9, %v620_v44  ;;  %v1081_v23 = vsel %vm1050_vm3, %v1018_v37, %v1019_v38  ;;  %v5244_v9 = vmul.f32 0.0, %v4391_v2 }
 0x190   :  { %v826_v51 = vmul.f32 %v4174_v49, %v682_v45  ;;  %v1224_v57 = vmul.f32 %v4235_v18, %v1081_v23  ;;  %v430_v43 = vpop.f32.mrf.mxu0  ;;  %v1417_v45 = vmul.f32 %v4391_v2, %v552_v30 }
 0x191   :  { %v431_v11 = vadd.f32 %v4915_v29, %v430_v43  ;;  %v1544_v36 = vadd.f32 %v1480_v4, %v5244_v9 }
 0x192   :  { %v955_v59 = vadd.f32 %v891_v17, %v826_v51  ;;  %v5241_v0 = vadd.f32 %v1224_v57, %v954_v52 }
 0x193   :  { %v554_v19 = vmax.f32 %v431_v11, 0.0 }
 0x194   :  { %7514 = vst [vmem:[#allocation80_spill] sm:$0xff] %v5241_v0 }
 0x195   :  { %v621_v35 = vrot.slane %v554_v19, 7  ;;  %v1020_v37 = vrot.slane %v554_v19, 1  ;;  %v1482_v23 = vmul.f32 %v4382_v46, %v554_v19  ;;  %v1608_v34 = vmul.f32 %v4395_v62, %v554_v19 }
 0x196   :  { %v892_v0 = vmul.f32 %v4169_v47, %v554_v19 }
 0x197   :  { %v681_v43 = vsel %vm651_vm2, %v620_v44, %v621_v35  ;;  %v1080_v51 = vsel %vm1050_vm3, %v1019_v38, %v1020_v37  ;;  %v1546_v57 = vadd.f32 %v1482_v23, %v1417_v45  ;;  %v5258_v30 = vadd.f32 %v1608_v34, %v1544_v36 }
 0x198   :  { %v762_v52 = vsel %vm718_vm4, %v681_v43, 0.0  ;;  %v1160_v17 = vsel %vm1120_vm5, %v1080_v51, 0.0  ;;  %v433_v11 = vpop.f32.mrf.mxu0  ;;  %v1481_v38 = vmul.f32 %v4382_v46, %v553_v61  ;;  %v1418_v36 = vmul.f32 %v4391_v2, %v553_v61 }
 0x199   :  { %7515 = vst [vmem:[#allocation81_spill] sm:$0xff] %v5258_v30  ;;  %v827_v4 = vmul.f32 %v4174_v49, %v762_v52  ;;  %v1225_v15 = vmul.f32 %v4235_v18, %v1160_v17  ;;  %v434_v44 = vadd.f32 %v4915_v29, %v433_v11 }
 0x19a   :  { %v1545_v23 = vadd.f32 %v1481_v38, %v5244_v9 }
 0x19b   :  { %v956_v24 = vadd.f32 %v892_v0, %v827_v4  ;;  %v5265_v5 = vadd.f32 %v1225_v15, %v955_v59  ;;  %v555_v43 = vmax.f32 %v434_v44, 0.0  ;;  %v1449_v4 = vmul.f32 %v4382_v46, %v4171_v48 }
 0x19d   :  { %7516 = vst [vmem:[#allocation82_spill] sm:$0xff] %v5265_v5  ;;  %v622_v21 = vrot.slane %v555_v43, 7  ;;  %v1021_v51 = vrot.slane %v555_v43, 1  ;;  %v1483_v34 = vmul.f32 %v4382_v46, %v555_v43  ;;  %v1609_v45 = vmul.f32 %v4395_v62, %v555_v43 }
 0x19e   :  { %v893_v59 = vmul.f32 %v4169_v47, %v555_v43 }
 0x19f   :  { %v680_v52 = vsel %vm651_vm2, %v621_v35, %v622_v21  ;;  %v1079_v17 = vsel %vm1050_vm3, %v1020_v37, %v1021_v51  ;;  %v1547_v11 = vadd.f32 %v1483_v34, %v1418_v36  ;;  %v5280_v44 = vadd.f32 %v1609_v45, %v1545_v23 }
 0x1a0   :  { %v828_v15 = vmul.f32 %v4174_v49, %v680_v52  ;;  %v1226_v0 = vmul.f32 %v4235_v18, %v1079_v17  ;;  %v436_v61 = vpop.f32.mrf.mxu0  ;;  %v1448_v37 = vmul.f32 %v4382_v46, %v4160_v40  ;;  %v1513_v52 = vadd.f32 %v1449_v4, %v5244_v9 }
 0x1a1   :  { %7517 = vst [vmem:[#allocation83_spill] sm:$0xff] %v5280_v44  ;;  %v437_v38 = vadd.f32 %v4915_v29, %v436_v61  ;;  %v1450_v45 = vmul.f32 %v4382_v46, %v4225_v13  ;;  %v1577_v23 = vmul.f32 %v4395_v62, %v4225_v13  ;;  %v1387_v44 = vmul.f32 %v4391_v2, %v4160_v40  ;;  %v5332_v40 = vld [vmem:[%s7323_s1 + $0xe] ss:$0 sm:$0xff] }
 0x1a2   :  { %v957_v5 = vadd.f32 %v893_v59, %v828_v15  ;;  %v5283_v35 = vadd.f32 %v1226_v0, %v956_v24  ;;  %v1419_v24 = vmul.f32 %v4391_v2, %v554_v19  ;;  %v1578_v15 = vmul.f32 %v4395_v62, %v4272_v53 }
 0x1a3   :  { %v5285_v12 = vmax.f32 %v437_v38, 0.0 }
 0x1a4   :  { %7518 = vst [vmem:[#allocation84_spill] sm:$0xff] %v5283_v35  ;;  %v1639_v1 = vadd.f32 %v1578_v15, %v1513_v52 }
 0x1a5   :  { %v623_v36 = vrot.slane %v5285_v12, 7  ;;  %v1022_v34 = vrot.slane %v5285_v12, 1  ;;  %v1484_v17 = vmul.f32 %v4382_v46, %v5285_v12  ;;  %v1610_v61 = vmul.f32 %v4395_v62, %v5285_v12 }
 0x1a6   :  { %v894_v19 = vmul.f32 %v4169_v47, %v5285_v12 }
 0x1a7   :  { %v679_v59 = vsel %vm651_vm2, %v622_v21, %v623_v36  ;;  %v1078_v0 = vsel %vm1050_vm3, %v1021_v51, %v1022_v34  ;;  %v1548_v38 = vadd.f32 %v1484_v17, %v1419_v24  ;;  %v5315_v30 = vadd.f32 %v1610_v61, %v1546_v57 }
 0x1a8   :  { %v764_v13 = vsel %vm718_vm4, %v679_v59, 0.0  ;;  %v1162_v4 = vsel %vm1120_vm5, %v1078_v0, 0.0  ;;  %v439_v35 = vpop.f32.mrf.mxu0  ;;  %v1512_v59 = vadd.f32 %v1448_v37, %v5244_v9  ;;  %v1388_v57 = vmul.f32 %v4391_v2, %v4171_v48 }
 0x1a9   :  { %v829_v54 = vmul.f32 %v4174_v49, %v764_v13  ;;  %v1227_v21 = vmul.f32 %v4235_v18, %v1162_v4  ;;  %v440_v51 = vadd.f32 %v4915_v29, %v439_v35  ;;  %v1514_v61 = vadd.f32 %v1450_v45, %v1387_v44 }
 0x1aa   :  { %v1638_v13 = vadd.f32 %v1577_v23, %v1512_v59  ;;  %v1579_v9 = vmul.f32 %v4395_v62, %v4306_v25  ;;  %v1515_v44 = vadd.f32 %v1451_v31, %v1388_v57  ;;  %v5344_v37 = vadd.f32 %v5332_v40, %v1639_v1 }
 0x1ab   :  { %v958_v0 = vadd.f32 %v894_v19, %v829_v54  ;;  %v5323_v24 = vadd.f32 %v1227_v21, %v957_v5  ;;  %v5325_v17 = vmax.f32 %v440_v51, 0.0  ;;  %v1580_v54 = vmul.f32 %v4395_v62, %v4349_v10 }
 0x1ac   :  { %v1420_v5 = vmul.f32 %v4391_v2, %v555_v43  ;;  %7520 = vst [vmem:[#allocation86_spill] sm:$0xff] %v5344_v37  ;;  %v1640_v19 = vadd.f32 %v1579_v9, %v1514_v61 }
 0x1ad   :  { %7519 = vst [vmem:[#allocation85_spill] sm:$0xff] %v5323_v24  ;;  %v624_v53 = vrot.slane %v5325_v17, 7  ;;  %v1023_v35 = vrot.slane %v5325_v17, 1  ;;  %v1485_v48 = vmul.f32 %v4382_v46, %v5325_v17  ;;  %v1611_v25 = vmul.f32 %v4395_v62, %v5325_v17 }
 0x1ae   :  { %v895_v43 = vmul.f32 %v4169_v47, %v5325_v17  ;;  %v1641_v21 = vadd.f32 %v1580_v54, %v1515_v44  ;;  %v5371_v61 = vadd.f32 %v5332_v40, %v1640_v19  ;;  %v1421_v54 = vmul.f32 %v4391_v2, %v5285_v12 }
 0x1af   :  { %v678_v52 = vsel %vm651_vm2, %v623_v36, %v624_v53  ;;  %v1077_v23 = vsel %vm1050_vm3, %v1022_v34, %v1023_v35  ;;  %v5355_v15 = vadd.f32 %v1485_v48, %v1420_v5  ;;  %v5358_v4 = vadd.f32 %v1611_v25, %v1547_v11 }
 0x1b0   :  { %v830_v45 = vmul.f32 %v4174_v49, %v678_v52  ;;  %v442_v31 = vpop.f32.mrf.mxu0  ;;  %v1228_v1 = vmul.f32 %v4235_v18, %v1077_v23  ;;  %v5366_v52 = vadd.f32 %v5332_v40, %v1638_v13  ;;  %v1909_v34 = vsel %vm1767_vm6, %v5344_v37, 0.0  ;;  %7523 = vst [vmem:[#allocation89_spill] sm:$0xff] %v5371_v61 }
 0x1b1   :  { %v443_v36 = vadd.f32 %v4915_v29, %v442_v31  ;;  %v1392_v11 = vmul.f32 %v4391_v2, %v4349_v10  ;;  %v1455_v48 = vmul.f32 %v4382_v46, %v4454_v58  ;;  %v1584_v44 = vmul.f32 %v4395_v62, %v4542_v28 }
 0x1b2   :  { %v959_v51 = vadd.f32 %v895_v43, %v830_v45  ;;  %v5361_v59 = vadd.f32 %v1228_v1, %v958_v0  ;;  %7522 = vst [vmem:[#allocation88_spill] sm:$0xff] %v5366_v52  ;;  %v5377_v0 = vadd.f32 %v5332_v40, %v1641_v21  ;;  %v1908_v1 = vsel %vm1767_vm6, %v5366_v52, 0.0 }
 0x1b3   :  { %v5363_v57 = vmax.f32 %v443_v36, 0.0  ;;  %v1911_v36 = vsel %vm1767_vm6, %v5371_v61, 0.0  ;;  %v5413_v21 = vadd.f32 %v5332_v40, %v4429_v63 }
 0x1b4   :  { %7521 = vst [vmem:[#allocation87_spill] sm:$0xff] %v5361_v59 }
 0x1b5   :  { %v625_v9 = vrot.slane %v5363_v57, 7  ;;  %7524 = vst [vmem:[#allocation90_spill] sm:$0xff] %v5377_v0  ;;  %v1024_v13 = vrot.slane %v5363_v57, 1  ;;  %v1486_v5 = vmul.f32 %v4382_v46, %v5363_v57  ;;  %v1612_v25 = vmul.f32 %v4395_v62, %v5363_v57 }
 0x1b6   :  { %v896_v45 = vmul.f32 %v4169_v47, %v5363_v57  ;;  %7525 = vst [vmem:[#allocation91_spill] sm:$0xff] %v5413_v21 }
 0x1b7   :  { %v677_v10 = vsel %vm651_vm2, %v624_v53, %v625_v9  ;;  %v1076_v43 = vsel %vm1050_vm3, %v1023_v35, %v1024_v13  ;;  %v5398_v23 = vadd.f32 %v1486_v5, %v1421_v54  ;;  %v5403_v31 = vadd.f32 %v1612_v25, %v1548_v38 }
 0x1b8   :  { %v766_v12 = vsel %vm718_vm4, %v677_v10, 0.0  ;;  %v445_v58 = vpop.f32.mrf.mxu0  ;;  %v1164_v53 = vsel %vm1120_vm5, %v1076_v43, 0.0  ;;  %v1519_v54 = vadd.f32 %v1455_v48, %v1392_v11  ;;  %v1910_v38 = vadd.f32 %v1909_v34, %v1908_v1 }
 0x1b9   :  { %v831_v28 = vmul.f32 %v4174_v49, %v766_v12  ;;  %v446_v19 = vadd.f32 %v4915_v29, %v445_v58  ;;  %v1229_v35 = vmul.f32 %v4235_v18, %v1164_v53  ;;  %v1913_v25 = vsel %vm1767_vm6, %v5377_v0, 0.0 }
 0x1ba   :  { %v5423_v43 = vadd.f32 %v5332_v40, %v4477_v60  ;;  %v1645_v58 = vadd.f32 %v1584_v44, %v1519_v54  ;;  %v5429_v11 = vmul.f32 %v4169_v47, %v4162_v41  ;;  %v1435_v34 = vmul.f32 %v4391_v2, %v4162_v41 }
 0x1bb   :  { %v960_v5 = vadd.f32 %v896_v45, %v831_v28  ;;  %v5415_v10 = vmax.f32 %v446_v19, 0.0  ;;  %v5419_v12 = vadd.f32 %v1229_v35, %v959_v51  ;;  %v1912_v48 = vadd.f32 %v1911_v36, %v1910_v38 }
 0x1bc   :  { %7527 = vst [vmem:[#allocation93_spill] sm:$0xff] %v5423_v43  ;;  %v1915_v51 = vsel %vm1767_vm6, %v5413_v21, 0.0  ;;  %v5437_v60 = vadd.f32 %v5332_v40, %v4525_v27  ;;  %v5449_v54 = vmul.f32 %v4382_v46, %v4162_v41  ;;  %v1917_v27 = vsel %vm1767_vm6, %v5423_v43, 0.0 }
 0x1bd   :  { %7526 = vst [vmem:[#allocation92_spill] sm:$0xff] %v5419_v12  ;;  %v626_v53 = vrot.slane %v5415_v10, 7  ;;  %v1025_v63 = vrot.slane %v5415_v10, 1  ;;  %v1914_v28 = vadd.f32 %v1913_v25, %v1912_v48  ;;  %v897_v1 = vmul.f32 %v4169_v47, %v5415_v10 }
 0x1be   :  { %7528 = vst [vmem:[#allocation94_spill] sm:$0xff] %v5437_v60  ;;  %v1500_v38 = vmul.f32 %v4382_v46, %v4228_v14  ;;  %v1919_v21 = vsel %vm1767_vm6, %v5437_v60, 0.0  ;;  %v1501_v60 = vmul.f32 %v4382_v46, %v4274_v56 }
 0x1bf   :  { %v676_v44 = vsel %vm651_vm2, %v625_v9, %v626_v53  ;;  %v1075_v45 = vsel %vm1050_vm3, %v1024_v13, %v1025_v63  ;;  %v5454_v9 = vadd.f32 %v5332_v40, %v1645_v58  ;;  %v1916_v25 = vadd.f32 %v1915_v51, %v1914_v28 }
 0x1c0   :  { %v832_v19 = vmul.f32 %v4174_v49, %v676_v44  ;;  %v1230_v36 = vmul.f32 %v4235_v18, %v1075_v45  ;;  %v448_v35 = vpop.f32.mrf.mxu0  ;;  %v5463_v45 = vmul.f32 %v4395_v62, %v4162_v41  ;;  %v5469_v58 = vadd.f32 %v5332_v40, %v4621_v20 }
 0x1c1   :  { %7529 = vst [vmem:[#allocation95_spill] sm:$0xff] %v5454_v9  ;;  %v449_v13 = vadd.f32 %v4915_v29, %v448_v35  ;;  %v1436_v35 = vmul.f32 %v4391_v2, %v4176_v50  ;;  %v5481_v51 = vmul.f32 %v4395_v62, %v4176_v50  ;;  %v1918_v28 = vadd.f32 %v1917_v27, %v1916_v25 }
 0x1c2   :  { %v961_v48 = vadd.f32 %v897_v1, %v832_v19  ;;  %v5459_v44 = vadd.f32 %v1230_v36, %v960_v5  ;;  %7531 = vst [vmem:[#allocation97_spill] sm:$0xff] %v5469_v58  ;;  %v5477_v5 = vmul.f32 %v4382_v46, %v4176_v50  ;;  %v5485_v19 = vmul.f32 %v4235_v18, %v4219_v6 }
 0x1c3   :  { %v5471_v43 = vmax.f32 %v449_v13, 0.0  ;;  %v1921_v20 = vsel %vm1767_vm6, %v5454_v9, 0.0  ;;  %v1564_v13 = vadd.f32 %v1500_v38, %v1435_v34  ;;  %v1920_v0 = vadd.f32 %v1919_v21, %v1918_v28 }
 0x1c4   :  { %7530 = vst [vmem:[#allocation96_spill] sm:$0xff] %v5459_v44  ;;  %v5495_v50 = vadd.f32 %v5332_v40, %v4669_v55  ;;  %v1628_v6 = vmul.f32 %v4395_v62, %v4311_v26  ;;  %v1923_v27 = vsel %vm1767_vm6, %v5469_v58, 0.0  ;;  %v5507_v21 = vadd.f32 %v5332_v40, %v4711_v42 }
 0x1c5   :  { %v627_v1 = vrot.slane %v5471_v43, 7  ;;  %v1026_v36 = vrot.slane %v5471_v43, 1  ;;  %v1922_v38 = vadd.f32 %v1921_v20, %v1920_v0  ;;  %v1437_v42 = vmul.f32 %v4391_v2, %v4228_v14 }
 0x1c6   :  { %7532 = vst [vmem:[#allocation98_spill] sm:$0xff] %v5495_v50  ;;  %v1925_v20 = vsel %vm1767_vm6, %v5495_v50, 0.0 }
 0x1c7   :  { %v675_v25 = vsel %vm651_vm2, %v626_v53, %v627_v1  ;;  %v1074_v34 = vsel %vm1050_vm3, %v1025_v63, %v1026_v36  ;;  %7533 = vst [vmem:[#allocation99_spill] sm:$0xff] %v5507_v21  ;;  %v898_v53 = vmul.f32 %v4169_v47, %v5471_v43  ;;  %v1924_v63 = vadd.f32 %v1923_v27, %v1922_v38 }
 0x1c8   :  { %v768_v55 = vsel %vm718_vm4, %v675_v25, 0.0  ;;  %v1166_v28 = vsel %vm1120_vm5, %v1074_v34, 0.0  ;;  %v451_v9 = vpop.f32.mrf.mxu0  ;;  %v5524_v25 = vadd.f32 %v5332_v40, %v4766_v32  ;;  %v5528_v34 = vadd.f32 %v5332_v40, %v4835_v7 }
 0x1c9   :  { %v833_v58 = vmul.f32 %v4174_v49, %v768_v55  ;;  %v1231_v61 = vmul.f32 %v4235_v18, %v1166_v28  ;;  %v452_v0 = vadd.f32 %v4915_v29, %v451_v9  ;;  %v5536_v29 = vmul.f32 %v4395_v62, %v4228_v14 }
 0x1ca   :  { %7534 = vst [vmem:[#allocation100_spill] sm:$0xff] %v5524_v25  ;;  %v1565_v9 = vadd.f32 %v1501_v60, %v1436_v35  ;;  %v1927_v27 = vsel %vm1767_vm6, %v5507_v21, 0.0  ;;  %v1592_v32 = vmul.f32 %v4395_v62, %v4876_v33  ;;  %v1502_v7 = vmul.f32 %v4382_v46, %v4311_v26 }
 0x1cb   :  { %7535 = vst [vmem:[#allocation101_spill] sm:$0xff] %v5528_v34  ;;  %v962_v55 = vadd.f32 %v898_v53, %v833_v58  ;;  %v5530_v37 = vadd.f32 %v1231_v61, %v961_v48  ;;  %v5532_v28 = vmax.f32 %v452_v0, 0.0  ;;  %v1690_v38 = vadd.f32 %v1628_v6, %v1564_v13  ;;  %v7538_v13 = vld [vmem:[#allocation45_spill] sm:$0xff] }
 0x1cc   :  { %v1926_v58 = vadd.f32 %v1925_v20, %v1924_v63  ;;  %v1629_v48 = vmul.f32 %v4395_v62, %v4356_v16  ;;  %v1929_v14 = vsel %vm1767_vm6, %v5524_v25, 0.0  ;;  %v5551_v60 = vadd.f32 %v5332_v40, %v4866_v22  ;;  %v7540_v63 = vld [vmem:[#allocation43_spill] sm:$0xff] }
 0x1cd   :  { %7536 = vst [vmem:[#allocation102_spill] sm:$0xff] %v5530_v37  ;;  %v628_v61 = vrot.slane %v5532_v28, 7  ;;  %v1027_v35 = vrot.slane %v5532_v28, 1  ;;  %v1931_v53 = vsel %vm1767_vm6, %v5528_v34, 0.0  ;;  %v5558_v6 = vadd.f32 %v5332_v40, %v7538_v13 }
 0x1ce   :  { %7537 = vst [vmem:[#allocation103_spill] sm:$0xff] %v5551_v60  ;;  %v1928_v33 = vadd.f32 %v1927_v27, %v1926_v58  ;;  %v1653_v20 = vadd.f32 %v1592_v32, %v7540_v63  ;;  %v899_v22 = vmul.f32 %v4169_v47, %v5532_v28  ;;  %v5569_v34 = vadd.f32 %v5332_v40, %v1690_v38 }
 0x1cf   :  { %7539 = vst [vmem:[#allocation45_spill] sm:$0xff] %v5558_v6  ;;  %v674_v0 = vsel %vm651_vm2, %v627_v1, %v628_v61  ;;  %v1073_v27 = vsel %vm1050_vm3, %v1026_v36, %v1027_v35  ;;  %v5575_v1 = vld [vmem:[%s7323_s1 + $0xc] ss:$0 sm:$0xff]  ;;  %v5582_v36 = vmul.f32 %v4395_v62, %v4274_v56  ;;  %v1933_v38 = vsel %vm1767_vm6, %v5551_v60, 0.0 }
 0x1d0   :  { %v834_v25 = vmul.f32 %v4174_v49, %v674_v0  ;;  %v454_v58 = vpop.f32.mrf.mxu0  ;;  %7541 = vst [vmem:[#allocation43_spill] sm:$0xff] %v5569_v34  ;;  %v1930_v21 = vadd.f32 %v1929_v14, %v1928_v33  ;;  %v1232_v13 = vmul.f32 %v4235_v18, %v1073_v27  ;;  %v1438_v0 = vmul.f32 %v4391_v2, %v4274_v56 }
 0x1d1   :  { %v455_v32 = vadd.f32 %v5575_v1, %v454_v58  ;;  %v1691_v33 = vadd.f32 %v1629_v48, %v1565_v9  ;;  %v1439_v58 = vmul.f32 %v4391_v2, %v4311_v26  ;;  %v1566_v52 = vadd.f32 %v1502_v7, %v1437_v42  ;;  %v7545_v42 = vld [vmem:[#allocation13_spill] sm:$0xff]  ;;  %v7546_v7 = vld [vmem:[#allocation48_spill] sm:$0xff] }
 0x1d2   :  { %v963_v14 = vadd.f32 %v899_v22, %v834_v25  ;;  %v1932_v63 = vadd.f32 %v1931_v53, %v1930_v21  ;;  %v5586_v27 = vadd.f32 %v1232_v13, %v962_v55  ;;  %v1935_v37 = vsel %vm1767_vm6, %v5558_v6, 0.0 }
 0x1d3   :  { %v5588_v50 = vmax.f32 %v455_v32, 0.0  ;;  %v5595_v56 = vadd.f32 %v5332_v40, %v1653_v20  ;;  %v5599_v60 = vsel %vm1767_vm6, %v5569_v34, 0.0  ;;  %v5603_v21 = vmul.f32 %v4391_v2, %v4356_v16 }
 0x1d4   :  { %7542 = vst [vmem:[#allocation104_spill] sm:$0xff] %v5586_v27  ;;  %v1934_v25 = vadd.f32 %v1933_v38, %v1932_v63  ;;  %v1503_v26 = vmul.f32 %v4382_v46, %v4356_v16  ;;  %v1630_v9 = vmul.f32 %v4395_v62, %v7545_v42  ;;  %v5612_v48 = vadd.f32 %v5332_v40, %v7546_v7  ;;  %v7549_v38 = vld [vmem:[#allocation51_spill] sm:$0xff]  ;;  %v7551_v27 = vld [vmem:[#allocation52_spill] sm:$0xff] }
 0x1d5   :  { %7543 = vst [vmem:[#allocation105_spill] sm:$0xff] %v5595_v56  ;;  %v629_v55 = vrot.slane %v5588_v50, 7  ;;  %v1028_v53 = vrot.slane %v5588_v50, 1  ;;  %v5616_v20 = vadd.f32 %v5332_v40, %v1691_v33  ;;  %v1504_v22 = vmul.f32 %v4382_v46, %v7545_v42 }
 0x1d6   :  { %7544 = vst [vmem:[#allocation106_spill] sm:$0xff] %v5599_v60  ;;  %v1936_v13 = vadd.f32 %v1935_v37, %v1934_v25  ;;  %v1937_v16 = vsel %vm1767_vm6, %v5595_v56, 0.0  ;;  %v5626_v63 = vadd.f32 %v5332_v40, %v7549_v38  ;;  %v900_v37 = vmul.f32 %v4169_v47, %v5588_v50 }
 0x1d7   :  { %7547 = vst [vmem:[#allocation13_spill] sm:$0xff] %v5612_v48  ;;  %v673_v32 = vsel %vm651_vm2, %v628_v61, %v629_v55  ;;  %v1072_v33 = vsel %vm1050_vm3, %v1027_v35, %v1028_v53  ;;  %v1692_v56 = vadd.f32 %v1630_v9, %v1566_v52  ;;  %v1939_v38 = vsel %vm1767_vm6, %v5612_v48, 0.0 }
 0x1d8   :  { %7548 = vst [vmem:[#allocation48_spill] sm:$0xff] %v5616_v20  ;;  %v770_v7 = vsel %vm718_vm4, %v673_v32, 0.0  ;;  %v457_v34 = vpop.f32.mrf.mxu0  ;;  %v1168_v61 = vsel %vm1120_vm5, %v1072_v33, 0.0  ;;  %v5642_v32 = vadd.f32 %v5332_v40, %v7551_v27  ;;  %v1938_v44 = vadd.f32 %v1937_v16, %v1936_v13 }
 0x1d9   :  { %7550 = vst [vmem:[#allocation51_spill] sm:$0xff] %v5626_v63  ;;  %v835_v6 = vmul.f32 %v4174_v49, %v770_v7  ;;  %v458_v25 = vadd.f32 %v5575_v1, %v457_v34  ;;  %v1233_v35 = vmul.f32 %v4235_v18, %v1168_v61  ;;  %v7553_v7 = vld [vmem:[#allocation54_spill] sm:$0xff]  ;;  %v5651_v33 = vadd.f32 %v1503_v26, %v1438_v0  ;;  %v7560_v61 = vld [vmem:[#allocation56_spill] sm:$0xff] }
 0x1da   :  { %7552 = vst [vmem:[#allocation52_spill] sm:$0xff] %v5642_v32  ;;  %v5647_v12 = vadd.f32 %v5332_v40, %v7553_v7  ;;  %v5655_v52 = vsel %vm1767_vm6, %v5616_v20, 0.0  ;;  %v1941_v34 = vsel %vm1767_vm6, %v5626_v63, 0.0  ;;  %v5663_v9 = vmul.f32 %v4391_v2, %v7545_v42  ;;  %v7566_v20 = vld [vmem:[#allocation59_spill] sm:$0xff] }
 0x1db   :  { %v964_v59 = vadd.f32 %v900_v37, %v835_v6  ;;  %v5649_v24 = vmax.f32 %v458_v25, 0.0  ;;  %7555 = vst [vmem:[#allocation107_spill] sm:$0xff] %v5655_v52  ;;  %v5659_v27 = vadd.f32 %v1233_v35, %v963_v14  ;;  %v1940_v13 = vadd.f32 %v1939_v38, %v1938_v44 }
 0x1dc   :  { %7554 = vst [vmem:[#allocation54_spill] sm:$0xff] %v5647_v12  ;;  %v5667_v0 = vadd.f32 %v1504_v22, %v1439_v58  ;;  %v5670_v26 = vadd.f32 %v5332_v40, %v1692_v56  ;;  %v1943_v37 = vsel %vm1767_vm6, %v5642_v32, 0.0  ;;  %v5676_v14 = vadd.f32 %v5332_v40, %v7560_v61  ;;  %v7562_v22 = vld [vmem:[#allocation83_spill] sm:$0xff] }
 0x1dd   :  { %7556 = vst [vmem:[#allocation108_spill] sm:$0xff] %v5659_v27  ;;  %v630_v6 = vrot.slane %v5649_v24, 7  ;;  %v1029_v16 = vrot.slane %v5649_v24, 1  ;;  %v1942_v25 = vadd.f32 %v1941_v34, %v1940_v13  ;;  %v1945_v44 = vsel %vm1767_vm6, %v5647_v12, 0.0  ;;  %v7564_v13 = vld [vmem:[#allocation16_spill] sm:$0xff]  ;;  %v7568_v12 = vld [vmem:[#allocation81_spill] sm:$0xff] }
 0x1de   :  { %7557 = vst [vmem:[#allocation109_spill] sm:$0xff] %v5663_v9  ;;  %v5686_v56 = vadd.f32 %v5332_v40, %v7562_v22  ;;  %v901_v35 = vmul.f32 %v4169_v47, %v5649_v24  ;;  %v5694_v61 = vmul.f32 %v4391_v2, %v7564_v13  ;;  %v5705_v32 = vadd.f32 %v5332_v40, %v7568_v12 }
 0x1df   :  { %7558 = vst [vmem:[#allocation110_spill] sm:$0xff] %v5667_v0  ;;  %v672_v42 = vsel %vm651_vm2, %v629_v55, %v630_v6  ;;  %v1071_v58 = vsel %vm1050_vm3, %v1028_v53, %v1029_v16  ;;  %v1944_v55 = vadd.f32 %v1943_v37, %v1942_v25  ;;  %v5698_v53 = vadd.f32 %v5332_v40, %v7566_v20 }
 0x1e0   :  { %7559 = vst [vmem:[#allocation111_spill] sm:$0xff] %v5670_v26  ;;  %v836_v38 = vmul.f32 %v4174_v49, %v672_v42  ;;  %v1234_v7 = vmul.f32 %v4235_v18, %v1071_v58  ;;  %v460_v34 = vpop.f32.mrf.mxu0  ;;  %v1947_v42 = vsel %vm1767_vm6, %v5676_v14, 0.0  ;;  %v5711_v48 = vmul.f32 %v4382_v46, %v7564_v13 }
 0x1e1   :  { %7561 = vst [vmem:[#allocation56_spill] sm:$0xff] %v5676_v14  ;;  %v461_v22 = vadd.f32 %v5575_v1, %v460_v34  ;;  %v1946_v37 = vadd.f32 %v1945_v44, %v1944_v55  ;;  %v5715_v20 = vadd.f32 %v5332_v40, %v5315_v30  ;;  %v1631_v34 = vmul.f32 %v4395_v62, %v7564_v13  ;;  %v7572_v14 = vld [vmem:[#allocation28_spill] sm:$0xff]  ;;  %v7573_v55 = vld [vmem:[#allocation62_spill] sm:$0xff] }
 0x1e2   :  { %7563 = vst [vmem:[#allocation83_spill] sm:$0xff] %v5686_v56  ;;  %v965_v58 = vadd.f32 %v901_v35, %v836_v38  ;;  %v5707_v63 = vadd.f32 %v1234_v7, %v964_v59  ;;  %v1186_v12 = vsel %vm1120_vm5, %v7572_v14, 0.0  ;;  %v1978_v59 = vsel %vm1767_vm6, %v5686_v56, 0.0 }
 0x1e3   :  { %7565 = vst [vmem:[#allocation16_spill] sm:$0xff] %v5694_v61  ;;  %v5717_v25 = vmax.f32 %v461_v22, 0.0  ;;  %v1613_v38 = vmul.f32 %v4395_v62, %v5415_v10  ;;  %v1948_v44 = vadd.f32 %v1947_v42, %v1946_v37  ;;  %v1949_v30 = vsel %vm1767_vm6, %v5698_v53, 0.0 }
 0x1e4   :  { %7567 = vst [vmem:[#allocation59_spill] sm:$0xff] %v5698_v53  ;;  %v1600_v13 = vmul.f32 %v4395_v62, %v7573_v55  ;;  %v1977_v14 = vsel %vm1767_vm6, %v5705_v32, 0.0  ;;  %v5738_v22 = vadd.f32 %v5332_v40, %v5358_v4  ;;  %v1614_v42 = vmul.f32 %v4395_v62, %v5471_v43 }
 0x1e5   :  { %7569 = vst [vmem:[#allocation81_spill] sm:$0xff] %v5705_v32  ;;  %v631_v35 = vrot.slane %v5717_v25, 7  ;;  %v1030_v7 = vrot.slane %v5717_v25, 1  ;;  %v1979_v37 = vadd.f32 %v1978_v59, %v1977_v14  ;;  %v1980_v56 = vsel %vm1767_vm6, %v5715_v20, 0.0 }
 0x1e6   :  { %7570 = vst [vmem:[#allocation112_spill] sm:$0xff] %v5707_v63  ;;  %v1487_v32 = vmul.f32 %v4382_v46, %v5415_v10  ;;  %v1675_v63 = vadd.f32 %v1613_v38, %v5355_v15  ;;  %v1422_v52 = vmul.f32 %v4391_v2, %v5325_v17  ;;  %v1982_v15 = vsel %vm1767_vm6, %v5738_v22, 0.0 }
 0x1e7   :  { %7571 = vst [vmem:[#allocation113_spill] sm:$0xff] %v5715_v20  ;;  %v671_v53 = vsel %vm651_vm2, %v630_v6, %v631_v35  ;;  %v1070_v55 = vsel %vm1050_vm3, %v1029_v16, %v1030_v7  ;;  %v902_v6 = vmul.f32 %v4169_v47, %v5717_v25  ;;  %v1676_v38 = vadd.f32 %v1614_v42, %v5398_v23 }
 0x1e8   :  { %7574 = vst [vmem:[#allocation28_spill] sm:$0xff] %v5738_v22  ;;  %v772_v4 = vsel %vm718_vm4, %v671_v53, 0.0  ;;  %v1170_v59 = vsel %vm1120_vm5, %v1070_v55, 0.0  ;;  %v463_v14 = vpop.f32.mrf.mxu0  ;;  %v5766_v53 = vadd.f32 %v5332_v40, %v5403_v31  ;;  %v1615_v55 = vmul.f32 %v4395_v62, %v5532_v28  ;;  %v7577_v22 = vld [vmem:[#allocation31_spill] sm:$0xff] }
 0x1e9   :  { %v837_v20 = vmul.f32 %v4174_v49, %v772_v4  ;;  %v1235_v27 = vmul.f32 %v4235_v18, %v1170_v59  ;;  %v464_v16 = vadd.f32 %v5575_v1, %v463_v14  ;;  %v5776_v14 = vadd.f32 %v1631_v34, %v5651_v33  ;;  %v7581_v34 = vld [vmem:[#allocation58_spill] sm:$0xff] }
 0x1ea   :  { %7575 = vst [vmem:[#allocation62_spill] sm:$0xff] %v5766_v53  ;;  %v5779_v17 = vmul.f32 %v4235_v18, %v1186_v12  ;;  %v5783_v31 = vmul.f32 %v4235_v18, %v7577_v22  ;;  %v1981_v61 = vadd.f32 %v1980_v56, %v1979_v37  ;;  %v5785_v23 = vadd.f32 %v1949_v30, %v1948_v44 }
 0x1eb   :  { %v966_v4 = vadd.f32 %v902_v6, %v837_v20  ;;  %v5771_v60 = vadd.f32 %v1235_v27, %v965_v58  ;;  %v5773_v59 = vmax.f32 %v464_v16, 0.0  ;;  %v1551_v42 = vadd.f32 %v1487_v32, %v1422_v52  ;;  %v7579_v58 = vld [vmem:[#allocation61_spill] sm:$0xff] }
 0x1ec   :  { %v5788_v20 = vadd.f32 %v5332_v40, %v1675_v63  ;;  %v5793_v33 = vadd.f32 %v5332_v40, %v7579_v58  ;;  %v1661_v12 = vadd.f32 %v1600_v13, %v7581_v34  ;;  %v1983_v6 = vadd.f32 %v1982_v15, %v1981_v61 }
 0x1ed   :  { %7576 = vst [vmem:[#allocation114_spill] sm:$0xff] %v5771_v60  ;;  %v632_v27 = vrot.slane %v5773_v59, 7  ;;  %v1031_v16 = vrot.slane %v5773_v59, 1  ;;  %v1984_v56 = vsel %vm1767_vm6, %v5766_v53, 0.0  ;;  %v5800_v44 = vadd.f32 %v5332_v40, %v1676_v38 }
 0x1ee   :  { %7578 = vst [vmem:[#allocation31_spill] sm:$0xff] %v5788_v20  ;;  %v1677_v32 = vadd.f32 %v1615_v55, %v1551_v42  ;;  %v1488_v52 = vmul.f32 %v4382_v46, %v5471_v43  ;;  %v903_v61 = vmul.f32 %v4169_v47, %v5773_v59  ;;  %v1423_v37 = vmul.f32 %v4391_v2, %v5363_v57 }
 0x1ef   :  { %7580 = vst [vmem:[#allocation61_spill] sm:$0xff] %v5793_v33  ;;  %v670_v63 = vsel %vm651_vm2, %v631_v35, %v632_v27  ;;  %v1069_v13 = vsel %vm1050_vm3, %v1030_v7, %v1031_v16  ;;  %v1986_v15 = vsel %vm1767_vm6, %v5788_v20, 0.0  ;;  %v1985_v55 = vadd.f32 %v1984_v56, %v1983_v6 }
 0x1f0   :  { %7582 = vst [vmem:[#allocation58_spill] sm:$0xff] %v5800_v44  ;;  %v838_v30 = vmul.f32 %v4174_v49, %v670_v63  ;;  %v466_v22 = vpop.f32.mrf.mxu0  ;;  %v1236_v35 = vmul.f32 %v4235_v18, %v1069_v13  ;;  %v1489_v42 = vmul.f32 %v4382_v46, %v5532_v28  ;;  %v1616_v58 = vmul.f32 %v4395_v62, %v5588_v50 }
 0x1f1   :  { %v467_v38 = vadd.f32 %v5575_v1, %v466_v22  ;;  %v1988_v7 = vsel %vm1767_vm6, %v5800_v44, 0.0  ;;  %v5824_v57 = vadd.f32 %v5332_v40, %v1677_v32  ;;  %v1951_v6 = vsel %vm1767_vm6, %v5793_v33, 0.0 }
 0x1f2   :  { %v967_v34 = vadd.f32 %v903_v61, %v838_v30  ;;  %v5826_v63 = vadd.f32 %v1236_v35, %v966_v4  ;;  %v1424_v56 = vmul.f32 %v4391_v2, %v5415_v10  ;;  %v1987_v13 = vadd.f32 %v1986_v15, %v1985_v55  ;;  %v7585_v61 = vld [vmem:[#allocation65_spill] sm:$0xff] }
 0x1f3   :  { %7583 = vst [vmem:[#allocation115_spill] sm:$0xff] %v5824_v57  ;;  %v5828_v20 = vmax.f32 %v467_v38, 0.0  ;;  %v1552_v22 = vadd.f32 %v1488_v52, %v1423_v37  ;;  %v5835_v30 = vadd.f32 %v5332_v40, %v1661_v12  ;;  %v5839_v44 = vadd.f32 %v5332_v40, %v7585_v61 }
 0x1f4   :  { %7584 = vst [vmem:[#allocation116_spill] sm:$0xff] %v5826_v63  ;;  %v1425_v4 = vmul.f32 %v4391_v2, %v5471_v43  ;;  %v1989_v35 = vadd.f32 %v1988_v7, %v1987_v13  ;;  %v1553_v38 = vadd.f32 %v1489_v42, %v1424_v56  ;;  %v1990_v10 = vsel %vm1767_vm6, %v5824_v57, 0.0 }
 0x1f5   :  { %v633_v32 = vrot.slane %v5828_v20, 7  ;;  %v1678_v53 = vadd.f32 %v1616_v58, %v1552_v22  ;;  %v1032_v33 = vrot.slane %v5828_v20, 1  ;;  %v1490_v12 = vmul.f32 %v4382_v46, %v5588_v50 }
 0x1f6   :  { %v1617_v52 = vmul.f32 %v4395_v62, %v5649_v24  ;;  %v1491_v43 = vmul.f32 %v4382_v46, %v5649_v24  ;;  %v1618_v15 = vmul.f32 %v4395_v62, %v5717_v25  ;;  %v904_v56 = vmul.f32 %v4169_v47, %v5828_v20 }
 0x1f7   :  { %v669_v37 = vsel %vm651_vm2, %v632_v27, %v633_v32  ;;  %v1068_v42 = vsel %vm1050_vm3, %v1031_v16, %v1032_v33  ;;  %v1426_v22 = vmul.f32 %v4391_v2, %v5532_v28  ;;  %v5870_v61 = vadd.f32 %v5332_v40, %v1678_v53 }
 0x1f8   :  { %v774_v55 = vsel %vm718_vm4, %v669_v37, 0.0  ;;  %v469_v58 = vpop.f32.mrf.mxu0  ;;  %v1172_v27 = vsel %vm1120_vm5, %v1068_v42, 0.0  ;;  %v1619_v16 = vmul.f32 %v4395_v62, %v5773_v59  ;;  %v1679_v57 = vadd.f32 %v1617_v52, %v1553_v38 }
 0x1f9   :  { %v839_v7 = vmul.f32 %v4174_v49, %v774_v55  ;;  %v470_v13 = vadd.f32 %v5575_v1, %v469_v58  ;;  %7586 = vst [vmem:[#allocation65_spill] sm:$0xff] %v5870_v61  ;;  %v1237_v37 = vmul.f32 %v4235_v18, %v1172_v27  ;;  %v1554_v55 = vadd.f32 %v1490_v12, %v1425_v4 }
 0x1fa   :  { %v1991_v26 = vadd.f32 %v1990_v10, %v1989_v35  ;;  %v1555_v42 = vadd.f32 %v1491_v43, %v1426_v22  ;;  %v1492_v58 = vmul.f32 %v4382_v46, %v5717_v25  ;;  %v1493_v53 = vmul.f32 %v4382_v46, %v5773_v59 }
 0x1fb   :  { %v968_v63 = vadd.f32 %v904_v56, %v839_v7  ;;  %v5875_v60 = vmax.f32 %v470_v13, 0.0  ;;  %v5879_v0 = vadd.f32 %v1237_v37, %v967_v34  ;;  %v1680_v28 = vadd.f32 %v1618_v15, %v1554_v55 }
 0x1fc   :  { %v1427_v4 = vmul.f32 %v4391_v2, %v5588_v50  ;;  %v1992_v35 = vsel %vm1767_vm6, %v5870_v61, 0.0  ;;  %v1428_v38 = vmul.f32 %v4391_v2, %v5649_v24  ;;  %v1681_v10 = vadd.f32 %v1619_v16, %v1555_v42 }
 0x1fd   :  { %v634_v9 = vrot.slane %v5875_v60, 7  ;;  %v1033_v27 = vrot.slane %v5875_v60, 1  ;;  %v5892_v34 = vadd.f32 %v5332_v40, %v1679_v57  ;;  %v1620_v12 = vmul.f32 %v4395_v62, %v5828_v20 }
 0x1fe   :  { %v905_v15 = vmul.f32 %v4169_v47, %v5875_v60  ;;  %v1621_v57 = vmul.f32 %v4395_v62, %v5875_v60  ;;  %v1556_v56 = vadd.f32 %v1492_v58, %v1427_v4  ;;  %v5907_v13 = vadd.f32 %v5332_v40, %v1680_v28 }
 0x1ff   :  { %7587 = vst [vmem:[#allocation117_spill] sm:$0xff] %v5892_v34  ;;  %v668_v52 = vsel %vm651_vm2, %v633_v32, %v634_v9  ;;  %v1067_v43 = vsel %vm1050_vm3, %v1032_v33, %v1033_v27  ;;  %v1557_v22 = vadd.f32 %v1493_v53, %v1428_v38  ;;  %v5911_v33 = vadd.f32 %v5332_v40, %v1681_v10 }
 0x200   :  { %v840_v50 = vmul.f32 %v4174_v49, %v668_v52  ;;  %v1238_v24 = vmul.f32 %v4235_v18, %v1067_v43  ;;  %v472_v7 = vpop.f32.mrf.mxu0  ;;  %7588 = vst [vmem:[#allocation118_spill] sm:$0xff] %v5907_v13  ;;  %v1494_v16 = vmul.f32 %v4382_v46, %v5828_v20  ;;  %v5918_v42 = vadd.f32 %v1951_v6, %v5785_v23  ;;  %v7590_v23 = vld [vmem:[#allocation67_spill] sm:$0xff] }
 0x201   :  { %v473_v32 = vadd.f32 %v5575_v1, %v472_v7  ;;  %7589 = vst [vmem:[#allocation119_spill] sm:$0xff] %v5911_v33  ;;  %v1994_v58 = vsel %vm1767_vm6, %v5892_v34, 0.0  ;;  %v1682_v28 = vadd.f32 %v1620_v12, %v1556_v56  ;;  %v5924_v53 = vsel %vm1767_vm6, %v5835_v30, 0.0 }
 0x202   :  { %v969_v37 = vadd.f32 %v905_v15, %v840_v50  ;;  %v5915_v55 = vadd.f32 %v1238_v24, %v968_v63  ;;  %v1993_v38 = vadd.f32 %v1992_v35, %v1991_v26  ;;  %v1429_v10 = vmul.f32 %v4391_v2, %v5717_v25 }
 0x203   :  { %v568_v4 = vmax.f32 %v473_v32, 0.0  ;;  %v1683_v52 = vadd.f32 %v1621_v57, %v1557_v22  ;;  %v5930_v63 = vsel %vm1767_vm6, %v5839_v44, 0.0  ;;  %v5934_v6 = vadd.f32 %v5332_v40, %v7590_v23 }
 0x204   :  { %v1995_v50 = vadd.f32 %v1994_v58, %v1993_v38  ;;  %v1996_v15 = vsel %vm1767_vm6, %v5907_v13, 0.0  ;;  %v1998_v26 = vsel %vm1767_vm6, %v5911_v33, 0.0  ;;  %v1558_v35 = vadd.f32 %v1494_v16, %v1429_v10 }
 0x205   :  { %v635_v43 = vrot.slane %v568_v4, 7  ;;  %v1034_v12 = vrot.slane %v568_v4, 1  ;;  %v5941_v25 = vadd.f32 %v5332_v40, %v1682_v28  ;;  %v1622_v7 = vmul.f32 %v4395_v62, %v568_v4 }
 0x206   :  { %v1495_v56 = vmul.f32 %v4382_v46, %v5875_v60  ;;  %v5951_v22 = vadd.f32 %v5332_v40, %v1683_v52  ;;  %v906_v28 = vmul.f32 %v4169_v47, %v568_v4  ;;  %v1997_v10 = vadd.f32 %v1996_v15, %v1995_v50  ;;  %v7593_v50 = vld [vmem:[#allocation25_spill] sm:$0xff] }
 0x207   :  { %7591 = vst [vmem:[#allocation67_spill] sm:$0xff] %v5941_v25  ;;  %v667_v24 = vsel %vm651_vm2, %v634_v9, %v635_v43  ;;  %v1066_v57 = vsel %vm1050_vm3, %v1033_v27, %v1034_v12  ;;  %v1433_v23 = vmul.f32 %v4391_v2, %v568_v4  ;;  %v1496_v52 = vmul.f32 %v4382_v46, %v568_v4 }
 0x208   :  { %7592 = vst [vmem:[#allocation120_spill] sm:$0xff] %v5951_v22  ;;  %v776_v32 = vsel %vm718_vm4, %v667_v24, 0.0  ;;  %v1174_v16 = vsel %vm1120_vm5, %v1066_v57, 0.0  ;;  %v475_v58 = vpop.f32.mrf.mxu0  ;;  %v1684_v33 = vadd.f32 %v1622_v7, %v1558_v35  ;;  %v1430_v24 = vmul.f32 %v4391_v2, %v5773_v59 }
 0x209   :  { %v841_v9 = vmul.f32 %v4174_v49, %v776_v32  ;;  %v1239_v27 = vmul.f32 %v4235_v18, %v1174_v16  ;;  %v476_v38 = vadd.f32 %v5575_v1, %v475_v58  ;;  %v1999_v32 = vadd.f32 %v1998_v26, %v1997_v10 }
 0x20a   :  { %v1431_v61 = vmul.f32 %v4391_v2, %v5828_v20  ;;  %v2000_v1 = vsel %vm1767_vm6, %v5941_v25, 0.0  ;;  %v5973_v15 = vadd.f32 %v5779_v17, %v7593_v50  ;;  %v1432_v4 = vmul.f32 %v4391_v2, %v5875_v60  ;;  %v7720_v25 = vld [vmem:[#allocation41_spill] sm:$0xff] }
 0x20b   :  { %v970_v13 = vadd.f32 %v906_v28, %v841_v9  ;;  %v5965_v57 = vadd.f32 %v1239_v27, %v969_v37  ;;  %v569_v34 = vmax.f32 %v476_v38, 0.0  ;;  %v1559_v35 = vadd.f32 %v1495_v56, %v1430_v24 }
 0x20c   :  { %v2002_v59 = vsel %vm1767_vm6, %v5951_v22, 0.0  ;;  %v1560_v7 = vadd.f32 %v1496_v52, %v1431_v61  ;;  %v1562_v26 = vadd.f32 %v5449_v54, %v1433_v23  ;;  %v5981_v20 = vadd.f32 %v5332_v40, %v1684_v33  ;;  %v7713_v22 = vld [vmem:[#allocation36_spill] sm:$0xff] }
 0x20d   :  { %v636_v37 = vrot.slane %v569_v34, 7  ;;  %v1035_v16 = vrot.slane %v569_v34, 1  ;;  %v7595_v58 = vrot.slane %v4162_v41, 7  ;;  %v907_v56 = vmul.f32 %v4169_v47, %v569_v34 }
 0x20e   :  { %7594 = vst [vmem:[#allocation25_spill] sm:$0xff] %v5981_v20  ;;  %v1434_v9 = vmul.f32 %v4391_v2, %v569_v34  ;;  %v7596_v33 = vrot.slane %v4162_v41, 1  ;;  %v1497_v3 = vmul.f32 %v4382_v46, %v569_v34  ;;  %v1686_v10 = vadd.f32 %v5463_v45, %v1560_v7  ;;  %v7597_v45 = vld [vmem:[#allocation69_spill] sm:$0xff] }
 0x20f   :  { %v665_v17 = vsel %vm651_vm2, %v636_v37, %v7595_v58  ;;  %v666_v60 = vsel %vm651_vm2, %v635_v43, %v636_v37  ;;  %v1065_v27 = vsel %vm1050_vm3, %v1034_v12, %v1035_v16  ;;  %v1623_v52 = vmul.f32 %v4395_v62, %v569_v34 }
 0x210   :  { %v778_v61 = vsel %vm718_vm4, %v665_v17, 0.0  ;;  %v842_v54 = vmul.f32 %v4174_v49, %v666_v60  ;;  %v1064_v28 = vsel %vm1050_vm3, %v1035_v16, %v7596_v33  ;;  %v1240_v43 = vmul.f32 %v4235_v18, %v1065_v27 }
 0x211   :  { %v843_v38 = vmul.f32 %v4174_v49, %v778_v61  ;;  %v1176_v47 = vsel %vm1120_vm5, %v1064_v28, 0.0  ;;  %v2001_v24 = vadd.f32 %v2000_v1, %v1999_v32  ;;  %v1561_v49 = vadd.f32 %v1497_v3, %v1432_v4 }
 0x212   :  { %v971_v23 = vadd.f32 %v907_v56, %v842_v54  ;;  %v1241_v41 = vmul.f32 %v4235_v18, %v1176_v47  ;;  %v6009_v12 = vadd.f32 %v1240_v43, %v970_v13  ;;  %v2004_v8 = vsel %vm1767_vm6, %v5981_v20, 0.0  ;;  %v7606_v54 = vld [vmem:[#allocation19_spill] sm:$0xff]  ;;  %v7703_v20 = vld [vmem:[#allocation26_spill] sm:$0xff] }
 0x213   :  { %v972_v39 = vadd.f32 %v5429_v11, %v843_v38  ;;  %v1563_v37 = vadd.f32 %v5477_v5, %v1434_v9  ;;  %v1685_v16 = vadd.f32 %v1623_v52, %v1559_v35  ;;  %v6018_v7 = vadd.f32 %v5332_v40, %v7597_v45  ;;  %v7600_v5 = vld [vmem:[#allocation29_spill] sm:$0xff] }
 0x214   :  { %v6013_v50 = vadd.f32 %v1241_v41, %v971_v23  ;;  %v2003_v58 = vadd.f32 %v2002_v59, %v2001_v24  ;;  %v1687_v11 = vadd.f32 %v5481_v51, %v1561_v49  ;;  %v1688_v13 = vadd.f32 %v5536_v29, %v1562_v26  ;;  %v7607_v38 = vld [vmem:[#allocation77_spill] sm:$0xff]  ;;  %v7609_v41 = vld [vmem:[#allocation39_spill] sm:$0xff] }
 0x215   :  { %v6021_v34 = vadd.f32 %v5485_v19, %v972_v39  ;;  %v6026_v32 = vadd.f32 %v5332_v40, %v1686_v10  ;;  %v6029_v1 = vadd.f32 %v5332_v40, %v1685_v16  ;;  %v6033_v4 = vadd.f32 %v5783_v31, %v7600_v5  ;;  %v7602_v31 = vld [vmem:[#allocation71_spill] sm:$0xff] }
 0x216   :  { %v1569_v35 = vadd.f32 %v5711_v48, %v5603_v21  ;;  %v1954_v19 = vadd.f32 %v5924_v53, %v5918_v42  ;;  %v2005_v59 = vadd.f32 %v2004_v8, %v2003_v58  ;;  %v1957_v51 = vsel %vm1767_vm6, %v5934_v6, 0.0  ;;  %v7604_v53 = vld [vmem:[#allocation74_spill] sm:$0xff]  ;;  %v7610_v49 = vld [vmem:[#allocation23_spill] sm:$0xff] }
 0x217   :  { %7598 = vst [vmem:[#allocation69_spill] sm:$0xff] %v6026_v32  ;;  %v1689_v29 = vadd.f32 %v5582_v36, %v1563_v37  ;;  %v6043_v26 = vadd.f32 %v5332_v40, %v1687_v11  ;;  %v2006_v17 = vsel %vm1767_vm6, %v6029_v1, 0.0  ;;  %v6049_v60 = vadd.f32 %v5332_v40, %v7602_v31  ;;  %v7611_v37 = vld [vmem:[#allocation73_spill] sm:$0xff] }
 0x218   :  { %7599 = vst [vmem:[#allocation121_spill] sm:$0xff] %v6029_v1  ;;  %v6053_v21 = vadd.f32 %v5332_v40, %v5776_v14  ;;  %v6056_v48 = vmul.f32 0.0, %v4395_v62  ;;  %v2007_v42 = vadd.f32 %v2006_v17, %v2005_v59  ;;  %v1956_v36 = vadd.f32 %v5930_v63, %v1954_v19  ;;  %v7612_v11 = vld [vmem:[#allocation109_spill] sm:$0xff]  ;;  %v7613_v59 = vld [vmem:[#allocation110_spill] sm:$0xff] }
 0x219   :  { %7601 = vst [vmem:[#allocation29_spill] sm:$0xff] %v6043_v26  ;;  %v6061_v56 = vadd.f32 %v5332_v40, %v7604_v53  ;;  %v6064_v9 = vadd.f32 %v5332_v40, %v1688_v13  ;;  %v2008_v61 = vsel %vm1767_vm6, %v6026_v32, 0.0  ;;  %v1959_v14 = vsel %vm1767_vm6, %v6018_v7, 0.0 }
 0x21a   :  { %7603 = vst [vmem:[#allocation71_spill] sm:$0xff] %v6053_v21  ;;  %v1506_v33 = vmul.f32 %v4382_v46, %v7606_v54  ;;  %v1632_v28 = vmul.f32 %v4395_v62, %v7606_v54  ;;  %v2009_v63 = vadd.f32 %v2008_v61, %v2007_v42  ;;  %v1958_v27 = vadd.f32 %v1957_v51, %v1956_v36 }
 0x21b   :  { %7605 = vst [vmem:[#allocation74_spill] sm:$0xff] %v6064_v9  ;;  %v6076_v47 = vadd.f32 %v5332_v40, %v7607_v38  ;;  %v6079_v43 = vadd.f32 %v5332_v40, %v1689_v29  ;;  %v2010_v3 = vsel %vm1767_vm6, %v6043_v26, 0.0  ;;  %v1961_v10 = vsel %vm1767_vm6, %v6049_v60, 0.0  ;;  %v7614_v29 = vld [vmem:[#allocation24_spill] sm:$0xff] }
 0x21c   :  { %v1443_v23 = vmul.f32 %v4391_v2, %v7606_v54  ;;  %v1254_v52 = vmul.f32 %v4235_v18, %v7609_v41  ;;  %v2011_v24 = vadd.f32 %v2010_v3, %v2009_v63  ;;  %v1960_v39 = vadd.f32 %v1959_v14, %v1958_v27  ;;  %v7615_v14 = vld [vmem:[#allocation35_spill] sm:$0xff]  ;;  %v7617_v63 = vld [vmem:[#allocation16_spill] sm:$0xff] }
 0x21d   :  { %7608 = vst [vmem:[#allocation19_spill] sm:$0xff] %v6079_v43  ;;  %v1507_v8 = vmul.f32 %v4382_v46, %v7610_v49  ;;  %v1668_v16 = vadd.f32 %v6056_v48, %v7611_v37  ;;  %v2012_v45 = vsel %vm1767_vm6, %v6064_v9, 0.0  ;;  %v1963_v58 = vsel %vm1767_vm6, %v6061_v56, 0.0  ;;  %v7618_v38 = vld [vmem:[#allocation76_spill] sm:$0xff]  ;;  %v7620_v37 = vld [vmem:[#allocation106_spill] sm:$0xff] }
 0x21e   :  { %v1570_v13 = vadd.f32 %v1506_v33, %v7612_v11  ;;  %v1633_v5 = vmul.f32 %v4395_v62, %v7610_v49  ;;  %v2013_v18 = vadd.f32 %v2012_v45, %v2011_v24  ;;  %v1962_v19 = vadd.f32 %v1961_v10, %v1960_v39  ;;  %v7616_v33 = vld [vmem:[#allocation111_spill] sm:$0xff]  ;;  %v7619_v24 = vld [vmem:[#allocation30_spill] sm:$0xff] }
 0x21f   :  { %v1694_v51 = vadd.f32 %v1632_v28, %v7613_v59  ;;  %v1508_v17 = vmul.f32 %v4382_v46, %v7614_v29  ;;  %v2014_v31 = vsel %vm1767_vm6, %v6079_v43, 0.0  ;;  %v1965_v42 = vsel %vm1767_vm6, %v6076_v47, 0.0 }
 0x220   :  { %v1634_v36 = vmul.f32 %v4395_v62, %v7614_v29  ;;  %v2015_v53 = vadd.f32 %v2014_v31, %v2013_v18  ;;  %v1964_v61 = vadd.f32 %v1963_v58, %v1962_v19  ;;  %v6110_v54 = vadd.f32 %v1254_v52, %v7615_v14  ;;  %v7622_v19 = vld [vmem:[#allocation107_spill] sm:$0xff]  ;;  %v7623_v31 = vld [vmem:[#allocation33_spill] sm:$0xff] }
 0x221   :  { %v2020_v28 = vsel %vm1767_vm6, %v7616_v33, 0.0  ;;  %v1571_v27 = vadd.f32 %v1507_v8, %v7617_v63  ;;  %v1669_v3 = vadd.f32 %v6056_v48, %v7618_v38  ;;  %v6118_v10 = vadd.f32 %v5332_v40, %v1668_v16 }
 0x222   :  { %v1695_v41 = vadd.f32 %v1633_v5, %v1569_v35  ;;  %v1635_v39 = vmul.f32 %v4395_v62, %v7619_v24  ;;  %v2017_v45 = vadd.f32 %v7620_v37, %v2015_v53  ;;  %v1966_v58 = vadd.f32 %v1965_v42, %v1964_v61  ;;  %v7625_v61 = vld [vmem:[#allocation37_spill] sm:$0xff] }
 0x223   :  { %v2022_v52 = vsel %vm1767_vm6, %v6053_v21, 0.0  ;;  %v6126_v11 = vadd.f32 %v5332_v40, %v1694_v51  ;;  %v1444_v8 = vmul.f32 %v4391_v2, %v7610_v49  ;;  %v1509_v16 = vmul.f32 %v4382_v46, %v7619_v24 }
 0x224   :  { %v1696_v18 = vadd.f32 %v1634_v36, %v1570_v13  ;;  %v1445_v35 = vmul.f32 %v4391_v2, %v7614_v29  ;;  %v1572_v5 = vadd.f32 %v1508_v17, %v1443_v23  ;;  %v2019_v59 = vadd.f32 %v7622_v19, %v2017_v45 }
 0x225   :  { %7621 = vst [vmem:[#allocation77_spill] sm:$0xff] %v6126_v11  ;;  %v1510_v42 = vmul.f32 %v4382_v46, %v7623_v31  ;;  %v1636_v51 = vmul.f32 %v4395_v62, %v7623_v31  ;;  %v6140_v53 = vadd.f32 %v5332_v40, %v1669_v3  ;;  %v1967_v49 = vsel %vm1767_vm6, %v6118_v10, 0.0 }
 0x226   :  { %v6145_v13 = vadd.f32 %v5332_v40, %v1695_v41  ;;  %v1697_v36 = vadd.f32 %v1635_v39, %v1571_v27  ;;  %v1968_v29 = vadd.f32 %v1967_v49, %v1966_v58  ;;  %v2021_v23 = vadd.f32 %v2020_v28, %v2019_v59  ;;  %v36_v59 = vld [vmem:[%s7323_s1 + $0x78] sm:$0xff] }
 0x227   :  { %v1446_v17 = vmul.f32 %v4391_v2, %v7619_v24  ;;  %v1511_v14 = vmul.f32 %v4382_v46, %v7625_v61  ;;  %v1573_v63 = vadd.f32 %v1509_v16, %v1444_v8  ;;  %v1637_v38 = vmul.f32 %v4395_v62, %v7625_v61  ;;  %v39_v46 = vld [vmem:[%s7323_s1 + $0x90] sm:$0xff]  ;;  %v38_v2 = vld [vmem:[%s7323_s1 + $0x88] sm:$0xff]  ;;  %v37_v16 = vld [vmem:[%s7323_s1 + $0x80] sm:$0xff] }
 0x228   :  { %7624 = vst [vmem:[#allocation39_spill] sm:$0xff] %v6145_v13  ;;  %v2024_v3 = vsel %vm1767_vm6, %v6126_v11, 0.0  ;;  %v2023_v37 = vadd.f32 %v2022_v52, %v2021_v23  ;;  %v6156_v41 = vadd.f32 %v5332_v40, %v1696_v18  ;;  %v1574_v27 = vadd.f32 %v1510_v42, %v1445_v35  ;;  %2073 = vmatpush.msrb.mxu1 %v39_v46  ;;  %v3968_v35 = vld [vmem:[%s7323_s1 + $0xe] ss:$0 sm:$0xff] }
 0x229   :  { %v1698_v39 = vadd.f32 %v1636_v51, %v1572_v5  ;;  %v1969_v28 = vsel %vm1767_vm6, %v6140_v53, 0.0  ;;  %v1575_v45 = vadd.f32 %v1511_v14, %v1446_v17  ;;  %v1699_v58 = vadd.f32 %v1637_v38, %v1573_v63 }
 0x22a   :  { %7626 = vst [vmem:[#allocation23_spill] sm:$0xff] %v6156_v41  ;;  %v1970_v62 = vadd.f32 %v1969_v28, %v1968_v29  ;;  %v2025_v24 = vadd.f32 %v2024_v3, %v2023_v37  ;;  %v6167_v52 = vadd.f32 %v5332_v40, %v1697_v36  ;;  %v2026_v8 = vsel %vm1767_vm6, %v6145_v13, 0.0  ;;  %2074 = vmatpush.msrb.mxu1 %v38_v2  ;;  %v35_v29 = vld [vmem:[%s7323_s1 + $0x70] sm:$0xff]  ;;  %v33_v37 = vld [vmem:[%s7323_s1 + $0x60] sm:$0xff]  ;;  %v32_v28 = vld [vmem:[%s7323_s1 + $0x58] sm:$0xff] }
 0x22b   :  { %v6177_v5 = vadd.f32 %v3968_v35, %v1698_v39  ;;  %v1700_v19 = vadd.f32 %v6056_v48, %v1574_v27  ;;  %v2028_v40 = vsel %vm1767_vm6, %v6156_v41, 0.0  ;;  %v1701_v51 = vadd.f32 %v6056_v48, %v1575_v45  ;;  %v34_v48 = vld [vmem:[%s7323_s1 + $0x68] sm:$0xff] }
 0x22c   :  { %7627 = vst [vmem:[#allocation73_spill] sm:$0xff] %v6167_v52  ;;  %v2027_v18 = vadd.f32 %v2026_v8, %v2025_v24  ;;  %v1971_v31 = vrot.slane %v1970_v62, 4  ;;  %2075 = vmatpush.msrb.mxu1 %v37_v16  ;;  %v6186_v49 = vadd.f32 %v3968_v35, %v1699_v58  ;;  %v2030_v36 = vsel %vm1767_vm6, %v6167_v52, 0.0  ;;  %v6217_v24 = vld [vmem:[%s7323_s1 + $0xd] ss:$0 sm:$0xff]  ;;  %v7658_v52 = vld [vmem:[#allocation17_spill] sm:$0xff] }
 0x22d   :  { %7628 = vst [vmem:[#allocation109_spill] sm:$0xff] %v6177_v5  ;;  %v6193_v17 = vadd.f32 %v3968_v35, %v1700_v19  ;;  %v2032_v61 = vsel %vm1767_vm6, %v6177_v5, 0.0  ;;  %v6200_v38 = vadd.f32 %v3968_v35, %v1701_v51  ;;  %v7632_v58 = vld [vmem:[#allocation82_spill] sm:$0xff]  ;;  %v7633_v35 = vld [vmem:[#allocation40_spill] sm:$0xff]  ;;  %v6332_v41 = vadd.f32 %v6217_v24, %v7658_v52 }
 0x22e   :  { %v2029_v42 = vadd.f32 %v2028_v40, %v2027_v18  ;;  %7629 = vst [vmem:[#allocation110_spill] sm:$0xff] %v6186_v49  ;;  %2076 = vmatpush.msrb.mxu1 %v36_v59  ;;  %v1972_v14 = vadd.f32 %v1971_v31, %v1970_v62  ;;  %v2034_v3 = vsel %vm1767_vm6, %v6186_v49, 0.0  ;;  %v6221_v8 = vadd.f32 %v6217_v24, %v7632_v58  ;;  %v7634_v40 = vld [vmem:[#allocation80_spill] sm:$0xff]  ;;  %v7648_v49 = vld [vmem:[#allocation11_spill] sm:$0xff] }
 0x22f   :  { %7630 = vst [vmem:[#allocation24_spill] sm:$0xff] %v6193_v17  ;;  %v2036_v39 = vsel %vm1767_vm6, %v6193_v17, 0.0  ;;  %v2038_v62 = vsel %vm1767_vm6, %v6200_v38, 0.0  ;;  %v6225_v19 = vadd.f32 %v6217_v24, %v7633_v35  ;;  %v6229_v59 = vadd.f32 %v6217_v24, %v7634_v40  ;;  %v7635_v31 = vld [vmem:[#allocation84_spill] sm:$0xff] }
 0x230   :  { %v2031_v23 = vadd.f32 %v2030_v36, %v2029_v42  ;;  %2077 = vmatpush.msrb.mxu1 %v35_v29  ;;  %7631 = vst [vmem:[#allocation35_spill] sm:$0xff] %v6200_v38  ;;  %v1973_v46 = vrot.slane %v1972_v14, 2  ;;  %v6233_v42 = vadd.f32 %v6217_v24, %v7635_v31  ;;  %v7636_v36 = vld [vmem:[#allocation5_spill] sm:$0xff]  ;;  %v7640_v35 = vld [vmem:[#allocation92_spill] sm:$0xff]  ;;  %v1779_v52 = vsel %vm1767_vm6, %v6332_v41, 0.0 }
 0x231   :  { %v6237_v29 = vadd.f32 %v6217_v24, %v7636_v36  ;;  %v6265_v40 = vadd.f32 %v6217_v24, %v7640_v35 }
 0x232   :  { %v2033_v63 = vadd.f32 %v2032_v61, %v2031_v23  ;;  %2078 = vmatpush.msrb.mxu1 %v34_v48  ;;  %v1974_v16 = vadd.f32 %v1973_v46, %v1972_v14  ;;  %v1838_v23 = vsel %vm1767_vm6, %v6221_v8, 0.0  ;;  %v7637_v61 = vld [vmem:[#allocation85_spill] sm:$0xff] }
 0x233   :  { %v6243_v48 = vadd.f32 %v6217_v24, %v7637_v61 }
 0x234   :  { %v2035_v27 = vadd.f32 %v2034_v3, %v2033_v63  ;;  %2079 = vmatpush.msrb.mxu1 %v33_v37  ;;  %v1975_v14 = vrot.slane %v1974_v16, 1  ;;  %v1768_v3 = vsel %vm1767_vm6, %v6225_v19, 0.0  ;;  %v1837_v37 = vsel %vm1767_vm6, %v6229_v59, 0.0 }
 0x235   :  { %v1839_v58 = vadd.f32 %v1838_v23, %v1837_v37  ;;  %v7643_v37 = vld [vmem:[#allocation9_spill] sm:$0xff] }
 0x236   :  { %v2037_v2 = vadd.f32 %v2036_v39, %v2035_v27  ;;  %2080 = vmatpush.msrb.mxu1 %v32_v28  ;;  %v1840_v27 = vsel %vm1767_vm6, %v6233_v42, 0.0  ;;  %v7638_v39 = vld [vmem:[#allocation87_spill] sm:$0xff]  ;;  %v1976_v31 = vadd.f32 %v1975_v14, %v1974_v16  ;;  %v6277_v17 = vadd.f32 %v6217_v24, %v7643_v37  ;;  %v7644_v14 = vld [vmem:[#allocation102_spill] sm:$0xff] }
 0x237   :  { %v6253_v28 = vadd.f32 %v6217_v24, %v7638_v39  ;;  %v1841_v39 = vadd.f32 %v1840_v27, %v1839_v58  ;;  %v1846_v16 = vsel %vm1767_vm6, %v6265_v40, 0.0 }
 0x238   :  { %v2039_v45 = vadd.f32 %v2038_v62, %v2037_v2  ;;  %v7639_v2 = vld [vmem:[#allocation7_spill] sm:$0xff]  ;;  %v2046_v27 = vmul.f32 0.00390625, %v1976_v31 }
 0x239   :  { %v6257_v62 = vadd.f32 %v6217_v24, %v7639_v2 }
 0x23a   :  { %v2040_v18 = vrot.slane %v2039_v45, 4 }
 0x23b   :  { %v1771_v23 = vsel %vm1767_vm6, %v6257_v62, 0.0 }
 0x23c   :  { %v2041_v51 = vadd.f32 %v2040_v18, %v2039_v45  ;;  %v1769_v45 = vsel %vm1767_vm6, %v6237_v29, 0.0  ;;  %v1842_v18 = vsel %vm1767_vm6, %v6243_v48, 0.0 }
 0x23d   :  { %v1770_v61 = vadd.f32 %v1769_v45, %v1768_v3  ;;  %v1843_v35 = vadd.f32 %v1842_v18, %v1841_v39  ;;  %v6283_v3 = vadd.f32 %v6217_v24, %v7644_v14  ;;  %v1773_v14 = vsel %vm1767_vm6, %v6277_v17, 0.0 }
 0x23e   :  { %v2042_v63 = vrot.slane %v2041_v51, 2 }
 0x23f   :  { %7645 = vst [vmem:[#allocation76_spill] sm:$0xff] %v6283_v3  ;;  %v1772_v58 = vadd.f32 %v1771_v23, %v1770_v61  ;;  %v1850_v31 = vsel %vm1767_vm6, %v6283_v3, 0.0  ;;  %v7649_v61 = vld [vmem:[#allocation108_spill] sm:$0xff] }
 0x240   :  { %v2043_v46 = vadd.f32 %v2042_v63, %v2041_v51  ;;  %v1844_v51 = vsel %vm1767_vm6, %v6253_v28, 0.0  ;;  %v7641_v63 = vld [vmem:[#allocation96_spill] sm:$0xff] }
 0x241   :  { %v6271_v2 = vadd.f32 %v6217_v24, %v7641_v63  ;;  %v7646_v63 = vld [vmem:[#allocation104_spill] sm:$0xff]  ;;  %v1774_v23 = vadd.f32 %v1773_v14, %v1772_v58  ;;  %v7654_v58 = vld [vmem:[#allocation114_spill] sm:$0xff] }
 0x242   :  { %v2044_v36 = vrot.slane %v2043_v46, 1  ;;  %v6289_v37 = vadd.f32 %v6217_v24, %v7646_v63  ;;  %v7653_v63 = vld [vmem:[#allocation14_spill] sm:$0xff] }
 0x243   :  { %7642 = vst [vmem:[#allocation16_spill] sm:$0xff] %v6271_v2 }
 0x244   :  { %v2045_v38 = vadd.f32 %v2044_v36, %v2043_v46  ;;  %v1845_v46 = vadd.f32 %v1844_v51, %v1843_v35  ;;  %v1848_v36 = vsel %vm1767_vm6, %v6271_v2, 0.0  ;;  %7647 = vst [vmem:[#allocation30_spill] sm:$0xff] %v6289_v37  ;;  %v6302_v51 = vadd.f32 %v6217_v24, %v7649_v61  ;;  %v7727_v2 = vld [vmem:[#allocation52_spill] sm:$0xff] }
 0x246   :  { %v2047_v45 = vmul.f32 0.00390625, %v2045_v38  ;;  %v1847_v39 = vadd.f32 %v1846_v16, %v1845_v46  ;;  %v6296_v38 = vadd.f32 %v6217_v24, %v7648_v49  ;;  %7650 = vst [vmem:[#allocation106_spill] sm:$0xff] %v6302_v51  ;;  %v1852_v16 = vsel %vm1767_vm6, %v6289_v37, 0.0 }
 0x247   :  { %v1854_v61 = vsel %vm1767_vm6, %v6302_v51, 0.0 }
 0x248   :  { %v2055_v18 = vsel %vm2050_vm7, %v2047_v45, %v2046_v27  ;;  %v1849_v35 = vadd.f32 %v1848_v36, %v1847_v39  ;;  %v7651_v27 = vld [vmem:[#allocation112_spill] sm:$0xff]  ;;  %v1775_v49 = vsel %vm1767_vm6, %v6296_v38, 0.0  ;;  %v6320_v36 = vadd.f32 %v6217_v24, %v7654_v58 }
 0x249   :  { %2056 = vrot.lane.b32.xlu0 %v2055_v18, %s3996_s11  ;;  %v6308_v45 = vadd.f32 %v6217_v24, %v7651_v27  ;;  %v6314_v18 = vadd.f32 %v6217_v24, %v7653_v63  ;;  %v1776_v39 = vadd.f32 %v1775_v49, %v1774_v23  ;;  %v6338_v23 = vadd.f32 %v6217_v24, %v5879_v0 }
 0x24a   :  { %v1851_v46 = vadd.f32 %v1850_v31, %v1849_v35  ;;  %7655 = vst [vmem:[#allocation33_spill] sm:$0xff] %v6320_v36  ;;  %v7656_v31 = vld [vmem:[#allocation116_spill] sm:$0xff]  ;;  %v1858_v58 = vsel %vm1767_vm6, %v6320_v36, 0.0  ;;  %v6592_v36 = vadd.f32 %v6217_v24, %v7720_v25 }
 0x24b   :  { %7652 = vst [vmem:[#allocation107_spill] sm:$0xff] %v6308_v45  ;;  %v1856_v27 = vsel %vm1767_vm6, %v6308_v45, 0.0  ;;  %v6326_v35 = vadd.f32 %v6217_v24, %v7656_v31  ;;  %v1777_v63 = vsel %vm1767_vm6, %v6314_v18, 0.0  ;;  %v7661_v31 = vld [vmem:[#allocation20_spill] sm:$0xff]  ;;  %v1862_v0 = vsel %vm1767_vm6, %v6338_v23, 0.0 }
 0x24c   :  { %v1853_v14 = vadd.f32 %v1852_v16, %v1851_v46  ;;  %7659 = vst [vmem:[#allocation82_spill] sm:$0xff] %v6338_v23  ;;  %v1778_v16 = vadd.f32 %v1777_v63, %v1776_v39  ;;  %v6350_v13 = vadd.f32 %v6217_v24, %v7661_v31  ;;  %v6362_v63 = vadd.f32 %v6217_v24, %v6009_v12  ;;  %v7665_v31 = vld [vmem:[#allocation22_spill] sm:$0xff]  ;;  %v7706_v23 = vld [vmem:[#allocation63_spill] sm:$0xff] }
 0x24d   :  { %7657 = vst [vmem:[#allocation37_spill] sm:$0xff] %v6326_v35  ;;  %v1860_v49 = vsel %vm1767_vm6, %v6326_v35, 0.0  ;;  %v6368_v11 = vadd.f32 %v6217_v24, %v7665_v31  ;;  %v6556_v35 = vadd.f32 %v6217_v24, %v7713_v22 }
 0x24e   :  { %v1855_v5 = vadd.f32 %v1854_v61, %v1853_v14  ;;  %v6344_v61 = vadd.f32 %v6217_v24, %v5915_v55  ;;  %7662 = vst [vmem:[#allocation80_spill] sm:$0xff] %v6350_v13  ;;  %v1780_v39 = vadd.f32 %v1779_v52, %v1778_v16  ;;  %v1868_v12 = vsel %vm1767_vm6, %v6362_v63, 0.0 }
 0x24f   :  { %7664 = vst [vmem:[#allocation5_spill] sm:$0xff] %v6362_v63 }
 0x250   :  { %v1857_v46 = vadd.f32 %v1856_v27, %v1855_v5  ;;  %7660 = vst [vmem:[#allocation40_spill] sm:$0xff] %v6344_v61  ;;  %v6356_v5 = vadd.f32 %v6217_v24, %v5965_v57  ;;  %v1864_v55 = vsel %vm1767_vm6, %v6344_v61, 0.0 }
 0x251   :  { %7666 = vst [vmem:[#allocation85_spill] sm:$0xff] %v6368_v11 }
 0x252   :  { %v1859_v14 = vadd.f32 %v1858_v58, %v1857_v46  ;;  %7663 = vst [vmem:[#allocation84_spill] sm:$0xff] %v6356_v5  ;;  %v1781_v46 = vsel %vm1767_vm6, %v6350_v13, 0.0  ;;  %v1866_v57 = vsel %vm1767_vm6, %v6356_v5, 0.0  ;;  %v7698_v5 = vld [vmem:[#allocation53_spill] sm:$0xff] }
 0x253   :  { %v1782_v16 = vadd.f32 %v1781_v46, %v1780_v39  ;;  %v6386_v39 = vadd.f32 %v6217_v24, %v6021_v34  ;;  %v7726_v13 = vld [vmem:[#allocation89_spill] sm:$0xff] }
 0x254   :  { %v1861_v27 = vadd.f32 %v1860_v49, %v1859_v14  ;;  %v6374_v14 = vadd.f32 %v6217_v24, %v6013_v50 }
 0x255   :  { %7670 = vst [vmem:[#allocation92_spill] sm:$0xff] %v6386_v39 }
 0x256   :  { %v1863_v58 = vadd.f32 %v1862_v0, %v1861_v27  ;;  %7667 = vst [vmem:[#allocation87_spill] sm:$0xff] %v6374_v14  ;;  %v1783_v0 = vsel %vm1767_vm6, %v6368_v11, 0.0  ;;  %v7668_v27 = vld [vmem:[#allocation27_spill] sm:$0xff]  ;;  %v1870_v50 = vsel %vm1767_vm6, %v6374_v14, 0.0 }
 0x257   :  { %v6382_v31 = vadd.f32 %v6217_v24, %v7668_v27  ;;  %v1784_v21 = vadd.f32 %v1783_v0, %v1782_v16  ;;  %v1872_v16 = vsel %vm1767_vm6, %v6386_v39, 0.0  ;;  %v7675_v0 = vld [vmem:[#allocation34_spill] sm:$0xff] }
 0x258   :  { %v1865_v49 = vadd.f32 %v1864_v55, %v1863_v58  ;;  %v7671_v58 = vld [vmem:[#allocation32_spill] sm:$0xff]  ;;  %v6406_v27 = vadd.f32 %v6217_v24, %v7675_v0  ;;  %v7683_v0 = vld [vmem:[#allocation42_spill] sm:$0xff]  ;;  %7714 = vst [vmem:[#allocation34_spill] sm:$0xff] %v6556_v35 }
 0x259   :  { %7669 = vst [vmem:[#allocation7_spill] sm:$0xff] %v6382_v31  ;;  %v1785_v55 = vsel %vm1767_vm6, %v6382_v31, 0.0  ;;  %v6394_v46 = vadd.f32 %v6217_v24, %v7671_v58  ;;  %v7679_v58 = vld [vmem:[#allocation38_spill] sm:$0xff] }
 0x25a   :  { %v1867_v52 = vadd.f32 %v1866_v57, %v1865_v49  ;;  %v1786_v57 = vadd.f32 %v1785_v55, %v1784_v21  ;;  %7676 = vst [vmem:[#allocation102_spill] sm:$0xff] %v6406_v27  ;;  %v1789_v55 = vsel %vm1767_vm6, %v6406_v27, 0.0  ;;  %v27_v27 = vld [vmem:[%s7323_s1 + $0x30] sm:$0xff] }
 0x25b   :  { %7672 = vst [vmem:[#allocation96_spill] sm:$0xff] %v6394_v46  ;;  %v1787_v34 = vsel %vm1767_vm6, %v6394_v46, 0.0  ;;  %2102 = vmatpush.msra.mxu2 %v27_v27 }
 0x25c   :  { %v1869_v33 = vadd.f32 %v1868_v12, %v1867_v52  ;;  %v7673_v12 = vld [vmem:[#allocation6_spill] sm:$0xff]  ;;  %v1788_v43 = vadd.f32 %v1787_v34, %v1786_v57  ;;  %7721 = vst [vmem:[#allocation38_spill] sm:$0xff] %v6592_v36 }
 0x25d   :  { %v6400_v52 = vadd.f32 %v6217_v24, %v7673_v12  ;;  %v6418_v12 = vadd.f32 %v6217_v24, %v7679_v58  ;;  %v7687_v58 = vld [vmem:[#allocation44_spill] sm:$0xff] }
 0x25e   :  { %v1871_v49 = vadd.f32 %v1870_v50, %v1869_v33  ;;  %v7677_v33 = vld [vmem:[#allocation8_spill] sm:$0xff]  ;;  %v1790_v39 = vadd.f32 %v1789_v55, %v1788_v43 }
 0x25f   :  { %7674 = vst [vmem:[#allocation9_spill] sm:$0xff] %v6400_v52  ;;  %v1874_v21 = vsel %vm1767_vm6, %v6400_v52, 0.0  ;;  %v6412_v50 = vadd.f32 %v6217_v24, %v7677_v33  ;;  %v1791_v34 = vsel %vm1767_vm6, %v6418_v12, 0.0  ;;  %v6430_v33 = vadd.f32 %v6217_v24, %v7683_v0  ;;  %v7691_v0 = vld [vmem:[#allocation46_spill] sm:$0xff] }
 0x260   :  { %v1873_v9 = vadd.f32 %v1872_v16, %v1871_v49  ;;  %7680 = vst [vmem:[#allocation11_spill] sm:$0xff] %v6418_v12  ;;  %v7681_v49 = vld [vmem:[#allocation10_spill] sm:$0xff]  ;;  %v1792_v52 = vadd.f32 %v1791_v34, %v1790_v39  ;;  %v6574_v12 = vadd.f32 %v6217_v24, %v6110_v54 }
 0x261   :  { %7678 = vst [vmem:[#allocation104_spill] sm:$0xff] %v6412_v50  ;;  %v1876_v57 = vsel %vm1767_vm6, %v6412_v50, 0.0  ;;  %v6424_v16 = vadd.f32 %v6217_v24, %v7681_v49  ;;  %v1793_v55 = vsel %vm1767_vm6, %v6430_v33, 0.0  ;;  %v6442_v49 = vadd.f32 %v6217_v24, %v7687_v58  ;;  %v7693_v58 = vld [vmem:[#allocation47_spill] sm:$0xff] }
 0x262   :  { %v1875_v14 = vadd.f32 %v1874_v21, %v1873_v9  ;;  %7684 = vst [vmem:[#allocation112_spill] sm:$0xff] %v6430_v33  ;;  %v7685_v9 = vld [vmem:[#allocation12_spill] sm:$0xff]  ;;  %v1794_v50 = vadd.f32 %v1793_v55, %v1792_v52  ;;  %v6458_v52 = vadd.f32 %v6217_v24, %v7693_v58  ;;  %v7709_v33 = vld [vmem:[#allocation66_spill] sm:$0xff] }
 0x263   :  { %7682 = vst [vmem:[#allocation108_spill] sm:$0xff] %v6424_v16  ;;  %v1878_v43 = vsel %vm1767_vm6, %v6424_v16, 0.0  ;;  %v6436_v21 = vadd.f32 %v6217_v24, %v7685_v9  ;;  %v1795_v34 = vsel %vm1767_vm6, %v6442_v49, 0.0  ;;  %v6454_v9 = vadd.f32 %v6217_v24, %v7691_v0 }
 0x264   :  { %v1877_v26 = vadd.f32 %v1876_v57, %v1875_v14  ;;  %7688 = vst [vmem:[#allocation114_spill] sm:$0xff] %v6442_v49  ;;  %v7689_v14 = vld [vmem:[#allocation15_spill] sm:$0xff]  ;;  %v1796_v16 = vadd.f32 %v1795_v34, %v1794_v50  ;;  %v7697_v34 = vld [vmem:[#allocation50_spill] sm:$0xff]  ;;  %v7702_v49 = vld [vmem:[#allocation57_spill] sm:$0xff] }
 0x265   :  { %7686 = vst [vmem:[#allocation14_spill] sm:$0xff] %v6436_v21  ;;  %v1880_v39 = vsel %vm1767_vm6, %v6436_v21, 0.0  ;;  %v6448_v57 = vadd.f32 %v6217_v24, %v7689_v14  ;;  %v1797_v55 = vsel %vm1767_vm6, %v6454_v9, 0.0  ;;  %v7696_v14 = vld [vmem:[#allocation49_spill] sm:$0xff]  ;;  %v6476_v58 = vadd.f32 %v6217_v24, %v7697_v34  ;;  %v7701_v34 = vld [vmem:[#allocation55_spill] sm:$0xff] }
 0x266   :  { %v1879_v63 = vadd.f32 %v1878_v43, %v1877_v26  ;;  %7692 = vst [vmem:[#allocation17_spill] sm:$0xff] %v6454_v9  ;;  %v7694_v26 = vld [vmem:[#allocation18_spill] sm:$0xff]  ;;  %v6468_v21 = vadd.f32 %v6217_v24, %v7696_v14  ;;  %v1798_v50 = vadd.f32 %v1797_v55, %v1796_v16  ;;  %v6482_v9 = vadd.f32 %v6217_v24, %v7698_v5  ;;  %v7699_v14 = vld [vmem:[#allocation21_spill] sm:$0xff] }
 0x267   :  { %7690 = vst [vmem:[#allocation116_spill] sm:$0xff] %v6448_v57  ;;  %v6462_v43 = vadd.f32 %v6217_v24, %v7694_v26  ;;  %v1882_v0 = vsel %vm1767_vm6, %v6448_v57, 0.0  ;;  %v6486_v1 = vadd.f32 %v6217_v24, %v7699_v14  ;;  %v6494_v57 = vadd.f32 %v6217_v24, %v7701_v34 }
 0x268   :  { %v1881_v32 = vadd.f32 %v1880_v39, %v1879_v63  ;;  %v1799_v39 = vsel %vm1767_vm6, %v6458_v52, 0.0  ;;  %v1801_v26 = vsel %vm1767_vm6, %v6468_v21, 0.0  ;;  %v1805_v5 = vsel %vm1767_vm6, %v6482_v9, 0.0  ;;  %7717 = vst [vmem:[#allocation8_spill] sm:$0xff] %v6574_v12 }
 0x269   :  { %7695 = vst [vmem:[#allocation20_spill] sm:$0xff] %v6462_v43  ;;  %v1800_v16 = vadd.f32 %v1799_v39, %v1798_v50  ;;  %v6500_v14 = vadd.f32 %v6217_v24, %v7702_v49  ;;  %v1886_v50 = vsel %vm1767_vm6, %v6486_v1, 0.0 }
 0x26a   :  { %v1883_v63 = vadd.f32 %v1882_v0, %v1881_v32  ;;  %7700 = vst [vmem:[#allocation22_spill] sm:$0xff] %v6486_v1  ;;  %v1884_v32 = vsel %vm1767_vm6, %v6462_v43, 0.0  ;;  %v1803_v0 = vsel %vm1767_vm6, %v6476_v58, 0.0  ;;  %v6504_v43 = vadd.f32 %v6217_v24, %v7703_v20 }
 0x26b   :  { %v1802_v61 = vadd.f32 %v1801_v26, %v1800_v16  ;;  %v7705_v26 = vld [vmem:[#allocation60_spill] sm:$0xff]  ;;  %v1809_v49 = vsel %vm1767_vm6, %v6500_v14, 0.0  ;;  %v6518_v20 = vadd.f32 %v6217_v24, %v7706_v23  ;;  %v6522_v1 = vadd.f32 %v6217_v24, %v5973_v15 }
 0x26c   :  { %v1885_v55 = vadd.f32 %v1884_v32, %v1883_v63  ;;  %7704 = vst [vmem:[#allocation27_spill] sm:$0xff] %v6504_v43  ;;  %v1807_v32 = vsel %vm1767_vm6, %v6494_v57, 0.0  ;;  %v6512_v16 = vadd.f32 %v6217_v24, %v7705_v26  ;;  %v6534_v23 = vadd.f32 %v6217_v24, %v7709_v33 }
 0x26d   :  { %v1804_v63 = vadd.f32 %v1803_v0, %v1802_v61  ;;  %7707 = vst [vmem:[#allocation32_spill] sm:$0xff] %v6522_v1  ;;  %v1888_v61 = vsel %vm1767_vm6, %v6504_v43, 0.0  ;;  %v6538_v15 = vadd.f32 %v6217_v24, %v6033_v4  ;;  %v7711_v43 = vld [vmem:[#allocation68_spill] sm:$0xff] }
 0x26e   :  { %v1887_v39 = vadd.f32 %v1886_v50, %v1885_v55  ;;  %v1811_v50 = vsel %vm1767_vm6, %v6512_v16, 0.0 }
 0x26f   :  { %v1806_v34 = vadd.f32 %v1805_v5, %v1804_v63  ;;  %v7708_v5 = vld [vmem:[#allocation64_spill] sm:$0xff]  ;;  %7710 = vst [vmem:[#allocation6_spill] sm:$0xff] %v6538_v15 }
 0x270   :  { %v1889_v0 = vadd.f32 %v1888_v61, %v1887_v39  ;;  %v6530_v63 = vadd.f32 %v6217_v24, %v7708_v5  ;;  %v1890_v39 = vsel %vm1767_vm6, %v6522_v1, 0.0  ;;  %v6546_v5 = vadd.f32 %v6217_v24, %v7711_v43 }
 0x271   :  { %v1808_v55 = vadd.f32 %v1807_v32, %v1806_v34  ;;  %v1813_v32 = vsel %vm1767_vm6, %v6518_v20, 0.0 }
 0x272   :  { %v1891_v61 = vadd.f32 %v1890_v39, %v1889_v0  ;;  %v1815_v33 = vsel %vm1767_vm6, %v6530_v63, 0.0  ;;  %v1892_v0 = vsel %vm1767_vm6, %v6538_v15, 0.0  ;;  %v7715_v39 = vld [vmem:[#allocation72_spill] sm:$0xff] }
 0x273   :  { %v1810_v26 = vadd.f32 %v1809_v49, %v1808_v55  ;;  %v7712_v55 = vld [vmem:[#allocation70_spill] sm:$0xff]  ;;  %v6564_v1 = vadd.f32 %v6217_v24, %v7715_v39 }
 0x274   :  { %v6552_v4 = vadd.f32 %v6217_v24, %v7712_v55  ;;  %v7716_v55 = vld [vmem:[#allocation75_spill] sm:$0xff]  ;;  %v7718_v39 = vld [vmem:[#allocation78_spill] sm:$0xff] }
 0x275   :  { %v1812_v34 = vadd.f32 %v1811_v50, %v1810_v26  ;;  %v1817_v50 = vsel %vm1767_vm6, %v6534_v23, 0.0  ;;  %v1893_v26 = vadd.f32 %v1892_v0, %v1891_v61  ;;  %v6570_v22 = vadd.f32 %v6217_v24, %v7716_v55  ;;  %v7719_v55 = vld [vmem:[#allocation79_spill] sm:$0xff] }
 0x276   :  { %v1894_v61 = vsel %vm1767_vm6, %v6556_v35, 0.0  ;;  %v6582_v15 = vadd.f32 %v6217_v24, %v7718_v39  ;;  %v6588_v54 = vadd.f32 %v6217_v24, %v7719_v55  ;;  %v1898_v55 = vsel %vm1767_vm6, %v6592_v36, 0.0 }
 0x277   :  { %v1814_v49 = vadd.f32 %v1813_v32, %v1812_v34  ;;  %v1819_v32 = vsel %vm1767_vm6, %v6546_v5, 0.0  ;;  %v1895_v0 = vadd.f32 %v1894_v61, %v1893_v26  ;;  %v1896_v26 = vsel %vm1767_vm6, %v6574_v12, 0.0 }
 0x278   :  { %v1827_v39 = vsel %vm1767_vm6, %v6582_v15, 0.0 }
 0x279   :  { %v1816_v43 = vadd.f32 %v1815_v33, %v1814_v49  ;;  %v1821_v33 = vsel %vm1767_vm6, %v6552_v4, 0.0  ;;  %v1897_v61 = vadd.f32 %v1896_v26, %v1895_v0  ;;  %v31_v0 = vld [vmem:[%s7323_s1 + $0x50] sm:$0xff] }
 0x27a   :  { %2134 = vmatpush.msra.mxu3 %v31_v0 }
 0x27b   :  { %v1818_v34 = vadd.f32 %v1817_v50, %v1816_v43  ;;  %v1823_v50 = vsel %vm1767_vm6, %v6564_v1, 0.0  ;;  %v1899_v24 = vadd.f32 %v1898_v55, %v1897_v61 }
 0x27d   :  { %v1820_v49 = vadd.f32 %v1819_v32, %v1818_v34  ;;  %v1825_v32 = vsel %vm1767_vm6, %v6570_v22, 0.0 }
 0x27f   :  { %v1822_v43 = vadd.f32 %v1821_v33, %v1820_v49  ;;  %v1829_v49 = vsel %vm1767_vm6, %v6588_v54, 0.0 }
 0x281   :  { %v1824_v34 = vadd.f32 %v1823_v50, %v1822_v43  ;;  %v1900_v50 = vrot.slane %v1899_v24, 4 }
 0x283   :  { %v1826_v33 = vadd.f32 %v1825_v32, %v1824_v34  ;;  %v1901_v32 = vadd.f32 %v1900_v50, %v1899_v24  ;;  %v3960_v24 = vld [vmem:[%s7323_s1 + $0xf] ss:$0 sm:$0xff] }
 0x285   :  { %v1828_v25 = vadd.f32 %v1827_v39, %v1826_v33  ;;  %v1902_v34 = vrot.slane %v1901_v32, 2 }
 0x287   :  { %v1830_v35 = vadd.f32 %v1829_v49, %v1828_v25  ;;  %v1903_v36 = vadd.f32 %v1902_v34, %v1901_v32  ;;  %v3997_v32 = vmov 6.0   ;;  %v43_v34 = vld [vmem:[%s7324_s2 + $0x18] sm:$0xff] }
 0x288   :  { %3964 = vrcp.f32 %v3997_v32 }
 0x289   :  { %v1831_v43 = vrot.slane %v1830_v35, 4  ;;  %v1904_v61 = vrot.slane %v1903_v36, 1 }
 0x28b   :  { %v1832_v26 = vadd.f32 %v1831_v43, %v1830_v35  ;;  %v1905_v49 = vadd.f32 %v1904_v61, %v1903_v36  ;;  %v26_v35 = vld [vmem:[%s7323_s1 + $0x28] sm:$0xff]  ;;  %v25_v36 = vld [vmem:[%s7323_s1 + $0x20] sm:$0xff]  ;;  %v42_v61 = vld [vmem:[%s7324_s2 + $0x10] sm:$0xff] }
 0x28c   :  { %2103 = vmatpush.msra.mxu2 %v26_v35 }
 0x28d   :  { %v1833_v12 = vrot.slane %v1832_v26, 2  ;;  %v1907_v25 = vmul.f32 0.00390625, %v1905_v49  ;;  %v41_v49 = vld [vmem:[%s7324_s2 + $0x8] sm:$0xff] }
 0x28e   :  { %2104 = vmatpush.msra.mxu2 %v25_v36  ;;  %v3961_v36 = vld [vmem:[%s7323_s1 + $0x10] ss:$0 sm:$0xff] }
 0x28f   :  { %v1834_v39 = vadd.f32 %v1833_v12, %v1832_v26  ;;  %v30_v12 = vld [vmem:[%s7323_s1 + $0x48] sm:$0xff]  ;;  %v47_v26 = vld [vmem:[%s7324_s2 + $0x38] sm:$0xff] }
 0x290   :  { %2135 = vmatpush.msra.mxu3 %v30_v12  ;;  %3002 = vmatpush.msra.mxu1 %v47_v26 }
 0x291   :  { %v1835_v33 = vrot.slane %v1834_v39, 1 }
 0x293   :  { %v1836_v55 = vadd.f32 %v1835_v33, %v1834_v39  ;;  %v46_v39 = vld [vmem:[%s7324_s2 + $0x30] sm:$0xff]  ;;  %v45_v33 = vld [vmem:[%s7324_s2 + $0x28] sm:$0xff] }
 0x294   :  { %3003 = vmatpush.msra.mxu1 %v46_v39 }
 0x295   :  { %v1906_v45 = vmul.f32 0.00390625, %v1836_v55  ;;  %v44_v55 = vld [vmem:[%s7324_s2 + $0x20] sm:$0xff] }
 0x296   :  { %3004 = vmatpush.msra.mxu1 %v45_v33 }
 0x297   :  { %v2051_v46 = vsel %vm2050_vm7, %v1907_v25, %v1906_v45  ;;  %v29_v45 = vld [vmem:[%s7323_s1 + $0x40] sm:$0xff] }
 0x298   :  { %2136 = vmatpush.msra.mxu3 %v29_v45  ;;  %v40_v25 = vld [vmem:[%s7324_s2] sm:$0xff]  ;;  %3005 = vmatpush.msra.mxu1 %v44_v55  ;;  %v3962_v45 = vld [vmem:[%s7323_s1 + $0x11] ss:$0 sm:$0xff] }
 0x2bb   :  { %v2057_v51 = vpop.permute.xlu0 %2056 }
 0x2bc   :  { %v2059_v27 = vsel %vm1767_vm6, %v2051_v46, %v2057_v51  ;;  %v24_v51 = vld [vmem:[%s7323_s1 + $0x18] sm:$0xff] }
 0x2bd   :  { %3812 = vmatmul.msk.f32.vlgmr.msrb.gmra.mxu1 %vm2061_vm8, %v2059_v27  ;;  %v28_v46 = vld [vmem:[%s7323_s1 + $0x38] sm:$0xff]  ;;  %2105 = vmatpush.msra.mxu2 %v24_v51  ;;  %v3965_v27 = vpop.eup %3964 }
 0x2be   :  { %2137 = vmatpush.msra.mxu3 %v28_v46  ;;  %v2114_v35 = vmul.f32 6.0, %v3965_v27  ;;  %3403 = vmatpush.msrb.mxu1 %v43_v34  ;;  %vm2118_vm9 = vweird.f32 %v3965_v27 }
 0x2bf   :  { %3944 = vmatpush.msrb.mxu2 %v47_v26 }
 0x2c0   :  { %3948 = vmatpush.msrb.mxu3 %v43_v34  ;;  %3404 = vmatpush.msrb.mxu1 %v42_v61  ;;  %v2115_v12 = vsub.f32 1.0, %v2114_v35 }
 0x2c1   :  { %3945 = vmatpush.msrb.mxu2 %v46_v39 }
 0x2c2   :  { %3949 = vmatpush.msrb.mxu3 %v42_v61  ;;  %3405 = vmatpush.msrb.mxu1 %v41_v49  ;;  %v2116_v51 = vmul.f32 %v3965_v27, %v2115_v12 }
 0x2c3   :  { %3946 = vmatpush.msrb.mxu2 %v45_v33 }
 0x2c4   :  { %3950 = vmatpush.msrb.mxu3 %v41_v49  ;;  %3406 = vmatpush.msrb.mxu1 %v40_v25 }
 0x2c5   :  { %3947 = vmatpush.msrb.mxu2 %v44_v55 }
 0x2c6   :  { %3951 = vmatpush.msrb.mxu3 %v40_v25 }
 0x33a   :  { %v2082_v0 = vpop.f32.mrf.mxu1 }
 0x33b   :  { %v2083_v50 = vadd.f32 %v3960_v24, %v2082_v0 }
 0x33d   :  { %v2085_v43 = vmax.f32 %v2083_v50, 0.0 }
 0x33f   :  { %3813 = vmatmul.msk.f32.vlgmr.msra.gmra.mxu2 %vm1767_vm6, %v2085_v43  ;;  %3814 = vmatmul.msk.f32.vlgmr.msra.gmra.mxu3 %vm1767_vm6, %v2085_v43  ;;  %v2117_v43 = vadd.f32 %v3965_v27, %v2116_v51  ;;  %v7723_v51 = vld [vmem:[#allocation13_spill] sm:$0xff] }
 0x341   :  { %v6665_v61 = vsel %vm2118_vm9, %v3965_v27, %v2117_v43 }
 0x3c2   :  { %v2107_v46 = vpop.f32.mrf.mxu2  ;;  %v2139_v24 = vpop.f32.mrf.mxu3 }
 0x3c3   :  { %v2108_v0 = vadd.f32 %v3961_v36, %v2107_v46  ;;  %v2140_v50 = vadd.f32 %v3962_v45, %v2139_v24  ;;  %v7722_v36 = vld [vmem:[#allocation88_spill] sm:$0xff]  ;;  %v7724_v24 = vld [vmem:[#allocation86_spill] sm:$0xff] }
 0x3c5   :  { %v2110_v32 = vadd.f32 3.0, %v2108_v0  ;;  %v2142_v26 = vadd.f32 3.0, %v2140_v50  ;;  %v7725_v50 = vld [vmem:[#allocation51_spill] sm:$0xff] }
 0x3c7   :  { %v2111_v34 = vmax.f32 %v2110_v32, 0.0  ;;  %v2143_v39 = vmax.f32 %v2142_v26, 0.0 }
 0x3c9   :  { %v2112_v33 = vmin.f32 %v2111_v34, 6.0  ;;  %v2144_v49 = vmin.f32 %v2143_v39, 6.0 }
 0x3cb   :  { %v6668_v55 = vmul.f32 %v6665_v61, %v2112_v33  ;;  %v6671_v25 = vmul.f32 %v2144_v49, %v6665_v61 }
 0x3cd   :  { %v6674_v35 = vperm.slane %v6668_v55, 0  ;;  %v6677_v12 = vperm.slane %v6671_v25, 0 }
 0x3cf   :  { %v2478_v45 = vmul.f32 %v6677_v12, %v7722_v36  ;;  %v2494_v27 = vmul.f32 %v6677_v12, %v7723_v51  ;;  %v2168_v46 = vmul.f32 %v6674_v35, %v6458_v52  ;;  %v2479_v0 = vmul.f32 %v6677_v12, %v7724_v24 }
 0x3d0   :  { %v2495_v43 = vmul.f32 %v6677_v12, %v7725_v50  ;;  %v2169_v32 = vmul.f32 %v6674_v35, %v6468_v21  ;;  %v2480_v24 = vmul.f32 %v6677_v12, %v7726_v13  ;;  %v2496_v50 = vmul.f32 %v6677_v12, %v7727_v2 }
 0x3d1   :  { %v2542_v26 = vadd.f32 3.0, %v2478_v45  ;;  %v2558_v34 = vadd.f32 3.0, %v2494_v27  ;;  %v2232_v39 = vadd.f32 3.0, %v2168_v46  ;;  %v2543_v36 = vadd.f32 3.0, %v2479_v0 }
 0x3d2   :  { %v2559_v31 = vadd.f32 3.0, %v2495_v43  ;;  %v2233_v37 = vadd.f32 3.0, %v2169_v32  ;;  %v2170_v32 = vmul.f32 %v6674_v35, %v6476_v58  ;;  %v2544_v13 = vadd.f32 3.0, %v2480_v24 }
 0x3d3   :  { %v2606_v33 = vmax.f32 %v2542_v26, 0.0  ;;  %v2622_v49 = vmax.f32 %v2558_v34, 0.0  ;;  %v2296_v51 = vmax.f32 %v2232_v39, 0.0  ;;  %v2607_v27 = vmax.f32 %v2543_v36, 0.0 }
 0x3d4   :  { %v2623_v46 = vmax.f32 %v2559_v31, 0.0  ;;  %v2297_v43 = vmax.f32 %v2233_v37, 0.0  ;;  %v2560_v2 = vadd.f32 3.0, %v2496_v50  ;;  %v2234_v39 = vadd.f32 3.0, %v2170_v32 }
 0x3d5   :  { %v2670_v11 = vmin.f32 %v2606_v33, 6.0  ;;  %v2686_v52 = vmin.f32 %v2622_v49, 6.0  ;;  %v2360_v3 = vmin.f32 %v2296_v51, 6.0  ;;  %v2671_v26 = vmin.f32 %v2607_v27, 6.0  ;;  %v7728_v49 = vld [vmem:[#allocation90_spill] sm:$0xff] }
 0x3d6   :  { %v2361_v34 = vmin.f32 %v2297_v43, 6.0  ;;  %v2608_v33 = vmax.f32 %v2544_v13, 0.0  ;;  %v2624_v31 = vmax.f32 %v2560_v2, 0.0  ;;  %v2481_v36 = vmul.f32 %v6677_v12, %v7728_v49  ;;  %v7729_v51 = vld [vmem:[#allocation54_spill] sm:$0xff]  ;;  %v7730_v13 = vld [vmem:[#allocation91_spill] sm:$0xff] }
 0x3d7   :  { %v2734_v21 = vmul.f32 %v2670_v11, %v6665_v61  ;;  %v2750_v45 = vmul.f32 %v2686_v52, %v6665_v61  ;;  %v2424_v0 = vmul.f32 %v2360_v3, %v6665_v61  ;;  %v2687_v11 = vmin.f32 %v2623_v46, 6.0 }
 0x3d8   :  { %v2735_v3 = vmul.f32 %v2671_v26, %v6665_v61  ;;  %v2497_v58 = vmul.f32 %v6677_v12, %v7729_v51  ;;  %v2425_v52 = vmul.f32 %v2361_v34, %v6665_v61  ;;  %v2298_v24 = vmax.f32 %v2234_v39, 0.0  ;;  %v7731_v34 = vld [vmem:[#allocation56_spill] sm:$0xff] }
 0x3d9   :  { %3815 = vmatmul.msk.f32.vlgmr.msra.gmra.mxu1 %vm1767_vm6, %v2734_v21  ;;  %3831 = vmatmul.msk.f32.vlgmr.msrb.gmra.mxu2 %vm1767_vm6, %v2750_v45  ;;  %v2751_v37 = vmul.f32 %v2687_v11, %v6665_v61  ;;  %v2171_v50 = vmul.f32 %v6674_v35, %v6482_v9  ;;  %v2672_v21 = vmin.f32 %v2608_v33, 6.0  ;;  %v2688_v45 = vmin.f32 %v2624_v31, 6.0 }
 0x3da   :  { %3895 = vmatmul.msk.f32.vlgmr.msrb.gmra.mxu3 %vm1767_vm6, %v2424_v0  ;;  %v2545_v27 = vadd.f32 3.0, %v2481_v36  ;;  %v2561_v46 = vadd.f32 3.0, %v2497_v58  ;;  %v2362_v0 = vmin.f32 %v2298_v24, 6.0  ;;  %v2482_v2 = vmul.f32 %v6677_v12, %v7730_v13 }
 0x3db   :  { %v2235_v43 = vadd.f32 3.0, %v2171_v50  ;;  %v2736_v32 = vmul.f32 %v2672_v21, %v6665_v61  ;;  %v2752_v26 = vmul.f32 %v2688_v45, %v6665_v61  ;;  %v2498_v39 = vmul.f32 %v6677_v12, %v7731_v34  ;;  %v7732_v50 = vld [vmem:[#allocation93_spill] sm:$0xff] }
 0x3dc   :  { %v2609_v9 = vmax.f32 %v2545_v27, 0.0  ;;  %v2625_v11 = vmax.f32 %v2561_v46, 0.0  ;;  %v2172_v31 = vmul.f32 %v6674_v35, %v6494_v57  ;;  %v2483_v21 = vmul.f32 %v6677_v12, %v7732_v50  ;;  %v7733_v46 = vld [vmem:[#allocation59_spill] sm:$0xff] }
 0x3dd   :  { %v2299_v33 = vmax.f32 %v2235_v43, 0.0  ;;  %v2562_v51 = vadd.f32 3.0, %v2498_v39  ;;  %v2173_v13 = vmul.f32 %v6674_v35, %v6500_v14 }
 0x3de   :  { %v2673_v49 = vmin.f32 %v2609_v9, 6.0  ;;  %v2689_v36 = vmin.f32 %v2625_v11, 6.0 }
 0x3df   :  { %v2363_v58 = vmin.f32 %v2299_v33, 6.0  ;;  %v2626_v27 = vmax.f32 %v2562_v51, 0.0  ;;  %v2237_v39 = vadd.f32 3.0, %v2173_v13 }
 0x3e0   :  { %v2737_v45 = vmul.f32 %v2673_v49, %v6665_v61  ;;  %v2753_v57 = vmul.f32 %v2689_v36, %v6665_v61  ;;  %v7734_v49 = vld [vmem:[#allocation94_spill] sm:$0xff]  ;;  %v7735_v36 = vld [vmem:[#allocation61_spill] sm:$0xff] }
 0x3e1   :  { %3816 = vmatmul.msk.f32.gmra.mxu1 %vm1767_vm6, %v2735_v3  ;;  %3832 = vmatmul.msk.f32.gmra.mxu2 %vm1767_vm6, %v2751_v37  ;;  %v2426_v3 = vmul.f32 %v2362_v0, %v6665_v61  ;;  %v2546_v37 = vadd.f32 3.0, %v2482_v2  ;;  %v2499_v0 = vmul.f32 %v6677_v12, %v7733_v46  ;;  %v2427_v43 = vmul.f32 %v2363_v58, %v6665_v61 }
 0x3e2   :  { %3896 = vmatmul.msk.f32.gmra.mxu3 %vm1767_vm6, %v2425_v52  ;;  %v2236_v52 = vadd.f32 3.0, %v2172_v31  ;;  %v2690_v9 = vmin.f32 %v2626_v27, 6.0  ;;  %v2484_v14 = vmul.f32 %v6677_v12, %v7734_v49  ;;  %v2500_v51 = vmul.f32 %v6677_v12, %v7735_v36 }
 0x3e3   :  { %v2610_v24 = vmax.f32 %v2546_v37, 0.0  ;;  %v2563_v11 = vadd.f32 3.0, %v2499_v0  ;;  %v7736_v0 = vld [vmem:[#allocation95_spill] sm:$0xff] }
 0x3e4   :  { %v2754_v31 = vmul.f32 %v2690_v9, %v6665_v61 }
 0x3e5   :  { %v2674_v2 = vmin.f32 %v2610_v24, 6.0  ;;  %v2627_v37 = vmax.f32 %v2563_v11, 0.0  ;;  %v2174_v24 = vmul.f32 %v6674_v35, %v6512_v16 }
 0x3e7   :  { %v2238_v46 = vadd.f32 3.0, %v2174_v24 }
 0x3e9   :  { %3817 = vmatmul.msk.f32.gmra.mxu1 %vm1767_vm6, %v2736_v32  ;;  %3833 = vmatmul.msk.f32.gmra.mxu2 %vm1767_vm6, %v2752_v26  ;;  %v2300_v32 = vmax.f32 %v2236_v52, 0.0  ;;  %v2547_v26 = vadd.f32 3.0, %v2483_v21  ;;  %v2301_v52 = vmax.f32 %v2237_v39, 0.0  ;;  %v2691_v21 = vmin.f32 %v2627_v37, 6.0 }
 0x3ea   :  { %3897 = vmatmul.msk.f32.gmra.mxu3 %vm1767_vm6, %v2426_v3  ;;  %v2738_v3 = vmul.f32 %v2674_v2, %v6665_v61  ;;  %v2302_v11 = vmax.f32 %v2238_v46, 0.0 }
 0x3eb   :  { %v2364_v34 = vmin.f32 %v2300_v32, 6.0  ;;  %v2611_v33 = vmax.f32 %v2547_v26, 0.0  ;;  %v2365_v27 = vmin.f32 %v2301_v52, 6.0  ;;  %v2501_v32 = vmul.f32 %v6677_v12, %v5835_v30 }
 0x3ec   :  { %v2755_v13 = vmul.f32 %v2691_v21, %v6665_v61  ;;  %v2502_v52 = vmul.f32 %v6677_v12, %v5839_v44  ;;  %v2176_v21 = vmul.f32 %v6674_v35, %v6530_v63 }
 0x3ed   :  { %v2428_v58 = vmul.f32 %v2364_v34, %v6665_v61  ;;  %v2675_v50 = vmin.f32 %v2611_v33, 6.0  ;;  %v2429_v9 = vmul.f32 %v2365_v27, %v6665_v61  ;;  %v2175_v34 = vmul.f32 %v6674_v35, %v6518_v20 }
 0x3ee   :  { %v2565_v30 = vadd.f32 3.0, %v2501_v32  ;;  %v2566_v46 = vadd.f32 3.0, %v2502_v52 }
 0x3ef   :  { %v2739_v16 = vmul.f32 %v2675_v50, %v6665_v61  ;;  %v2239_v37 = vadd.f32 3.0, %v2175_v34  ;;  %v2177_v34 = vmul.f32 %v6674_v35, %v6534_v23 }
 0x3f1   :  { %3818 = vmatmul.msk.f32.gmra.mxu1 %vm1767_vm6, %v2737_v45  ;;  %3834 = vmatmul.msk.f32.gmra.mxu2 %vm1767_vm6, %v2753_v57  ;;  %v2548_v45 = vadd.f32 3.0, %v2484_v14  ;;  %v2564_v57 = vadd.f32 3.0, %v2500_v51  ;;  %v2629_v14 = vmax.f32 %v2565_v30, 0.0  ;;  %v2303_v50 = vmax.f32 %v2239_v37, 0.0 }
 0x3f2   :  { %3898 = vmatmul.msk.f32.gmra.mxu3 %vm1767_vm6, %v2427_v43  ;;  %v2485_v43 = vmul.f32 %v6677_v12, %v7736_v0  ;;  %v2241_v37 = vadd.f32 3.0, %v2177_v34 }
 0x3f3   :  { %v2612_v2 = vmax.f32 %v2548_v45, 0.0  ;;  %v2628_v26 = vmax.f32 %v2564_v57, 0.0  ;;  %v2693_v57 = vmin.f32 %v2629_v14, 6.0  ;;  %v2367_v0 = vmin.f32 %v2303_v50, 6.0 }
 0x3f4   :  { %v2549_v39 = vadd.f32 3.0, %v2485_v43  ;;  %v2240_v43 = vadd.f32 3.0, %v2176_v21  ;;  %v2504_v14 = vmul.f32 %v6677_v12, %v6018_v7  ;;  %v2305_v52 = vmax.f32 %v2241_v37, 0.0 }
 0x3f5   :  { %v2692_v33 = vmin.f32 %v2628_v26, 6.0  ;;  %v2757_v32 = vmul.f32 %v2693_v57, %v6665_v61  ;;  %v2503_v26 = vmul.f32 %v6677_v12, %v5934_v6 }
 0x3f6   :  { %v2613_v49 = vmax.f32 %v2549_v39, 0.0  ;;  %v2568_v7 = vadd.f32 3.0, %v2504_v14  ;;  %v2369_v57 = vmin.f32 %v2305_v52, 6.0 }
 0x3f7   :  { %v2756_v51 = vmul.f32 %v2692_v33, %v6665_v61  ;;  %v2567_v33 = vadd.f32 3.0, %v2503_v26 }
 0x3f8   :  { %v2677_v45 = vmin.f32 %v2613_v49, 6.0  ;;  %v7739_v49 = vld [vmem:[#allocation99_spill] sm:$0xff] }
 0x3f9   :  { %3819 = vmatmul.msk.f32.gmra.mxu1 %vm1767_vm6, %v2738_v3  ;;  %3835 = vmatmul.msk.f32.gmra.mxu2 %vm1767_vm6, %v2754_v31  ;;  %v2676_v3 = vmin.f32 %v2612_v2, 6.0  ;;  %v2366_v31 = vmin.f32 %v2302_v11, 6.0  ;;  %v7738_v2 = vld [vmem:[#allocation98_spill] sm:$0xff]  ;;  %v2304_v11 = vmax.f32 %v2240_v43, 0.0  ;;  %v2488_v6 = vmul.f32 %v6677_v12, %v7739_v49 }
 0x3fa   :  { %3899 = vmatmul.msk.f32.gmra.mxu3 %vm1767_vm6, %v2428_v58  ;;  %v7737_v58 = vld [vmem:[#allocation97_spill] sm:$0xff]  ;;  %v2741_v44 = vmul.f32 %v2677_v45, %v6665_v61  ;;  %v2487_v63 = vmul.f32 %v6677_v12, %v7738_v2  ;;  %v2506_v49 = vmul.f32 %v6677_v12, %v6061_v56  ;;  %v7742_v56 = vld [vmem:[#allocation103_spill] sm:$0xff] }
 0x3fb   :  { %v2740_v36 = vmul.f32 %v2676_v3, %v6665_v61  ;;  %v2486_v20 = vmul.f32 %v6677_v12, %v7737_v58  ;;  %v2430_v24 = vmul.f32 %v2366_v31, %v6665_v61  ;;  %v2368_v31 = vmin.f32 %v2304_v11, 6.0 }
 0x3fc   :  { %v2551_v3 = vadd.f32 3.0, %v2487_v63  ;;  %v2631_v58 = vmax.f32 %v2567_v33, 0.0  ;;  %v2552_v50 = vadd.f32 3.0, %v2488_v6  ;;  %v2179_v63 = vmul.f32 %v6674_v35, %v6552_v4 }
 0x3fd   :  { %v2550_v27 = vadd.f32 3.0, %v2486_v20  ;;  %v2432_v20 = vmul.f32 %v2368_v31, %v6665_v61 }
 0x3fe   :  { %v2695_v45 = vmin.f32 %v2631_v58, 6.0 }
 0x401   :  { %3820 = vmatmul.msk.f32.gmra.mxu1 %vm1767_vm6, %v2739_v16  ;;  %3836 = vmatmul.msk.f32.gmra.mxu2 %vm1767_vm6, %v2755_v13  ;;  %v2614_v16 = vmax.f32 %v2550_v27, 0.0  ;;  %v2630_v13 = vmax.f32 %v2566_v46, 0.0  ;;  %v2616_v46 = vmax.f32 %v2552_v50, 0.0 }
 0x402   :  { %3900 = vmatmul.msk.f32.gmra.mxu3 %vm1767_vm6, %v2429_v9  ;;  %v2431_v9 = vmul.f32 %v2367_v0, %v6665_v61  ;;  %v2632_v0 = vmax.f32 %v2568_v7, 0.0  ;;  %v2491_v7 = vmul.f32 %v6677_v12, %v7742_v56 }
 0x403   :  { %v2678_v39 = vmin.f32 %v2614_v16, 6.0  ;;  %v2694_v30 = vmin.f32 %v2630_v13, 6.0  ;;  %v2505_v16 = vmul.f32 %v6677_v12, %v6049_v60  ;;  %v2433_v13 = vmul.f32 %v2369_v57, %v6665_v61 }
 0x404   :  { %v2680_v26 = vmin.f32 %v2616_v46, 6.0  ;;  %v2507_v57 = vmul.f32 %v6677_v12, %v6076_v47  ;;  %v7743_v47 = vld [vmem:[#allocation45_spill] sm:$0xff] }
 0x405   :  { %v2742_v23 = vmul.f32 %v2678_v39, %v6665_v61  ;;  %v2569_v34 = vadd.f32 3.0, %v2505_v16 }
 0x406   :  { %v2744_v60 = vmul.f32 %v2680_v26, %v6665_v61 }
 0x407   :  { %v2633_v37 = vmax.f32 %v2569_v34, 0.0 }
 0x409   :  { %3821 = vmatmul.msk.f32.gmra.mxu1 %vm1767_vm6, %v2740_v36  ;;  %3837 = vmatmul.msk.f32.gmra.mxu2 %vm1767_vm6, %v2756_v51  ;;  %v2758_v36 = vmul.f32 %v2694_v30, %v6665_v61  ;;  %v2615_v51 = vmax.f32 %v2551_v3, 0.0  ;;  %v2243_v30 = vadd.f32 3.0, %v2179_v63  ;;  %v7741_v3 = vld [vmem:[#allocation101_spill] sm:$0xff]  ;;  %v2697_v58 = vmin.f32 %v2633_v37, 6.0 }
 0x40a   :  { %3901 = vmatmul.msk.f32.gmra.mxu3 %vm1767_vm6, %v2430_v24  ;;  %v2178_v24 = vmul.f32 %v6674_v35, %v6546_v5  ;;  %v2490_v33 = vmul.f32 %v6677_v12, %v7741_v3  ;;  %v2492_v63 = vmul.f32 %v6677_v12, %v7743_v47 }
 0x40b   :  { %v2679_v21 = vmin.f32 %v2615_v51, 6.0  ;;  %v2307_v14 = vmax.f32 %v2243_v30, 0.0  ;;  %v2182_v30 = vmul.f32 %v6674_v35, %v6582_v15  ;;  %v2509_v15 = vmul.f32 %v6677_v12, %v6140_v53 }
 0x40c   :  { %v2242_v27 = vadd.f32 3.0, %v2178_v24 }
 0x40d   :  { %v2743_v43 = vmul.f32 %v2679_v21, %v6665_v61  ;;  %v2371_v52 = vmin.f32 %v2307_v14, 6.0  ;;  %v2246_v37 = vadd.f32 3.0, %v2182_v30 }
 0x40e   :  { %v2306_v2 = vmax.f32 %v2242_v27, 0.0 }
 0x40f   :  { %v2435_v27 = vmul.f32 %v2371_v52, %v6665_v61  ;;  %v2310_v52 = vmax.f32 %v2246_v37, 0.0 }
 0x410   :  { %v2370_v39 = vmin.f32 %v2306_v2, 6.0 }
 0x411   :  { %3822 = vmatmul.msk.f32.gmra.mxu1 %vm1767_vm6, %v2741_v44  ;;  %3838 = vmatmul.msk.f32.gmra.mxu2 %vm1767_vm6, %v2757_v32  ;;  %v2759_v44 = vmul.f32 %v2695_v45, %v6665_v61  ;;  %v7740_v32 = vld [vmem:[#allocation100_spill] sm:$0xff] }
 0x412   :  { %3902 = vmatmul.msk.f32.gmra.mxu3 %vm1767_vm6, %v2431_v9  ;;  %v2489_v5 = vmul.f32 %v6677_v12, %v7740_v32  ;;  %v2696_v9 = vmin.f32 %v2632_v0, 6.0  ;;  %v2434_v6 = vmul.f32 %v2370_v39, %v6665_v61  ;;  %v2181_v0 = vmul.f32 %v6674_v35, %v6570_v22 }
 0x414   :  { %v2553_v11 = vadd.f32 3.0, %v2489_v5  ;;  %v2760_v31 = vmul.f32 %v2696_v9, %v6665_v61  ;;  %v2571_v5 = vadd.f32 3.0, %v2507_v57 }
 0x416   :  { %v2617_v4 = vmax.f32 %v2553_v11, 0.0  ;;  %v2635_v9 = vmax.f32 %v2571_v5, 0.0  ;;  %v2508_v11 = vmul.f32 %v6677_v12, %v6118_v10  ;;  %v2473_v10 = vrot.slane %v6671_v25, 1 }
 0x417   :  { %v2183_v25 = vmul.f32 %v6674_v35, %v6588_v54 }
 0x418   :  { %v2681_v51 = vmin.f32 %v2617_v4, 6.0  ;;  %v2699_v3 = vmin.f32 %v2635_v9, 6.0 }
 0x419   :  { %3823 = vmatmul.msk.f32.gmra.mxu1 %vm1767_vm6, %v2742_v23  ;;  %3839 = vmatmul.msk.f32.gmra.mxu2 %vm1767_vm6, %v2758_v36  ;;  %v2180_v23 = vmul.f32 %v6674_v35, %v6564_v1  ;;  %v2554_v36 = vadd.f32 3.0, %v2490_v33  ;;  %v2761_v1 = vmul.f32 %v2697_v58, %v6665_v61  ;;  %v2556_v33 = vadd.f32 3.0, %v2492_v63 }
 0x41a   :  { %3903 = vmatmul.msk.f32.gmra.mxu3 %vm1767_vm6, %v2432_v20  ;;  %v2570_v20 = vadd.f32 3.0, %v2506_v49  ;;  %v2745_v21 = vmul.f32 %v2681_v51, %v6665_v61  ;;  %v7744_v49 = vld [vmem:[#allocation105_spill] sm:$0xff]  ;;  %v2147_v58 = vrot.slane %v6668_v55, 1  ;;  %v2374_v55 = vmin.f32 %v2310_v52, 6.0 }
 0x41b   :  { %v2244_v24 = vadd.f32 3.0, %v2180_v23  ;;  %v2618_v50 = vmax.f32 %v2554_v36, 0.0  ;;  %v2763_v23 = vmul.f32 %v2699_v3, %v6665_v61  ;;  %v2620_v36 = vmax.f32 %v2556_v33, 0.0 }
 0x41c   :  { %v2634_v45 = vmax.f32 %v2570_v20, 0.0 }
 0x41d   :  { %v2308_v46 = vmax.f32 %v2244_v24, 0.0  ;;  %v6861_v24 = vperm.slane %v2473_v10, 0 }
 0x41e   :  { %v2698_v32 = vmin.f32 %v2634_v45, 6.0 }
 0x41f   :  { %v2372_v16 = vmin.f32 %v2308_v46, 6.0 }
 0x420   :  { %v2762_v22 = vmul.f32 %v2698_v32, %v6665_v61 }
 0x421   :  { %3824 = vmatmul.msk.f32.gmra.mxu1 %vm1767_vm6, %v2743_v43  ;;  %3840 = vmatmul.msk.f32.gmra.mxu2 %vm1767_vm6, %v2759_v44  ;;  %v2555_v43 = vadd.f32 3.0, %v2491_v7  ;;  %v2682_v44 = vmin.f32 %v2618_v50, 6.0  ;;  %v2436_v34 = vmul.f32 %v2372_v16, %v6665_v61  ;;  %v2684_v50 = vmin.f32 %v2620_v36, 6.0 }
 0x422   :  { %3904 = vmatmul.msk.f32.gmra.mxu3 %vm1767_vm6, %v2433_v13  ;;  %v2245_v13 = vadd.f32 3.0, %v2181_v0  ;;  %v6863_v7 = vperm.slane %v2147_v58, 0  ;;  %v2152_v0 = vmul.f32 %v6674_v35, %v6225_v19 }
 0x423   :  { %v2619_v2 = vmax.f32 %v2555_v43, 0.0  ;;  %v2746_v26 = vmul.f32 %v2682_v44, %v6665_v61  ;;  %v2748_v54 = vmul.f32 %v2684_v50, %v6665_v61  ;;  %v2438_v43 = vmul.f32 %v2374_v55, %v6665_v61  ;;  %v6906_v50 = vld [vmem:[%s7324_s2 + $0x40] ss:$0 sm:$0xff] }
 0x424   :  { %v2309_v39 = vmax.f32 %v2245_v13, 0.0  ;;  %v2184_v32 = vmul.f32 %v6863_v7, %v6229_v59 }
 0x426   :  { %v2373_v4 = vmin.f32 %v2309_v39, 6.0  ;;  %v2248_v63 = vadd.f32 3.0, %v2184_v32 }
 0x428   :  { %v2437_v20 = vmul.f32 %v2373_v4, %v6665_v61  ;;  %v2312_v30 = vmax.f32 %v2248_v63, 0.0 }
 0x429   :  { %3825 = vmatmul.msk.f32.gmra.mxu1 %vm1767_vm6, %v2744_v60  ;;  %3841 = vmatmul.msk.f32.gmra.mxu2 %vm1767_vm6, %v2760_v31  ;;  %v2683_v60 = vmin.f32 %v2619_v2, 6.0  ;;  %v2572_v31 = vadd.f32 3.0, %v2508_v11  ;;  %v2216_v2 = vadd.f32 3.0, %v2152_v0  ;;  %v7746_v11 = vld [vmem:[#allocation83_spill] sm:$0xff] }
 0x42a   :  { %3905 = vmatmul.msk.f32.gmra.mxu3 %vm1767_vm6, %v2434_v6  ;;  %v2493_v6 = vmul.f32 %v6677_v12, %v7744_v49  ;;  %v2573_v12 = vadd.f32 3.0, %v2509_v15  ;;  %v2511_v59 = vmul.f32 %v6861_v24, %v7746_v11  ;;  %v2376_v37 = vmin.f32 %v2312_v30, 6.0 }
 0x42b   :  { %v2747_v14 = vmul.f32 %v2683_v60, %v6665_v61  ;;  %v2636_v51 = vmax.f32 %v2572_v31, 0.0  ;;  %v2280_v9 = vmax.f32 %v2216_v2, 0.0  ;;  %v2185_v60 = vmul.f32 %v6863_v7, %v6221_v8 }
 0x42c   :  { %v2557_v53 = vadd.f32 3.0, %v2493_v6  ;;  %v2637_v45 = vmax.f32 %v2573_v12, 0.0  ;;  %v2575_v31 = vadd.f32 3.0, %v2511_v59  ;;  %v2154_v8 = vmul.f32 %v6674_v35, %v6257_v62  ;;  %v7749_v59 = vld [vmem:[#allocation62_spill] sm:$0xff] }
 0x42d   :  { %v2700_v56 = vmin.f32 %v2636_v51, 6.0  ;;  %v2344_v33 = vmin.f32 %v2280_v9, 6.0  ;;  %v2249_v10 = vadd.f32 3.0, %v2185_v60  ;;  %v2440_v51 = vmul.f32 %v2376_v37, %v6665_v61 }
 0x42e   :  { %v2701_v16 = vmin.f32 %v2637_v45, 6.0  ;;  %v2218_v62 = vadd.f32 3.0, %v2154_v8  ;;  %v2188_v37 = vmul.f32 %v6863_v7, %v6253_v28  ;;  %v7750_v28 = vld [vmem:[#allocation31_spill] sm:$0xff] }
 0x42f   :  { %v2764_v57 = vmul.f32 %v2700_v56, %v6665_v61  ;;  %v2313_v58 = vmax.f32 %v2249_v10, 0.0 }
 0x431   :  { %3826 = vmatmul.msk.f32.gmra.mxu1 %vm1767_vm6, %v2745_v21  ;;  %3842 = vmatmul.msk.f32.gmra.mxu2 %vm1767_vm6, %v2761_v1  ;;  %v2247_v21 = vadd.f32 3.0, %v2183_v25  ;;  %v2621_v1 = vmax.f32 %v2557_v53, 0.0  ;;  %v2377_v56 = vmin.f32 %v2313_v58, 6.0 }
 0x432   :  { %3906 = vmatmul.msk.f32.gmra.mxu3 %vm1767_vm6, %v2435_v27  ;;  %v7745_v27 = vld [vmem:[#allocation81_spill] sm:$0xff] }
 0x433   :  { %v2510_v46 = vmul.f32 %v6861_v24, %v7745_v27  ;;  %v2311_v44 = vmax.f32 %v2247_v21, 0.0  ;;  %v2685_v5 = vmin.f32 %v2621_v1, 6.0  ;;  %v2441_v32 = vmul.f32 %v2377_v56, %v6665_v61 }
 0x435   :  { %v2574_v13 = vadd.f32 3.0, %v2510_v46  ;;  %v2375_v47 = vmin.f32 %v2311_v44, 6.0  ;;  %v2749_v19 = vmul.f32 %v2685_v5, %v6665_v61  ;;  %v7748_v46 = vld [vmem:[#allocation28_spill] sm:$0xff] }
 0x436   :  { %v2513_v0 = vmul.f32 %v6861_v24, %v7748_v46 }
 0x437   :  { %v2439_v39 = vmul.f32 %v2375_v47, %v6665_v61 }
 0x438   :  { %v2577_v47 = vadd.f32 3.0, %v2513_v0 }
 0x439   :  { %3827 = vmatmul.msk.f32.gmra.mxu1 %vm1767_vm6, %v2746_v26  ;;  %3843 = vmatmul.msk.f32.gmra.mxu2 %vm1767_vm6, %v2762_v22  ;;  %v2765_v26 = vmul.f32 %v2701_v16, %v6665_v61  ;;  %v2638_v22 = vmax.f32 %v2574_v13, 0.0  ;;  %v2187_v16 = vmul.f32 %v6863_v7, %v6243_v48 }
 0x43a   :  { %3907 = vmatmul.msk.f32.gmra.mxu3 %vm1767_vm6, %v2436_v34  ;;  %v2153_v34 = vmul.f32 %v6674_v35, %v6237_v29  ;;  %v7747_v29 = vld [vmem:[#allocation113_spill] sm:$0xff]  ;;  %v2641_v30 = vmax.f32 %v2577_v47, 0.0  ;;  %v2158_v47 = vmul.f32 %v6674_v35, %v6332_v41 }
 0x43b   :  { %v2702_v3 = vmin.f32 %v2638_v22, 6.0  ;;  %v2512_v6 = vmul.f32 %v6861_v24, %v7747_v29 }
 0x43c   :  { %v2217_v4 = vadd.f32 3.0, %v2153_v34  ;;  %v2514_v34 = vmul.f32 %v6861_v24, %v7749_v59  ;;  %v2705_v29 = vmin.f32 %v2641_v30, 6.0 }
 0x43d   :  { %v2766_v15 = vmul.f32 %v2702_v3, %v6665_v61  ;;  %v2576_v52 = vadd.f32 3.0, %v2512_v6  ;;  %v2156_v3 = vmul.f32 %v6674_v35, %v6296_v38 }
 0x43e   :  { %v2281_v36 = vmax.f32 %v2217_v4, 0.0  ;;  %v2578_v10 = vadd.f32 3.0, %v2514_v34  ;;  %v2222_v34 = vadd.f32 3.0, %v2158_v47 }
 0x43f   :  { %v2640_v45 = vmax.f32 %v2576_v52, 0.0  ;;  %v2220_v8 = vadd.f32 3.0, %v2156_v3  ;;  %v2769_v52 = vmul.f32 %v2705_v29, %v6665_v61 }
 0x440   :  { %v2345_v53 = vmin.f32 %v2281_v36, 6.0  ;;  %v2642_v58 = vmax.f32 %v2578_v10, 0.0 }
 0x441   :  { %3828 = vmatmul.msk.f32.gmra.mxu1 %vm1767_vm6, %v2747_v14  ;;  %3844 = vmatmul.msk.f32.gmra.mxu2 %vm1767_vm6, %v2763_v23  ;;  %v2408_v14 = vmul.f32 %v2344_v33, %v6665_v61  ;;  %v2639_v23 = vmax.f32 %v2575_v31, 0.0  ;;  %v2704_v13 = vmin.f32 %v2640_v45, 6.0 }
 0x442   :  { %3908 = vmatmul.msk.f32.gmra.mxu3 %vm1767_vm6, %v2437_v20  ;;  %v2186_v20 = vmul.f32 %v6863_v7, %v6233_v42  ;;  %v2409_v27 = vmul.f32 %v2345_v53, %v6665_v61  ;;  %v2157_v53 = vmul.f32 %v6674_v35, %v6314_v18  ;;  %v2706_v45 = vmin.f32 %v2642_v58, 6.0 }
 0x443   :  { %v2703_v25 = vmin.f32 %v2639_v23, 6.0  ;;  %v2768_v48 = vmul.f32 %v2704_v13, %v6665_v61 }
 0x444   :  { %v2250_v55 = vadd.f32 3.0, %v2186_v20  ;;  %v2515_v20 = vmul.f32 %v6861_v24, %v7750_v28 }
 0x446   :  { %v2314_v5 = vmax.f32 %v2250_v55, 0.0 }
 0x449   :  { %3829 = vmatmul.msk.f32.gmra.mxu1 %vm1767_vm6, %v2748_v54  ;;  %3845 = vmatmul.msk.f32.gmra.mxu2 %vm1767_vm6, %v2764_v57  ;;  %v2282_v54 = vmax.f32 %v2218_v62, 0.0  ;;  %v2767_v57 = vmul.f32 %v2703_v25, %v6665_v61  ;;  %v2284_v25 = vmax.f32 %v2220_v8, 0.0 }
 0x44a   :  { %3909 = vmatmul.msk.f32.gmra.mxu3 %vm1767_vm6, %v2438_v43  ;;  %v2155_v43 = vmul.f32 %v6674_v35, %v6277_v17 }
 0x44b   :  { %v2346_v2 = vmin.f32 %v2282_v54, 6.0  ;;  %v2348_v54 = vmin.f32 %v2284_v25, 6.0 }
 0x44c   :  { %v2219_v63 = vadd.f32 3.0, %v2155_v43 }
 0x44d   :  { %v2412_v13 = vmul.f32 %v2348_v54, %v6665_v61 }
 0x44e   :  { %v2283_v60 = vmax.f32 %v2219_v63, 0.0 }
 0x450   :  { %v2347_v6 = vmin.f32 %v2283_v60, 6.0 }
 0x451   :  { %3830 = vmatmul.msk.f32.gmra.mxu1 %vm1767_vm6, %v2749_v19  ;;  %3846 = vmatmul.msk.f32.gmra.mxu2 %vm1767_vm6, %v2765_v26  ;;  %v2378_v19 = vmin.f32 %v2314_v5, 6.0  ;;  %v2251_v26 = vadd.f32 3.0, %v2187_v16  ;;  %v2770_v16 = vmul.f32 %v2706_v45, %v6665_v61 }
 0x452   :  { %3910 = vmatmul.msk.f32.gmra.mxu3 %vm1767_vm6, %v2439_v39  ;;  %v2410_v39 = vmul.f32 %v2346_v2, %v6665_v61  ;;  %v2411_v62 = vmul.f32 %v2347_v6, %v6665_v61 }
 0x453   :  { %v2442_v31 = vmul.f32 %v2378_v19, %v6665_v61  ;;  %v2315_v4 = vmax.f32 %v2251_v26, 0.0  ;;  %v7752_v26 = vld [vmem:[#allocation16_spill] sm:$0xff] }
 0x456   :  { %v6889_v49 = vpop.f32.mrf.mxu1 }
 0x459   :  { %3847 = vmatmul.msk.f32.gmra.mxu2 %vm1767_vm6, %v2766_v15  ;;  %3879 = vmatmul.msk.f32.vlgmr.msrb.gmra.mxu1 %vm1767_vm6, %v2408_v14  ;;  %v2379_v15 = vmin.f32 %v2315_v4, 6.0  ;;  %v2252_v14 = vadd.f32 3.0, %v2188_v37  ;;  %v7754_v37 = vld [vmem:[#allocation80_spill] sm:$0xff] }
 0x45a   :  { %3911 = vmatmul.msk.f32.gmra.mxu3 %vm1767_vm6, %v2440_v51  ;;  %v2159_v10 = vmul.f32 %v6674_v35, %v7754_v37 }
 0x45b   :  { %v2443_v56 = vmul.f32 %v2379_v15, %v6665_v61  ;;  %v2316_v55 = vmax.f32 %v2252_v14, 0.0 }
 0x45c   :  { %v3055_v12 = vpop.f32.mrf.mxu2 }
 0x45d   :  { %v3456_v21 = vpop.f32.mrf.mxu3 }
 0x45e   :  { %v3457_v42 = vadd.f32 %v3456_v21, %v3055_v12  ;;  %v6908_v1 = vpop.f32.mrf.mxu1  ;;  %v2189_v21 = vmul.f32 %v6863_v7, %v6265_v40  ;;  %v7751_v40 = vld [vmem:[#allocation58_spill] sm:$0xff] }
 0x45f   :  { %v2516_v5 = vmul.f32 %v6861_v24, %v7751_v40 }
 0x460   :  { %v3617_v44 = vadd.f32 %v6906_v50, %v3457_v42  ;;  %v2579_v42 = vadd.f32 3.0, %v2515_v20  ;;  %v2253_v46 = vadd.f32 3.0, %v2189_v21  ;;  %v2223_v20 = vadd.f32 3.0, %v2159_v10 }
 0x461   :  { %3848 = vmatmul.msk.f32.gmra.mxu2 %vm1767_vm6, %v2767_v57  ;;  %3880 = vmatmul.msk.f32.gmra.mxu1 %vm1767_vm6, %v2409_v27  ;;  %v2221_v57 = vadd.f32 3.0, %v2157_v53  ;;  %v2380_v27 = vmin.f32 %v2316_v55, 6.0  ;;  %v2580_v59 = vadd.f32 3.0, %v2516_v5  ;;  %v7758_v5 = vld [vmem:[#allocation30_spill] sm:$0xff] }
 0x462   :  { %3681 = vst [vmem:[#allocation2 + $0x80] sm:$0xff] %v3617_v44  ;;  %3912 = vmatmul.msk.f32.gmra.mxu3 %vm1767_vm6, %v2441_v32  ;;  %v2643_v32 = vmax.f32 %v2579_v42, 0.0  ;;  %v2317_v19 = vmax.f32 %v2253_v46, 0.0  ;;  %v2287_v45 = vmax.f32 %v2223_v20, 0.0  ;;  %v7757_v46 = vld [vmem:[#allocation85_spill] sm:$0xff] }
 0x463   :  { %v2285_v2 = vmax.f32 %v2221_v57, 0.0  ;;  %v2644_v8 = vmax.f32 %v2580_v59, 0.0 }
 0x464   :  { %v3058_v17 = vpop.f32.mrf.mxu2 }
 0x465   :  { %v3459_v22 = vpop.f32.mrf.mxu3 }
 0x466   :  { %v3460_v9 = vadd.f32 %v3459_v22, %v3058_v17  ;;  %v6923_v11 = vpop.f32.mrf.mxu1  ;;  %v2444_v17 = vmul.f32 %v2380_v27, %v6665_v61  ;;  %v2190_v22 = vmul.f32 %v6863_v7, %v7752_v26 }
 0x468   :  { %v3618_v33 = vadd.f32 %v6906_v50, %v3460_v9  ;;  %v2707_v9 = vmin.f32 %v2643_v32, 6.0  ;;  %v2254_v30 = vadd.f32 3.0, %v2190_v22 }
 0x469   :  { %3849 = vmatmul.msk.f32.gmra.mxu2 %vm1767_vm6, %v2768_v48  ;;  %3881 = vmatmul.msk.f32.gmra.mxu1 %vm1767_vm6, %v2410_v39  ;;  %v2349_v48 = vmin.f32 %v2285_v2, 6.0  ;;  %v2381_v39 = vmin.f32 %v2317_v19, 6.0  ;;  %v2351_v2 = vmin.f32 %v2287_v45, 6.0 }
 0x46a   :  { %3682 = vst [vmem:[#allocation2 + $0x88] sm:$0xff] %v3618_v33  ;;  %3913 = vmatmul.msk.f32.gmra.mxu3 %vm1767_vm6, %v2442_v31  ;;  %v7753_v31 = vld [vmem:[#allocation115_spill] sm:$0xff]  ;;  %v2771_v29 = vmul.f32 %v2707_v9, %v6665_v61 }
 0x46b   :  { %v2517_v4 = vmul.f32 %v6861_v24, %v7753_v31  ;;  %v2413_v6 = vmul.f32 %v2349_v48, %v6665_v61  ;;  %v2445_v14 = vmul.f32 %v2381_v39, %v6665_v61 }
 0x46c   :  { %v3061_v38 = vpop.f32.mrf.mxu2 }
 0x46d   :  { %v3462_v23 = vpop.f32.mrf.mxu3  ;;  %v2581_v28 = vadd.f32 3.0, %v2517_v4 }
 0x46e   :  { %v3463_v36 = vadd.f32 %v3462_v23, %v3061_v38  ;;  %v6938_v51 = vpop.f32.mrf.mxu1  ;;  %v2286_v38 = vmax.f32 %v2222_v34, 0.0  ;;  %v2318_v23 = vmax.f32 %v2254_v30, 0.0  ;;  %v2415_v34 = vmul.f32 %v2351_v2, %v6665_v61  ;;  %v7759_v30 = vld [vmem:[#allocation117_spill] sm:$0xff] }
 0x46f   :  { %v2645_v42 = vmax.f32 %v2581_v28, 0.0 }
 0x470   :  { %v3619_v12 = vadd.f32 %v6906_v50, %v3463_v36  ;;  %v7755_v36 = vld [vmem:[#allocation76_spill] sm:$0xff]  ;;  %v2382_v53 = vmin.f32 %v2318_v23, 6.0 }
 0x471   :  { %3850 = vmatmul.msk.f32.gmra.mxu2 %vm1767_vm6, %v2769_v52  ;;  %3882 = vmatmul.msk.f32.gmra.mxu1 %vm1767_vm6, %v2411_v62  ;;  %v2191_v58 = vmul.f32 %v6863_v7, %v7755_v36  ;;  %v2708_v52 = vmin.f32 %v2644_v8, 6.0  ;;  %v2350_v62 = vmin.f32 %v2286_v38, 6.0 }
 0x472   :  { %3683 = vst [vmem:[#allocation2 + $0x90] sm:$0xff] %v3619_v12  ;;  %3914 = vmatmul.msk.f32.gmra.mxu3 %vm1767_vm6, %v2443_v56  ;;  %v2446_v32 = vmul.f32 %v2382_v53, %v6665_v61  ;;  %v7763_v53 = vld [vmem:[#allocation96_spill] sm:$0xff] }
 0x473   :  { %v2255_v12 = vadd.f32 3.0, %v2191_v58  ;;  %v2772_v54 = vmul.f32 %v2708_v52, %v6665_v61  ;;  %v2414_v57 = vmul.f32 %v2350_v62, %v6665_v61  ;;  %v7762_v62 = vld [vmem:[#allocation118_spill] sm:$0xff] }
 0x474   :  { %v3064_v18 = vpop.f32.mrf.mxu2 }
 0x475   :  { %v3465_v0 = vpop.f32.mrf.mxu3  ;;  %v2319_v40 = vmax.f32 %v2255_v12, 0.0  ;;  %v2162_v12 = vmul.f32 %v6674_v35, %v7763_v53  ;;  %v7769_v53 = vld [vmem:[#allocation11_spill] sm:$0xff] }
 0x476   :  { %v3466_v43 = vadd.f32 %v3465_v0, %v3064_v18  ;;  %v6953_v44 = vpop.f32.mrf.mxu1  ;;  %v7756_v18 = vld [vmem:[#allocation65_spill] sm:$0xff]  ;;  %v2160_v0 = vmul.f32 %v6674_v35, %v7757_v46 }
 0x477   :  { %v2518_v27 = vmul.f32 %v6861_v24, %v7756_v18  ;;  %v2383_v19 = vmin.f32 %v2319_v40, 6.0 }
 0x478   :  { %v3620_v63 = vadd.f32 %v6906_v50, %v3466_v43 }
 0x479   :  { %3851 = vmatmul.msk.f32.gmra.mxu2 %vm1767_vm6, %v2770_v16  ;;  %3883 = vmatmul.msk.f32.gmra.mxu1 %vm1767_vm6, %v2412_v13  ;;  %v2192_v16 = vmul.f32 %v6863_v7, %v7758_v5  ;;  %v2709_v13 = vmin.f32 %v2645_v42, 6.0  ;;  %v2582_v47 = vadd.f32 3.0, %v2518_v27  ;;  %v2447_v37 = vmul.f32 %v2383_v19, %v6665_v61  ;;  %v7764_v27 = vld [vmem:[#allocation107_spill] sm:$0xff] }
 0x47a   :  { %3684 = vst [vmem:[#allocation2 + $0x98] sm:$0xff] %v3620_v63  ;;  %3915 = vmatmul.msk.f32.gmra.mxu3 %vm1767_vm6, %v2444_v17  ;;  %v2224_v63 = vadd.f32 3.0, %v2160_v0  ;;  %v2194_v46 = vmul.f32 %v6863_v7, %v7764_v27 }
 0x47b   :  { %v2256_v26 = vadd.f32 3.0, %v2192_v16  ;;  %v2773_v59 = vmul.f32 %v2709_v13, %v6665_v61 }
 0x47c   :  { %v3067_v41 = vpop.f32.mrf.mxu2  ;;  %v2288_v39 = vmax.f32 %v2224_v63, 0.0  ;;  %v2258_v13 = vadd.f32 3.0, %v2194_v46 }
 0x47d   :  { %v3468_v60 = vpop.f32.mrf.mxu3  ;;  %v2320_v10 = vmax.f32 %v2256_v26, 0.0 }
 0x47e   :  { %v3469_v3 = vadd.f32 %v3468_v60, %v3067_v41  ;;  %v6968_v33 = vpop.f32.mrf.mxu1  ;;  %v2646_v41 = vmax.f32 %v2582_v47, 0.0  ;;  %v2519_v60 = vmul.f32 %v6861_v24, %v7759_v30  ;;  %v2352_v38 = vmin.f32 %v2288_v39, 6.0 }
 0x47f   :  { %v2384_v36 = vmin.f32 %v2320_v10, 6.0 }
 0x480   :  { %v3621_v15 = vadd.f32 %v6906_v50, %v3469_v3  ;;  %v7760_v3 = vld [vmem:[#allocation7_spill] sm:$0xff]  ;;  %v2710_v8 = vmin.f32 %v2646_v41, 6.0 }
 0x481   :  { %3852 = vmatmul.msk.f32.gmra.mxu2 %vm1767_vm6, %v2771_v29  ;;  %3884 = vmatmul.msk.f32.gmra.mxu1 %vm1767_vm6, %v2413_v6  ;;  %v2161_v31 = vmul.f32 %v6674_v35, %v7760_v3  ;;  %v7761_v29 = vld [vmem:[#allocation106_spill] sm:$0xff]  ;;  %v7767_v3 = vld [vmem:[#allocation33_spill] sm:$0xff] }
 0x482   :  { %3685 = vst [vmem:[#allocation2 + $0xa0] sm:$0xff] %v3621_v15  ;;  %3916 = vmatmul.msk.f32.gmra.mxu3 %vm1767_vm6, %v2445_v14  ;;  %v2193_v6 = vmul.f32 %v6863_v7, %v7761_v29  ;;  %v2583_v15 = vadd.f32 3.0, %v2519_v60  ;;  %v2322_v60 = vmax.f32 %v2258_v13, 0.0 }
 0x483   :  { %v2225_v14 = vadd.f32 3.0, %v2161_v31  ;;  %v2195_v31 = vmul.f32 %v6863_v7, %v7767_v3 }
 0x484   :  { %v3070_v25 = vpop.f32.mrf.mxu2  ;;  %v2257_v58 = vadd.f32 3.0, %v2193_v6  ;;  %v2647_v42 = vmax.f32 %v2583_v15, 0.0 }
 0x485   :  { %v3471_v56 = vpop.f32.mrf.mxu3  ;;  %v2289_v45 = vmax.f32 %v2225_v14, 0.0 }
 0x486   :  { %v3472_v55 = vadd.f32 %v3471_v56, %v3070_v25  ;;  %v6983_v21 = vpop.f32.mrf.mxu1  ;;  %v2520_v25 = vmul.f32 %v6861_v24, %v7762_v62  ;;  %v2774_v56 = vmul.f32 %v2710_v8, %v6665_v61  ;;  %v2321_v18 = vmax.f32 %v2257_v58, 0.0  ;;  %v7768_v58 = vld [vmem:[#allocation67_spill] sm:$0xff] }
 0x487   :  { %v2353_v40 = vmin.f32 %v2289_v45, 6.0  ;;  %v2386_v8 = vmin.f32 %v2322_v60, 6.0  ;;  %v7770_v45 = vld [vmem:[#allocation37_spill] sm:$0xff] }
 0x488   :  { %v3622_v43 = vadd.f32 %v6906_v50, %v3472_v55  ;;  %v2416_v55 = vmul.f32 %v2352_v38, %v6665_v61  ;;  %v2584_v0 = vadd.f32 3.0, %v2520_v25  ;;  %v2385_v16 = vmin.f32 %v2321_v18, 6.0 }
 0x489   :  { %3853 = vmatmul.msk.f32.gmra.mxu2 %vm1767_vm6, %v2772_v54  ;;  %3885 = vmatmul.msk.f32.gmra.mxu1 %vm1767_vm6, %v2414_v57  ;;  %v2448_v57 = vmul.f32 %v2384_v36, %v6665_v61  ;;  %v2259_v38 = vadd.f32 3.0, %v2195_v31 }
 0x48a   :  { %3686 = vst [vmem:[#allocation2 + $0xa8] sm:$0xff] %v3622_v43  ;;  %3917 = vmatmul.msk.f32.gmra.mxu3 %vm1767_vm6, %v2446_v32  ;;  %v2226_v43 = vadd.f32 3.0, %v2162_v12  ;;  %v2711_v32 = vmin.f32 %v2647_v42, 6.0  ;;  %v2449_v30 = vmul.f32 %v2385_v16, %v6665_v61  ;;  %v2164_v12 = vmul.f32 %v6674_v35, %v7769_v53 }
 0x48b   :  { %v2323_v42 = vmax.f32 %v2259_v38, 0.0 }
 0x48c   :  { %v3073_v17 = vpop.f32.mrf.mxu2  ;;  %v2290_v19 = vmax.f32 %v2226_v43, 0.0  ;;  %v2775_v26 = vmul.f32 %v2711_v32, %v6665_v61  ;;  %v2228_v46 = vadd.f32 3.0, %v2164_v12 }
 0x48d   :  { %v3474_v22 = vpop.f32.mrf.mxu3  ;;  %v2387_v43 = vmin.f32 %v2323_v42, 6.0 }
 0x48e   :  { %v3475_v9 = vadd.f32 %v3474_v22, %v3073_v17  ;;  %v6998_v48 = vpop.f32.mrf.mxu1  ;;  %v2648_v17 = vmax.f32 %v2584_v0, 0.0  ;;  %v2417_v22 = vmul.f32 %v2353_v40, %v6665_v61 }
 0x490   :  { %v3623_v4 = vadd.f32 %v6906_v50, %v3475_v9  ;;  %v7765_v9 = vld [vmem:[#allocation119_spill] sm:$0xff] }
 0x491   :  { %3854 = vmatmul.msk.f32.gmra.mxu2 %vm1767_vm6, %v2773_v59  ;;  %3886 = vmatmul.msk.f32.gmra.mxu1 %vm1767_vm6, %v2415_v34  ;;  %v2521_v59 = vmul.f32 %v6861_v24, %v7765_v9  ;;  %v7766_v34 = vld [vmem:[#allocation102_spill] sm:$0xff] }
 0x492   :  { %3687 = vst [vmem:[#allocation2 + $0xb0] sm:$0xff] %v3623_v4  ;;  %3918 = vmatmul.msk.f32.gmra.mxu3 %vm1767_vm6, %v2447_v37  ;;  %v2163_v41 = vmul.f32 %v6674_v35, %v7766_v34  ;;  %v2712_v4 = vmin.f32 %v2648_v17, 6.0  ;;  %v2354_v37 = vmin.f32 %v2290_v19, 6.0  ;;  %v2451_v34 = vmul.f32 %v2387_v43, %v6665_v61 }
 0x493   :  { %v2585_v10 = vadd.f32 3.0, %v2521_v59 }
 0x494   :  { %v3076_v23 = vpop.f32.mrf.mxu2  ;;  %v2227_v29 = vadd.f32 3.0, %v2163_v41  ;;  %v2776_v36 = vmul.f32 %v2712_v4, %v6665_v61 }
 0x495   :  { %v3477_v28 = vpop.f32.mrf.mxu3  ;;  %v2649_v62 = vmax.f32 %v2585_v10, 0.0 }
 0x496   :  { %v3478_v20 = vadd.f32 %v3477_v28, %v3076_v23  ;;  %v7013_v52 = vpop.f32.mrf.mxu1  ;;  %v2522_v28 = vmul.f32 %v6861_v24, %v7768_v58  ;;  %v2291_v25 = vmax.f32 %v2227_v29, 0.0 }
 0x497   :  { %v2713_v18 = vmin.f32 %v2649_v62, 6.0  ;;  %v7775_v62 = vld [vmem:[#allocation114_spill] sm:$0xff] }
 0x498   :  { %v3624_v54 = vadd.f32 %v6906_v50, %v3478_v20  ;;  %v2418_v20 = vmul.f32 %v2354_v37, %v6665_v61  ;;  %v2355_v27 = vmin.f32 %v2291_v25, 6.0  ;;  %v2166_v25 = vmul.f32 %v6674_v35, %v7775_v62 }
 0x499   :  { %3855 = vmatmul.msk.f32.gmra.mxu2 %vm1767_vm6, %v2774_v56  ;;  %3887 = vmatmul.msk.f32.gmra.mxu1 %vm1767_vm6, %v2416_v55  ;;  %v2450_v55 = vmul.f32 %v2386_v8, %v6665_v61  ;;  %v2777_v17 = vmul.f32 %v2713_v18, %v6665_v61 }
 0x49a   :  { %3688 = vst [vmem:[#allocation2 + $0xb8] sm:$0xff] %v3624_v54  ;;  %3919 = vmatmul.msk.f32.gmra.mxu3 %vm1767_vm6, %v2448_v57  ;;  %v2196_v54 = vmul.f32 %v6863_v7, %v7770_v45  ;;  %v2586_v57 = vadd.f32 3.0, %v2522_v28  ;;  %v2419_v19 = vmul.f32 %v2355_v27, %v6665_v61  ;;  %v2230_v18 = vadd.f32 3.0, %v2166_v25 }
 0x49c   :  { %v3079_v5 = vpop.f32.mrf.mxu2  ;;  %v2260_v32 = vadd.f32 3.0, %v2196_v54  ;;  %v2650_v13 = vmax.f32 %v2586_v57, 0.0 }
 0x49d   :  { %v3480_v2 = vpop.f32.mrf.mxu3 }
 0x49e   :  { %v3481_v47 = vadd.f32 %v3480_v2, %v3079_v5  ;;  %v7028_v63 = vpop.f32.mrf.mxu1  ;;  %v7771_v2 = vld [vmem:[#allocation120_spill] sm:$0xff]  ;;  %v2324_v41 = vmax.f32 %v2260_v32, 0.0  ;;  %v2714_v3 = vmin.f32 %v2650_v13, 6.0  ;;  %v7777_v13 = vld [vmem:[#allocation121_spill] sm:$0xff] }
 0x4a0   :  { %v3625_v39 = vadd.f32 %v6906_v50, %v3481_v47  ;;  %v2523_v47 = vmul.f32 %v6861_v24, %v7771_v2  ;;  %v2388_v10 = vmin.f32 %v2324_v41, 6.0  ;;  %v2778_v58 = vmul.f32 %v2714_v3, %v6665_v61  ;;  %v7779_v41 = vld [vmem:[#allocation84_spill] sm:$0xff] }
 0x4a1   :  { %3856 = vmatmul.msk.f32.gmra.mxu2 %vm1767_vm6, %v2775_v26  ;;  %3888 = vmatmul.msk.f32.gmra.mxu1 %vm1767_vm6, %v2417_v22  ;;  %v2292_v26 = vmax.f32 %v2228_v46, 0.0  ;;  %v7772_v22 = vld [vmem:[#allocation112_spill] sm:$0xff]  ;;  %v2525_v2 = vmul.f32 %v6861_v24, %v7777_v13 }
 0x4a2   :  { %3689 = vst [vmem:[#allocation2 + $0xc0] sm:$0xff] %v3625_v39  ;;  %3920 = vmatmul.msk.f32.gmra.mxu3 %vm1767_vm6, %v2449_v30  ;;  %v2165_v9 = vmul.f32 %v6674_v35, %v7772_v22  ;;  %v7773_v39 = vld [vmem:[#allocation82_spill] sm:$0xff]  ;;  %v2587_v60 = vadd.f32 3.0, %v2523_v47  ;;  %v2452_v12 = vmul.f32 %v2388_v10, %v6665_v61 }
 0x4a3   :  { %v2197_v30 = vmul.f32 %v6863_v7, %v7773_v39  ;;  %v2356_v31 = vmin.f32 %v2292_v26, 6.0  ;;  %v7778_v26 = vld [vmem:[#allocation17_spill] sm:$0xff]  ;;  %v2199_v39 = vmul.f32 %v6863_v7, %v7779_v41 }
 0x4a4   :  { %v3082_v6 = vpop.f32.mrf.mxu2  ;;  %v2229_v4 = vadd.f32 3.0, %v2165_v9  ;;  %v2167_v22 = vmul.f32 %v6674_v35, %v7778_v26 }
 0x4a5   :  { %v3483_v15 = vpop.f32.mrf.mxu3  ;;  %v2261_v29 = vadd.f32 3.0, %v2197_v30  ;;  %v2420_v28 = vmul.f32 %v2356_v31, %v6665_v61  ;;  %v2589_v30 = vadd.f32 3.0, %v2525_v2 }
 0x4a6   :  { %v3484_v14 = vadd.f32 %v3483_v15, %v3082_v6  ;;  %v7043_v23 = vpop.f32.mrf.mxu1  ;;  %v2651_v15 = vmax.f32 %v2587_v60, 0.0  ;;  %v2231_v31 = vadd.f32 3.0, %v2167_v22 }
 0x4a8   :  { %v3626_v56 = vadd.f32 %v6906_v50, %v3484_v14  ;;  %v7774_v14 = vld [vmem:[#allocation25_spill] sm:$0xff]  ;;  %v2715_v45 = vmin.f32 %v2651_v15, 6.0 }
 0x4a9   :  { %3857 = vmatmul.msk.f32.gmra.mxu2 %vm1767_vm6, %v2776_v36  ;;  %3889 = vmatmul.msk.f32.gmra.mxu1 %vm1767_vm6, %v2418_v20  ;;  %v2524_v36 = vmul.f32 %v6861_v24, %v7774_v14  ;;  %v2293_v20 = vmax.f32 %v2229_v4, 0.0 }
 0x4aa   :  { %3690 = vst [vmem:[#allocation2 + $0xc8] sm:$0xff] %v3626_v56  ;;  %3921 = vmatmul.msk.f32.gmra.mxu3 %vm1767_vm6, %v2450_v55  ;;  %v2325_v56 = vmax.f32 %v2261_v29, 0.0  ;;  %v7776_v55 = vld [vmem:[#allocation40_spill] sm:$0xff] }
 0x4ab   :  { %v2198_v42 = vmul.f32 %v6863_v7, %v7776_v55  ;;  %v2357_v54 = vmin.f32 %v2293_v20, 6.0  ;;  %v2588_v57 = vadd.f32 3.0, %v2524_v36  ;;  %v2295_v36 = vmax.f32 %v2231_v31, 0.0 }
 0x4ac   :  { %v3085_v0 = vpop.f32.mrf.mxu2  ;;  %v2389_v46 = vmin.f32 %v2325_v56, 6.0 }
 0x4ad   :  { %v3486_v40 = vpop.f32.mrf.mxu3  ;;  %v2421_v47 = vmul.f32 %v2357_v54, %v6665_v61  ;;  %v2359_v55 = vmin.f32 %v2295_v36, 6.0 }
 0x4ae   :  { %v3487_v5 = vadd.f32 %v3486_v40, %v3085_v0  ;;  %v7058_v16 = vpop.f32.mrf.mxu1  ;;  %v2262_v0 = vadd.f32 3.0, %v2198_v42 }
 0x4b0   :  { %v3627_v59 = vadd.f32 %v6906_v50, %v3487_v5  ;;  %v2779_v5 = vmul.f32 %v2715_v45, %v6665_v61 }
 0x4b1   :  { %3858 = vmatmul.msk.f32.gmra.mxu2 %vm1767_vm6, %v2777_v17  ;;  %3890 = vmatmul.msk.f32.gmra.mxu1 %vm1767_vm6, %v2419_v19  ;;  %v2652_v17 = vmax.f32 %v2588_v57, 0.0  ;;  %v2294_v19 = vmax.f32 %v2230_v18, 0.0 }
 0x4b2   :  { %3691 = vst [vmem:[#allocation2 + $0xd0] sm:$0xff] %v3627_v59  ;;  %3922 = vmatmul.msk.f32.gmra.mxu3 %vm1767_vm6, %v2451_v34  ;;  %v2453_v59 = vmul.f32 %v2389_v46, %v6665_v61  ;;  %v2326_v34 = vmax.f32 %v2262_v0, 0.0 }
 0x4b3   :  { %v2716_v60 = vmin.f32 %v2652_v17, 6.0  ;;  %v2358_v3 = vmin.f32 %v2294_v19, 6.0  ;;  %v7783_v19 = vld [vmem:[#allocation87_spill] sm:$0xff] }
 0x4b4   :  { %v3088_v37 = vpop.f32.mrf.mxu2  ;;  %v2390_v4 = vmin.f32 %v2326_v34, 6.0  ;;  %v2201_v26 = vmul.f32 %v6863_v7, %v7783_v19 }
 0x4b5   :  { %v3489_v6 = vpop.f32.mrf.mxu3  ;;  %v2780_v15 = vmul.f32 %v2716_v60, %v6665_v61  ;;  %v2422_v14 = vmul.f32 %v2358_v3, %v6665_v61 }
 0x4b6   :  { %v3490_v8 = vadd.f32 %v3489_v6, %v3088_v37  ;;  %v7073_v38 = vpop.f32.mrf.mxu1  ;;  %v2263_v37 = vadd.f32 3.0, %v2199_v39  ;;  %v2454_v62 = vmul.f32 %v2390_v4, %v6665_v61  ;;  %v2265_v41 = vadd.f32 3.0, %v2201_v26  ;;  %v7784_v4 = vld [vmem:[#allocation74_spill] sm:$0xff] }
 0x4b8   :  { %v3628_v53 = vadd.f32 %v6906_v50, %v3490_v8  ;;  %v2653_v8 = vmax.f32 %v2589_v30, 0.0  ;;  %v2327_v25 = vmax.f32 %v2263_v37, 0.0  ;;  %v2528_v37 = vmul.f32 %v6861_v24, %v7784_v4 }
 0x4b9   :  { %3859 = vmatmul.msk.f32.gmra.mxu2 %vm1767_vm6, %v2778_v58  ;;  %3891 = vmatmul.msk.f32.gmra.mxu1 %vm1767_vm6, %v2420_v28  ;;  %v7780_v58 = vld [vmem:[#allocation69_spill] sm:$0xff] }
 0x4ba   :  { %3692 = vst [vmem:[#allocation2 + $0xd8] sm:$0xff] %v3628_v53  ;;  %3923 = vmatmul.msk.f32.gmra.mxu3 %vm1767_vm6, %v2452_v12  ;;  %v2526_v28 = vmul.f32 %v6861_v24, %v7780_v58  ;;  %v7781_v53 = vld [vmem:[#allocation5_spill] sm:$0xff]  ;;  %v2717_v56 = vmin.f32 %v2653_v8, 6.0  ;;  %v2391_v54 = vmin.f32 %v2327_v25, 6.0  ;;  %v2329_v8 = vmax.f32 %v2265_v41, 0.0 }
 0x4bb   :  { %v2200_v12 = vmul.f32 %v6863_v7, %v7781_v53  ;;  %v2592_v58 = vadd.f32 3.0, %v2528_v37 }
 0x4bc   :  { %v3091_v27 = vpop.f32.mrf.mxu2  ;;  %v2590_v42 = vadd.f32 3.0, %v2526_v28  ;;  %v2781_v0 = vmul.f32 %v2717_v56, %v6665_v61 }
 0x4bd   :  { %v3492_v43 = vpop.f32.mrf.mxu3  ;;  %v2264_v57 = vadd.f32 3.0, %v2200_v12 }
 0x4be   :  { %v3493_v32 = vadd.f32 %v3492_v43, %v3091_v27  ;;  %v7088_v40 = vpop.f32.mrf.mxu1  ;;  %v2423_v43 = vmul.f32 %v2359_v55, %v6665_v61 }
 0x4bf   :  { %v2328_v17 = vmax.f32 %v2264_v57, 0.0 }
 0x4c0   :  { %v3629_v9 = vadd.f32 %v6906_v50, %v3493_v32  ;;  %v2654_v32 = vmax.f32 %v2590_v42, 0.0  ;;  %v2656_v42 = vmax.f32 %v2592_v58, 0.0 }
 0x4c1   :  { %3860 = vmatmul.msk.f32.gmra.mxu2 %vm1767_vm6, %v2779_v5  ;;  %3892 = vmatmul.msk.f32.gmra.mxu1 %vm1767_vm6, %v2421_v47  ;;  %v7782_v5 = vld [vmem:[#allocation29_spill] sm:$0xff]  ;;  %v2455_v47 = vmul.f32 %v2391_v54, %v6665_v61  ;;  %v2392_v34 = vmin.f32 %v2328_v17, 6.0 }
 0x4c2   :  { %3693 = vst [vmem:[#allocation2 + $0xe0] sm:$0xff] %v3629_v9  ;;  %3924 = vmatmul.msk.f32.gmra.mxu3 %vm1767_vm6, %v2453_v59  ;;  %v2527_v13 = vmul.f32 %v6861_v24, %v7782_v5  ;;  %v2718_v22 = vmin.f32 %v2654_v32, 6.0 }
 0x4c4   :  { %v3094_v35 = vpop.f32.mrf.mxu2  ;;  %v2591_v9 = vadd.f32 3.0, %v2527_v13  ;;  %v2782_v31 = vmul.f32 %v2718_v22, %v6665_v61 }
 0x4c5   :  { %v3495_v10 = vpop.f32.mrf.mxu3 }
 0x4c6   :  { %v3496_v29 = vadd.f32 %v3495_v10, %v3094_v35  ;;  %v7103_v6 = vpop.f32.mrf.mxu1  ;;  %v2655_v35 = vmax.f32 %v2591_v9, 0.0 }
 0x4c8   :  { %v3630_v20 = vadd.f32 %v6906_v50, %v3496_v29  ;;  %v2456_v29 = vmul.f32 %v2392_v34, %v6665_v61  ;;  %v7788_v34 = vld [vmem:[#allocation43_spill] sm:$0xff] }
 0x4c9   :  { %3861 = vmatmul.msk.f32.gmra.mxu2 %vm1767_vm6, %v2780_v15  ;;  %3893 = vmatmul.msk.f32.gmra.mxu1 %vm1767_vm6, %v2422_v14  ;;  %v7785_v15 = vld [vmem:[#allocation92_spill] sm:$0xff]  ;;  %v2530_v41 = vmul.f32 %v6861_v24, %v7788_v34 }
 0x4ca   :  { %3694 = vst [vmem:[#allocation2 + $0xe8] sm:$0xff] %v3630_v20  ;;  %3925 = vmatmul.msk.f32.gmra.mxu3 %vm1767_vm6, %v2454_v62  ;;  %v2202_v14 = vmul.f32 %v6863_v7, %v7785_v15  ;;  %v2393_v20 = vmin.f32 %v2329_v8, 6.0 }
 0x4cb   :  { %v2594_v4 = vadd.f32 3.0, %v2530_v41 }
 0x4cc   :  { %v3097_v45 = vpop.f32.mrf.mxu2  ;;  %v2266_v62 = vadd.f32 3.0, %v2202_v14 }
 0x4cd   :  { %v3498_v18 = vpop.f32.mrf.mxu3  ;;  %v2658_v58 = vmax.f32 %v2594_v4, 0.0 }
 0x4ce   :  { %v3499_v27 = vadd.f32 %v3498_v18, %v3097_v45  ;;  %v7116_v46 = vpop.f32.mrf.mxu1  ;;  %v7786_v45 = vld [vmem:[#allocation19_spill] sm:$0xff]  ;;  %v2457_v18 = vmul.f32 %v2393_v20, %v6665_v61 }
 0x4cf   :  { %v2529_v54 = vmul.f32 %v6861_v24, %v7786_v45 }
 0x4d0   :  { %v3631_v2 = vadd.f32 %v6906_v50, %v3499_v27  ;;  %v2330_v27 = vmax.f32 %v2266_v62, 0.0 }
 0x4d1   :  { %3862 = vmatmul.msk.f32.gmra.mxu2 %vm1767_vm6, %v2781_v0  ;;  %3894 = vmatmul.msk.f32.gmra.mxu1 %vm1767_vm6, %v2423_v43  ;;  %v7787_v0 = vld [vmem:[#allocation9_spill] sm:$0xff]  ;;  %v2593_v5 = vadd.f32 3.0, %v2529_v54 }
 0x4d2   :  { %3695 = vst [vmem:[#allocation2 + $0xf0] sm:$0xff] %v3631_v2  ;;  %3926 = vmatmul.msk.f32.gmra.mxu3 %vm1767_vm6, %v2455_v47  ;;  %v2203_v43 = vmul.f32 %v6863_v7, %v7787_v0  ;;  %v2394_v2 = vmin.f32 %v2330_v27, 6.0 }
 0x4d4   :  { %v3100_v59 = vpop.f32.mrf.mxu2  ;;  %v2267_v47 = vadd.f32 3.0, %v2203_v43 }
 0x4d5   :  { %v3501_v39 = vpop.f32.mrf.mxu3 }
 0x4d6   :  { %v3502_v30 = vadd.f32 %v3501_v39, %v3100_v59  ;;  %v3408_v60 = vpop.f32.mrf.mxu1  ;;  %v2657_v59 = vmax.f32 %v2593_v5, 0.0  ;;  %v7792_v5 = vld [vmem:[#allocation111_spill] sm:$0xff] }
 0x4d7   :  { %v3409_v3 = vadd.f32 %v3408_v60, %v6889_v49  ;;  %v2719_v49 = vmin.f32 %v2655_v35, 6.0  ;;  %v2331_v60 = vmax.f32 %v2267_v47, 0.0 }
 0x4d8   :  { %v3632_v10 = vadd.f32 %v6906_v50, %v3502_v30  ;;  %v2458_v30 = vmul.f32 %v2394_v2, %v6665_v61 }
 0x4d9   :  { %v3601_v36 = vadd.f32 %v6906_v50, %v3409_v3  ;;  %3863 = vmatmul.msk.f32.gmra.mxu2 %vm1767_vm6, %v2782_v31  ;;  %v2783_v55 = vmul.f32 %v2719_v49, %v6665_v61  ;;  %v7789_v3 = vld [vmem:[#allocation104_spill] sm:$0xff] }
 0x4da   :  { %3696 = vst [vmem:[#allocation2 + $0xf8] sm:$0xff] %v3632_v10  ;;  %3927 = vmatmul.msk.f32.gmra.mxu3 %vm1767_vm6, %v2456_v29  ;;  %v2204_v31 = vmul.f32 %v6863_v7, %v7789_v3  ;;  %v2395_v10 = vmin.f32 %v2331_v60, 6.0 }
 0x4db   :  { %3665 = vst [vmem:[#allocation2] sm:$0xff] %v3601_v36 }
 0x4dc   :  { %v3103_v28 = vpop.f32.mrf.mxu2  ;;  %v2268_v29 = vadd.f32 3.0, %v2204_v31 }
 0x4dd   :  { %v3504_v25 = vpop.f32.mrf.mxu3 }
 0x4de   :  { %v3505_v53 = vadd.f32 %v3504_v25, %v3103_v28  ;;  %v3411_v12 = vpop.f32.mrf.mxu1  ;;  %v7790_v28 = vld [vmem:[#allocation48_spill] sm:$0xff]  ;;  %v2459_v25 = vmul.f32 %v2395_v10, %v6665_v61 }
 0x4df   :  { %v3412_v56 = vadd.f32 %v3411_v12, %v6908_v1  ;;  %v2720_v1 = vmin.f32 %v2656_v42, 6.0  ;;  %v2531_v20 = vmul.f32 %v6861_v24, %v7790_v28  ;;  %v7791_v12 = vld [vmem:[#allocation108_spill] sm:$0xff] }
 0x4e0   :  { %v3633_v57 = vadd.f32 %v6906_v50, %v3505_v53  ;;  %v2332_v53 = vmax.f32 %v2268_v29, 0.0 }
 0x4e1   :  { %v3602_v32 = vadd.f32 %v6906_v50, %v3412_v56  ;;  %3864 = vmatmul.msk.f32.gmra.mxu2 %vm1767_vm6, %v2783_v55  ;;  %v2784_v9 = vmul.f32 %v2720_v1, %v6665_v61  ;;  %v2205_v56 = vmul.f32 %v6863_v7, %v7791_v12  ;;  %v2595_v42 = vadd.f32 3.0, %v2531_v20 }
 0x4e2   :  { %3697 = vst [vmem:[#allocation2 + $0x100] sm:$0xff] %v3633_v57  ;;  %3928 = vmatmul.msk.f32.gmra.mxu3 %vm1767_vm6, %v2457_v18  ;;  %v2396_v54 = vmin.f32 %v2332_v53, 6.0 }
 0x4e3   :  { %3666 = vst [vmem:[#allocation2 + $0x8] sm:$0xff] %v3602_v32  ;;  %v2269_v57 = vadd.f32 3.0, %v2205_v56  ;;  %v2659_v1 = vmax.f32 %v2595_v42, 0.0 }
 0x4e4   :  { %v3106_v13 = vpop.f32.mrf.mxu2  ;;  %v2460_v47 = vmul.f32 %v2396_v54, %v6665_v61 }
 0x4e5   :  { %v3507_v17 = vpop.f32.mrf.mxu3 }
 0x4e6   :  { %v3508_v19 = vadd.f32 %v3507_v17, %v3106_v13  ;;  %v3414_v26 = vpop.f32.mrf.mxu1  ;;  %v2532_v13 = vmul.f32 %v6861_v24, %v7792_v5  ;;  %v2333_v17 = vmax.f32 %v2269_v57, 0.0  ;;  %v7797_v57 = vld [vmem:[#allocation20_spill] sm:$0xff] }
 0x4e7   :  { %v3415_v22 = vadd.f32 %v3414_v26, %v6923_v11  ;;  %v2721_v11 = vmin.f32 %v2657_v59, 6.0 }
 0x4e8   :  { %v3634_v39 = vadd.f32 %v6906_v50, %v3508_v19  ;;  %v7793_v19 = vld [vmem:[#allocation14_spill] sm:$0xff]  ;;  %v2397_v34 = vmin.f32 %v2333_v17, 6.0 }
 0x4e9   :  { %v3603_v35 = vadd.f32 %v6906_v50, %v3415_v22  ;;  %3865 = vmatmul.msk.f32.gmra.mxu2 %vm1767_vm6, %v2784_v9  ;;  %v2785_v49 = vmul.f32 %v2721_v11, %v6665_v61  ;;  %v2206_v26 = vmul.f32 %v6863_v7, %v7793_v19  ;;  %v2596_v9 = vadd.f32 3.0, %v2532_v13  ;;  %v7794_v11 = vld [vmem:[#allocation71_spill] sm:$0xff] }
 0x4ea   :  { %3698 = vst [vmem:[#allocation2 + $0x108] sm:$0xff] %v3634_v39  ;;  %3929 = vmatmul.msk.f32.gmra.mxu3 %vm1767_vm6, %v2458_v30  ;;  %v2533_v4 = vmul.f32 %v6861_v24, %v7794_v11  ;;  %v2461_v10 = vmul.f32 %v2397_v34, %v6665_v61  ;;  %v7799_v34 = vld [vmem:[#allocation22_spill] sm:$0xff] }
 0x4eb   :  { %3667 = vst [vmem:[#allocation2 + $0x10] sm:$0xff] %v3603_v35  ;;  %v2270_v41 = vadd.f32 3.0, %v2206_v26  ;;  %v2660_v35 = vmax.f32 %v2596_v9, 0.0  ;;  %v7798_v26 = vld [vmem:[#allocation39_spill] sm:$0xff] }
 0x4ec   :  { %v3109_v37 = vpop.f32.mrf.mxu2 }
 0x4ed   :  { %v3510_v8 = vpop.f32.mrf.mxu3  ;;  %v2334_v29 = vmax.f32 %v2270_v41, 0.0  ;;  %v2209_v41 = vmul.f32 %v6863_v7, %v7799_v34 }
 0x4ee   :  { %v3511_v15 = vadd.f32 %v3510_v8, %v3109_v37  ;;  %v3417_v14 = vpop.f32.mrf.mxu1  ;;  %v7795_v8 = vld [vmem:[#allocation116_spill] sm:$0xff] }
 0x4ef   :  { %v3418_v36 = vadd.f32 %v3417_v14, %v6938_v51  ;;  %v2722_v51 = vmin.f32 %v2658_v58, 6.0  ;;  %v2398_v58 = vmin.f32 %v2334_v29, 6.0 }
 0x4f0   :  { %v3635_v62 = vadd.f32 %v6906_v50, %v3511_v15  ;;  %v2207_v15 = vmul.f32 %v6863_v7, %v7795_v8  ;;  %v7800_v8 = vld [vmem:[#allocation23_spill] sm:$0xff] }
 0x4f1   :  { %v3604_v55 = vadd.f32 %v6906_v50, %v3418_v36  ;;  %3866 = vmatmul.msk.f32.gmra.mxu2 %vm1767_vm6, %v2785_v49  ;;  %v2786_v32 = vmul.f32 %v2722_v51, %v6665_v61  ;;  %v2597_v36 = vadd.f32 3.0, %v2533_v4 }
 0x4f2   :  { %3699 = vst [vmem:[#allocation2 + $0x110] sm:$0xff] %v3635_v62  ;;  %3930 = vmatmul.msk.f32.gmra.mxu3 %vm1767_vm6, %v2459_v25  ;;  %v2271_v28 = vadd.f32 3.0, %v2207_v15  ;;  %v2536_v15 = vmul.f32 %v6861_v24, %v7800_v8 }
 0x4f3   :  { %3668 = vst [vmem:[#allocation2 + $0x18] sm:$0xff] %v3604_v55  ;;  %v2661_v56 = vmax.f32 %v2597_v36, 0.0  ;;  %v7796_v55 = vld [vmem:[#allocation77_spill] sm:$0xff] }
 0x4f4   :  { %v3112_v45 = vpop.f32.mrf.mxu2  ;;  %v2534_v51 = vmul.f32 %v6861_v24, %v7796_v55  ;;  %v2335_v54 = vmax.f32 %v2271_v28, 0.0 }
 0x4f5   :  { %v3513_v18 = vpop.f32.mrf.mxu3 }
 0x4f6   :  { %v3514_v27 = vadd.f32 %v3513_v18, %v3112_v45  ;;  %v3420_v0 = vpop.f32.mrf.mxu1  ;;  %v2462_v45 = vmul.f32 %v2398_v58, %v6665_v61  ;;  %v2208_v18 = vmul.f32 %v6863_v7, %v7797_v57 }
 0x4f7   :  { %v3421_v43 = vadd.f32 %v3420_v0, %v6953_v44  ;;  %v2723_v44 = vmin.f32 %v2659_v1, 6.0  ;;  %v2598_v0 = vadd.f32 3.0, %v2534_v51 }
 0x4f8   :  { %v3636_v2 = vadd.f32 %v6906_v50, %v3514_v27  ;;  %v2272_v1 = vadd.f32 3.0, %v2208_v18 }
 0x4f9   :  { %v3605_v22 = vadd.f32 %v6906_v50, %v3421_v43  ;;  %3867 = vmatmul.msk.f32.gmra.mxu2 %vm1767_vm6, %v2786_v32  ;;  %v2787_v31 = vmul.f32 %v2723_v44, %v6665_v61  ;;  %v2399_v32 = vmin.f32 %v2335_v54, 6.0  ;;  %v2662_v19 = vmax.f32 %v2598_v0, 0.0  ;;  %v7802_v54 = vld [vmem:[#allocation73_spill] sm:$0xff]  ;;  %v7803_v0 = vld [vmem:[#allocation32_spill] sm:$0xff] }
 0x4fa   :  { %3700 = vst [vmem:[#allocation2 + $0x118] sm:$0xff] %v3636_v2  ;;  %3931 = vmatmul.msk.f32.gmra.mxu3 %vm1767_vm6, %v2460_v47  ;;  %v2537_v57 = vmul.f32 %v6861_v24, %v7802_v54 }
 0x4fb   :  { %3669 = vst [vmem:[#allocation2 + $0x20] sm:$0xff] %v3605_v22  ;;  %v2535_v22 = vmul.f32 %v6861_v24, %v7798_v26  ;;  %v2463_v9 = vmul.f32 %v2399_v32, %v6665_v61 }
 0x4fc   :  { %v3115_v59 = vpop.f32.mrf.mxu2 }
 0x4fd   :  { %v3516_v39 = vpop.f32.mrf.mxu3 }
 0x4fe   :  { %v3517_v30 = vadd.f32 %v3516_v39, %v3115_v59  ;;  %v3423_v60 = vpop.f32.mrf.mxu1  ;;  %v2336_v59 = vmax.f32 %v2272_v1, 0.0  ;;  %v7217_v39 = vld [vmem:[%s7324_s2 + $0x40] ss:$0 sm:$0xff]  ;;  %v2601_v1 = vadd.f32 3.0, %v2537_v57  ;;  %v7808_v57 = vld [vmem:[#allocation24_spill] sm:$0xff]  ;;  %s3998_s2 = smov [#allocation2]  }
 0x4ff   :  { %v3424_v3 = vadd.f32 %v3423_v60, %v6968_v33  ;;  %v2724_v33 = vmin.f32 %v2660_v35, 6.0  ;;  %s3733_s24 = sshll.u32 %s3998_s2, 4  ;;  %s3734_s24 = int_to_ptr.vmem [resolvable:$true] %s3733_s24 }
 0x500   :  { %v3637_v37 = vadd.f32 %v6906_v50, %v3517_v30  ;;  %v2599_v30 = vadd.f32 3.0, %v2535_v22 }
 0x501   :  { %v3606_v14 = vadd.f32 %v6906_v50, %v3424_v3  ;;  %3868 = vmatmul.msk.f32.gmra.mxu2 %vm1767_vm6, %v2787_v31  ;;  %v2788_v12 = vmul.f32 %v2724_v33, %v6665_v61  ;;  %v2400_v3 = vmin.f32 %v2336_v59, 6.0  ;;  %v2273_v31 = vadd.f32 3.0, %v2209_v41 }
 0x502   :  { %3701 = vst [vmem:[#allocation2 + $0x120] sm:$0xff] %v3637_v37  ;;  %3932 = vmatmul.msk.f32.gmra.mxu3 %vm1767_vm6, %v2461_v10  ;;  %v2663_v29 = vmax.f32 %v2599_v30, 0.0 }
 0x503   :  { %3670 = vst [vmem:[#allocation2 + $0x28] sm:$0xff] %v3606_v14  ;;  %v2464_v33 = vmul.f32 %v2400_v3, %v6665_v61  ;;  %v2337_v36 = vmax.f32 %v2273_v31, 0.0 }
 0x504   :  { %v3118_v49 = vpop.f32.mrf.mxu2 }
 0x505   :  { %v3519_v20 = vpop.f32.mrf.mxu3 }
 0x506   :  { %v3520_v62 = vadd.f32 %v3519_v20, %v3118_v49  ;;  %v3426_v25 = vpop.f32.mrf.mxu1  ;;  %v7801_v49 = vld [vmem:[#allocation27_spill] sm:$0xff]  ;;  %v2600_v20 = vadd.f32 3.0, %v2536_v15 }
 0x507   :  { %v3427_v53 = vadd.f32 %v3426_v25, %v6983_v21  ;;  %v2725_v21 = vmin.f32 %v2661_v56, 6.0  ;;  %v2210_v58 = vmul.f32 %v6863_v7, %v7801_v49  ;;  %v2401_v25 = vmin.f32 %v2337_v36, 6.0 }
 0x508   :  { %v3638_v42 = vadd.f32 %v6906_v50, %v3520_v62 }
 0x509   :  { %v3607_v27 = vadd.f32 %v6906_v50, %v3427_v53  ;;  %3869 = vmatmul.msk.f32.gmra.mxu2 %vm1767_vm6, %v2788_v12  ;;  %v2789_v17 = vmul.f32 %v2725_v21, %v6665_v61  ;;  %v2274_v53 = vadd.f32 3.0, %v2210_v58 }
 0x50a   :  { %3702 = vst [vmem:[#allocation2 + $0x128] sm:$0xff] %v3638_v42  ;;  %3933 = vmatmul.msk.f32.gmra.mxu3 %vm1767_vm6, %v2462_v45  ;;  %v2664_v45 = vmax.f32 %v2600_v20, 0.0 }
 0x50b   :  { %3671 = vst [vmem:[#allocation2 + $0x30] sm:$0xff] %v3607_v27  ;;  %v2465_v27 = vmul.f32 %v2401_v25, %v6665_v61  ;;  %v2338_v21 = vmax.f32 %v2274_v53, 0.0 }
 0x50c   :  { %v3121_v43 = vpop.f32.mrf.mxu2 }
 0x50d   :  { %v3522_v5 = vpop.f32.mrf.mxu3 }
 0x50e   :  { %v3523_v13 = vadd.f32 %v3522_v5, %v3121_v43  ;;  %v3429_v2 = vpop.f32.mrf.mxu1  ;;  %v2211_v43 = vmul.f32 %v6863_v7, %v7803_v0 }
 0x50f   :  { %v3430_v47 = vadd.f32 %v3429_v2, %v6998_v48 }
 0x510   :  { %v3639_v44 = vadd.f32 %v6906_v50, %v3523_v13  ;;  %v2726_v50 = vmin.f32 %v2662_v19, 6.0  ;;  %v2402_v13 = vmin.f32 %v2338_v21, 6.0  ;;  %v2275_v2 = vadd.f32 3.0, %v2211_v43  ;;  %v7809_v43 = vld [vmem:[#allocation8_spill] sm:$0xff] }
 0x511   :  { %v3608_v48 = vadd.f32 %v7217_v39, %v3430_v47  ;;  %3870 = vmatmul.msk.f32.gmra.mxu2 %vm1767_vm6, %v2789_v17 }
 0x512   :  { %3703 = vst [vmem:[#allocation2 + $0x130] sm:$0xff] %v3639_v44  ;;  %3934 = vmatmul.msk.f32.gmra.mxu3 %vm1767_vm6, %v2463_v9  ;;  %v2790_v10 = vmul.f32 %v2726_v50, %v6665_v61  ;;  %v2665_v44 = vmax.f32 %v2601_v1, 0.0  ;;  %v7804_v9 = vld [vmem:[#allocation109_spill] sm:$0xff]  ;;  %v2466_v41 = vmul.f32 %v2402_v13, %v6665_v61  ;;  %v7805_v50 = vld [vmem:[#allocation6_spill] sm:$0xff] }
 0x513   :  { %3672 = vst [vmem:[#allocation2 + $0x38] sm:$0xff] %v3608_v48  ;;  %v2538_v59 = vmul.f32 %v6861_v24, %v7804_v9  ;;  %v2339_v48 = vmax.f32 %v2275_v2, 0.0  ;;  %v2212_v30 = vmul.f32 %v6863_v7, %v7805_v50  ;;  %v7810_v9 = vld [vmem:[#allocation35_spill] sm:$0xff]  ;;  %v7811_v50 = vld [vmem:[#allocation38_spill] sm:$0xff] }
 0x514   :  { %v3124_v60 = vpop.f32.mrf.mxu2 }
 0x515   :  { %v3525_v35 = vpop.f32.mrf.mxu3  ;;  %v2602_v3 = vadd.f32 3.0, %v2538_v59  ;;  %v2541_v59 = vmul.f32 %v6861_v24, %v7810_v9 }
 0x516   :  { %v3526_v11 = vadd.f32 %v3525_v35, %v3124_v60  ;;  %v3432_v4 = vpop.f32.mrf.mxu1  ;;  %v2403_v35 = vmin.f32 %v2339_v48, 6.0 }
 0x517   :  { %v3433_v37 = vadd.f32 %v3432_v4, %v7013_v52  ;;  %v2727_v52 = vmin.f32 %v2663_v29, 6.0  ;;  %v2666_v15 = vmax.f32 %v2602_v3, 0.0 }
 0x518   :  { %v3640_v14 = vadd.f32 %v7217_v39, %v3526_v11  ;;  %v2276_v11 = vadd.f32 3.0, %v2212_v30  ;;  %v2467_v49 = vmul.f32 %v2403_v35, %v6665_v61  ;;  %v2215_v30 = vmul.f32 %v6863_v7, %v7811_v50 }
 0x519   :  { %v3609_v28 = vadd.f32 %v7217_v39, %v3433_v37  ;;  %3871 = vmatmul.msk.f32.gmra.mxu2 %vm1767_vm6, %v2790_v10  ;;  %v2791_v42 = vmul.f32 %v2727_v52, %v6665_v61 }
 0x51a   :  { %3704 = vst [vmem:[#allocation2 + $0x138] sm:$0xff] %v3640_v14  ;;  %3935 = vmatmul.msk.f32.gmra.mxu3 %vm1767_vm6, %v2464_v33  ;;  %v7806_v14 = vld [vmem:[#allocation110_spill] sm:$0xff]  ;;  %v2340_v58 = vmax.f32 %v2276_v11, 0.0 }
 0x51b   :  { %3673 = vst [vmem:[#allocation2 + $0x40] sm:$0xff] %v3609_v28  ;;  %v2539_v33 = vmul.f32 %v6861_v24, %v7806_v14  ;;  %v7807_v28 = vld [vmem:[#allocation34_spill] sm:$0xff] }
 0x51c   :  { %v3127_v62 = vpop.f32.mrf.mxu2  ;;  %v2213_v52 = vmul.f32 %v6863_v7, %v7807_v28  ;;  %v2404_v53 = vmin.f32 %v2340_v58, 6.0 }
 0x51d   :  { %v3528_v12 = vpop.f32.mrf.mxu3 }
 0x51e   :  { %v3529_v56 = vadd.f32 %v3528_v12, %v3127_v62  ;;  %v3435_v55 = vpop.f32.mrf.mxu1  ;;  %v2603_v62 = vadd.f32 3.0, %v2539_v33  ;;  %v2277_v12 = vadd.f32 3.0, %v2213_v52  ;;  %v2468_v21 = vmul.f32 %v2404_v53, %v6665_v61 }
 0x51f   :  { %v3436_v51 = vadd.f32 %v3435_v55, %v7028_v63  ;;  %v2728_v63 = vmin.f32 %v2664_v45, 6.0 }
 0x520   :  { %v3641_v18 = vadd.f32 %v7217_v39, %v3529_v56  ;;  %v2667_v54 = vmax.f32 %v2603_v62, 0.0  ;;  %v2341_v0 = vmax.f32 %v2277_v12, 0.0 }
 0x521   :  { %v3610_v32 = vadd.f32 %v7217_v39, %v3436_v51  ;;  %3872 = vmatmul.msk.f32.gmra.mxu2 %vm1767_vm6, %v2791_v42  ;;  %v2792_v22 = vmul.f32 %v2728_v63, %v6665_v61 }
 0x522   :  { %3705 = vst [vmem:[#allocation2 + $0x140] sm:$0xff] %v3641_v18  ;;  %3936 = vmatmul.msk.f32.gmra.mxu3 %vm1767_vm6, %v2465_v27  ;;  %v2540_v18 = vmul.f32 %v6861_v24, %v7808_v57  ;;  %v2405_v13 = vmin.f32 %v2341_v0, 6.0 }
 0x523   :  { %3674 = vst [vmem:[#allocation2 + $0x48] sm:$0xff] %v3610_v32  ;;  %v2214_v32 = vmul.f32 %v6863_v7, %v7809_v43 }
 0x524   :  { %v3130_v5 = vpop.f32.mrf.mxu2  ;;  %v2604_v1 = vadd.f32 3.0, %v2540_v18 }
 0x525   :  { %v3531_v47 = vpop.f32.mrf.mxu3  ;;  %v2278_v2 = vadd.f32 3.0, %v2214_v32 }
 0x526   :  { %v3532_v17 = vadd.f32 %v3531_v47, %v3130_v5  ;;  %v3438_v19 = vpop.f32.mrf.mxu1 }
 0x527   :  { %v3439_v26 = vadd.f32 %v3438_v19, %v7043_v23  ;;  %v2729_v23 = vmin.f32 %v2665_v44, 6.0  ;;  %v2668_v44 = vmax.f32 %v2604_v1, 0.0  ;;  %v2342_v48 = vmax.f32 %v2278_v2, 0.0 }
 0x528   :  { %v3642_v34 = vadd.f32 %v7217_v39, %v3532_v17 }
 0x529   :  { %v3611_v60 = vadd.f32 %v7217_v39, %v3439_v26  ;;  %3873 = vmatmul.msk.f32.gmra.mxu2 %vm1767_vm6, %v2792_v22  ;;  %v2793_v8 = vmul.f32 %v2729_v23, %v6665_v61  ;;  %v2605_v23 = vadd.f32 3.0, %v2541_v59  ;;  %v2406_v24 = vmin.f32 %v2342_v48, 6.0 }
 0x52a   :  { %3706 = vst [vmem:[#allocation2 + $0x148] sm:$0xff] %v3642_v34  ;;  %3937 = vmatmul.msk.f32.gmra.mxu3 %vm1767_vm6, %v2466_v41  ;;  %v2469_v41 = vmul.f32 %v2405_v13, %v6665_v61 }
 0x52b   :  { %3675 = vst [vmem:[#allocation2 + $0x50] sm:$0xff] %v3611_v60 }
 0x52c   :  { %v3133_v31 = vpop.f32.mrf.mxu2 }
 0x52d   :  { %v3534_v4 = vpop.f32.mrf.mxu3 }
 0x52e   :  { %v3535_v37 = vadd.f32 %v3534_v4, %v3133_v31  ;;  %v3441_v10 = vpop.f32.mrf.mxu1  ;;  %v2279_v31 = vadd.f32 3.0, %v2215_v30 }
 0x52f   :  { %v3442_v29 = vadd.f32 %v3441_v10, %v7058_v16  ;;  %v2730_v16 = vmin.f32 %v2666_v15, 6.0  ;;  %v2669_v10 = vmax.f32 %v2605_v23, 0.0 }
 0x530   :  { %v3643_v36 = vadd.f32 %v7217_v39, %v3535_v37  ;;  %v2343_v15 = vmax.f32 %v2279_v31, 0.0 }
 0x531   :  { %v3612_v20 = vadd.f32 %v7217_v39, %v3442_v29  ;;  %3874 = vmatmul.msk.f32.gmra.mxu2 %vm1767_vm6, %v2793_v8  ;;  %v2794_v45 = vmul.f32 %v2730_v16, %v6665_v61  ;;  %v2470_v8 = vmul.f32 %v2406_v24, %v6665_v61  ;;  %v2733_v33 = vmin.f32 %v2669_v10, 6.0 }
 0x532   :  { %3707 = vst [vmem:[#allocation2 + $0x150] sm:$0xff] %v3643_v36  ;;  %3938 = vmatmul.msk.f32.gmra.mxu3 %vm1767_vm6, %v2467_v49  ;;  %v2407_v49 = vmin.f32 %v2343_v15, 6.0 }
 0x533   :  { %3676 = vst [vmem:[#allocation2 + $0x58] sm:$0xff] %v3612_v20  ;;  %v2797_v20 = vmul.f32 %v2733_v33, %v6665_v61 }
 0x534   :  { %v3136_v25 = vpop.f32.mrf.mxu2  ;;  %v2471_v62 = vmul.f32 %v2407_v49, %v6665_v61 }
 0x535   :  { %v3537_v56 = vpop.f32.mrf.mxu3 }
 0x536   :  { %v3538_v55 = vadd.f32 %v3537_v56, %v3136_v25  ;;  %v3444_v51 = vpop.f32.mrf.mxu1 }
 0x537   :  { %v3445_v42 = vadd.f32 %v3444_v51, %v7073_v38  ;;  %v2731_v38 = vmin.f32 %v2667_v54, 6.0 }
 0x538   :  { %v3644_v27 = vadd.f32 %v7217_v39, %v3538_v55 }
 0x539   :  { %v3613_v63 = vadd.f32 %v7217_v39, %v3445_v42  ;;  %3875 = vmatmul.msk.f32.gmra.mxu2 %vm1767_vm6, %v2794_v45  ;;  %v2795_v22 = vmul.f32 %v2731_v38, %v6665_v61 }
 0x53a   :  { %3708 = vst [vmem:[#allocation2 + $0x158] sm:$0xff] %v3644_v27  ;;  %3939 = vmatmul.msk.f32.gmra.mxu3 %vm1767_vm6, %v2468_v21 }
 0x53b   :  { %3677 = vst [vmem:[#allocation2 + $0x60] sm:$0xff] %v3613_v63 }
 0x53c   :  { %v3139_v5 = vpop.f32.mrf.mxu2 }
 0x53d   :  { %v3540_v47 = vpop.f32.mrf.mxu3 }
 0x53e   :  { %v3541_v17 = vadd.f32 %v3540_v47, %v3139_v5  ;;  %v3447_v19 = vpop.f32.mrf.mxu1 }
 0x53f   :  { %v3448_v26 = vadd.f32 %v3447_v19, %v7088_v40  ;;  %v2732_v40 = vmin.f32 %v2668_v44, 6.0 }
 0x540   :  { %v3645_v34 = vadd.f32 %v7217_v39, %v3541_v17 }
 0x541   :  { %v3614_v60 = vadd.f32 %v7217_v39, %v3448_v26  ;;  %3876 = vmatmul.msk.f32.gmra.mxu2 %vm1767_vm6, %v2795_v22  ;;  %v2796_v7 = vmul.f32 %v2732_v40, %v6665_v61 }
 0x542   :  { %3709 = vst [vmem:[#allocation2 + $0x160] sm:$0xff] %v3645_v34  ;;  %3940 = vmatmul.msk.f32.gmra.mxu3 %vm1767_vm6, %v2469_v41 }
 0x543   :  { %3678 = vst [vmem:[#allocation2 + $0x68] sm:$0xff] %v3614_v60 }
 0x544   :  { %v3142_v3 = vpop.f32.mrf.mxu2 }
 0x545   :  { %v3543_v35 = vpop.f32.mrf.mxu3 }
 0x546   :  { %v3544_v11 = vadd.f32 %v3543_v35, %v3142_v3  ;;  %v3450_v4 = vpop.f32.mrf.mxu1 }
 0x547   :  { %v3451_v37 = vadd.f32 %v3450_v4, %v7103_v6 }
 0x548   :  { %v3646_v29 = vadd.f32 %v7217_v39, %v3544_v11 }
 0x549   :  { %v3615_v14 = vadd.f32 %v7217_v39, %v3451_v37  ;;  %3877 = vmatmul.msk.f32.gmra.mxu2 %vm1767_vm6, %v2796_v7 }
 0x54a   :  { %3710 = vst [vmem:[#allocation2 + $0x168] sm:$0xff] %v3646_v29  ;;  %3941 = vmatmul.msk.f32.gmra.mxu3 %vm1767_vm6, %v2470_v8 }
 0x54b   :  { %3679 = vst [vmem:[#allocation2 + $0x70] sm:$0xff] %v3615_v14 }
 0x54c   :  { %v3145_v36 = vpop.f32.mrf.mxu2 }
 0x54d   :  { %v3546_v6 = vpop.f32.mrf.mxu3 }
 0x54e   :  { %v3547_v58 = vadd.f32 %v3546_v6, %v3145_v36  ;;  %v3453_v28 = vpop.f32.mrf.mxu1 }
 0x54f   :  { %v3454_v52 = vadd.f32 %v3453_v28, %v7116_v46 }
 0x550   :  { %v3647_v16 = vadd.f32 %v7217_v39, %v3547_v58 }
 0x551   :  { %v3616_v25 = vadd.f32 %v7217_v39, %v3454_v52  ;;  %3878 = vmatmul.msk.f32.gmra.mxu2 %vm1767_vm6, %v2797_v20 }
 0x552   :  { %3711 = vst [vmem:[#allocation2 + $0x170] sm:$0xff] %v3647_v16  ;;  %3942 = vmatmul.msk.f32.gmra.mxu3 %vm1767_vm6, %v2471_v62 }
 0x553   :  { %3680 = vst [vmem:[#allocation2 + $0x78] sm:$0xff] %v3616_v25 }
 0x554   :  { %v3148_v53 = vpop.f32.mrf.mxu2 }
 0x555   :  { %v3549_v12 = vpop.f32.mrf.mxu3 }
 0x556   :  { %v3550_v56 = vadd.f32 %v3549_v12, %v3148_v53 }
 0x558   :  { %v3648_v55 = vadd.f32 %v7217_v39, %v3550_v56 }
 0x55a   :  { %3712 = vst [vmem:[#allocation2 + $0x178] sm:$0xff] %v3648_v55 }
 0x55c   :  { %v3151_v46 = vpop.f32.mrf.mxu2 }
 0x55d   :  { %v3552_v51 = vpop.f32.mrf.mxu3 }
 0x55e   :  { %v3553_v42 = vadd.f32 %v3552_v51, %v3151_v46 }
 0x560   :  { %v3649_v45 = vadd.f32 %v7217_v39, %v3553_v42 }
 0x562   :  { %3713 = vst [vmem:[#allocation2 + $0x180] sm:$0xff] %v3649_v45 }
 0x564   :  { %v3154_v61 = vpop.f32.mrf.mxu2 }
 0x565   :  { %v3555_v54 = vpop.f32.mrf.mxu3 }
 0x566   :  { %v3556_v57 = vadd.f32 %v3555_v54, %v3154_v61 }
 0x568   :  { %v3650_v18 = vadd.f32 %v7217_v39, %v3556_v57 }
 0x56a   :  { %3714 = vst [vmem:[#allocation2 + $0x188] sm:$0xff] %v3650_v18 }
 0x56c   :  { %v3157_v27 = vpop.f32.mrf.mxu2 }
 0x56d   :  { %v3558_v21 = vpop.f32.mrf.mxu3 }
 0x56e   :  { %v3559_v0 = vadd.f32 %v3558_v21, %v3157_v27 }
 0x570   :  { %v3651_v43 = vadd.f32 %v7217_v39, %v3559_v0 }
 0x572   :  { %3715 = vst [vmem:[#allocation2 + $0x190] sm:$0xff] %v3651_v43 }
 0x574   :  { %v3160_v32 = vpop.f32.mrf.mxu2 }
 0x575   :  { %v3561_v63 = vpop.f32.mrf.mxu3 }
 0x576   :  { %v3562_v38 = vadd.f32 %v3561_v63, %v3160_v32 }
 0x578   :  { %v3652_v1 = vadd.f32 %v7217_v39, %v3562_v38 }
 0x57a   :  { %3716 = vst [vmem:[#allocation2 + $0x198] sm:$0xff] %v3652_v1 }
 0x57c   :  { %v3163_v5 = vpop.f32.mrf.mxu2 }
 0x57d   :  { %v3564_v13 = vpop.f32.mrf.mxu3 }
 0x57e   :  { %v3565_v2 = vadd.f32 %v3564_v13, %v3163_v5 }
 0x580   :  { %v3653_v47 = vadd.f32 %v7217_v39, %v3565_v2 }
 0x582   :  { %3717 = vst [vmem:[#allocation2 + $0x1a0] sm:$0xff] %v3653_v47 }
 0x584   :  { %v3166_v17 = vpop.f32.mrf.mxu2 }
 0x585   :  { %v3567_v19 = vpop.f32.mrf.mxu3 }
 0x586   :  { %v3568_v26 = vadd.f32 %v3567_v19, %v3166_v17 }
 0x588   :  { %v3654_v22 = vadd.f32 %v7217_v39, %v3568_v26 }
 0x58a   :  { %3718 = vst [vmem:[#allocation2 + $0x1a8] sm:$0xff] %v3654_v22 }
 0x58c   :  { %v3169_v44 = vpop.f32.mrf.mxu2 }
 0x58d   :  { %v3570_v9 = vpop.f32.mrf.mxu3 }
 0x58e   :  { %v3571_v59 = vadd.f32 %v3570_v9, %v3169_v44 }
 0x590   :  { %v3655_v34 = vadd.f32 %v7217_v39, %v3571_v59 }
 0x592   :  { %3719 = vst [vmem:[#allocation2 + $0x1b0] sm:$0xff] %v3655_v34 }
 0x594   :  { %v3172_v41 = vpop.f32.mrf.mxu2 }
 0x595   :  { %v3573_v48 = vpop.f32.mrf.mxu3 }
 0x596   :  { %v3574_v50 = vadd.f32 %v3573_v48, %v3172_v41 }
 0x598   :  { %v3656_v30 = vadd.f32 %v7217_v39, %v3574_v50 }
 0x59a   :  { %3720 = vst [vmem:[#allocation2 + $0x1b8] sm:$0xff] %v3656_v30 }
 0x59c   :  { %v3175_v60 = vpop.f32.mrf.mxu2 }
 0x59d   :  { %v3576_v40 = vpop.f32.mrf.mxu3 }
 0x59e   :  { %v3577_v23 = vadd.f32 %v3576_v40, %v3175_v60 }
 0x5a0   :  { %v3657_v3 = vadd.f32 %v7217_v39, %v3577_v23 }
 0x5a2   :  { %3721 = vst [vmem:[#allocation2 + $0x1c0] sm:$0xff] %v3657_v3 }
 0x5a4   :  { %v3178_v24 = vpop.f32.mrf.mxu2 }
 0x5a5   :  { %v3579_v31 = vpop.f32.mrf.mxu3 }
 0x5a6   :  { %v3580_v35 = vadd.f32 %v3579_v31, %v3178_v24 }
 0x5a8   :  { %v3658_v11 = vadd.f32 %v7217_v39, %v3580_v35 }
 0x5aa   :  { %3722 = vst [vmem:[#allocation2 + $0x1c8] sm:$0xff] %v3658_v11 }
 0x5ac   :  { %v3181_v4 = vpop.f32.mrf.mxu2 }
 0x5ad   :  { %v3582_v37 = vpop.f32.mrf.mxu3 }
 0x5ae   :  { %v3583_v7 = vadd.f32 %v3582_v37, %v3181_v4 }
 0x5b0   :  { %v3659_v10 = vadd.f32 %v7217_v39, %v3583_v7 }
 0x5b2   :  { %3723 = vst [vmem:[#allocation2 + $0x1d0] sm:$0xff] %v3659_v10 }
 0x5b4   :  { %v3184_v29 = vpop.f32.mrf.mxu2 }
 0x5b5   :  { %v3585_v8 = vpop.f32.mrf.mxu3 }
 0x5b6   :  { %v3586_v15 = vadd.f32 %v3585_v8, %v3184_v29 }
 0x5b8   :  { %v3660_v14 = vadd.f32 %v7217_v39, %v3586_v15 }
 0x5ba   :  { %3724 = vst [vmem:[#allocation2 + $0x1d8] sm:$0xff] %v3660_v14 }
 0x5bc   :  { %v3187_v33 = vpop.f32.mrf.mxu2 }
 0x5bd   :  { %v3588_v36 = vpop.f32.mrf.mxu3 }
 0x5be   :  { %v3589_v49 = vadd.f32 %v3588_v36, %v3187_v33 }
 0x5c0   :  { %v3661_v6 = vadd.f32 %v7217_v39, %v3589_v49 }
 0x5c2   :  { %3725 = vst [vmem:[#allocation2 + $0x1e0] sm:$0xff] %v3661_v6 }
 0x5c4   :  { %v3190_v58 = vpop.f32.mrf.mxu2 }
 0x5c5   :  { %v3591_v28 = vpop.f32.mrf.mxu3 }
 0x5c6   :  { %v3592_v52 = vadd.f32 %v3591_v28, %v3190_v58 }
 0x5c8   :  { %v3662_v20 = vadd.f32 %v7217_v39, %v3592_v52 }
 0x5ca   :  { %3726 = vst [vmem:[#allocation2 + $0x1e8] sm:$0xff] %v3662_v20 }
 0x5cc   :  { %v3193_v16 = vpop.f32.mrf.mxu2 }
 0x5cd   :  { %v3594_v62 = vpop.f32.mrf.mxu3 }
 0x5ce   :  { %v3595_v25 = vadd.f32 %v3594_v62, %v3193_v16 }
 0x5d0   :  { %v3663_v53 = vadd.f32 %v7217_v39, %v3595_v25 }
 0x5d2   :  { %3727 = vst [vmem:[#allocation2 + $0x1f0] sm:$0xff] %v3663_v53 }
 0x5d4   :  { %v3196_v12 = vpop.f32.mrf.mxu2 }
 0x5d5   :  { %v3597_v56 = vpop.f32.mrf.mxu3 }
 0x5d6   :  { %v3598_v55 = vadd.f32 %v3597_v56, %v3196_v12 }
 0x5d8   :  { %v3664_v46 = vadd.f32 %v7217_v39, %v3598_v55 }
 0x5da   :  { %3728 = vst [vmem:[#allocation2 + $0x1f8] sm:$0xff] %v3664_v46 }
 0x5db   :  { %3741 = dma.vmem_to_hbm [thread:$0]  %s3734_s24, 8192, %s3736_s27, [#allocation3], %s3999_s28, %s3999_s28, %s4000_s29  }
 0x5dc   :  { %3994 = dma.done.wait [#allocation3], 8192  }
 0x5dd   :  { %3995 = vsyncadd [#allocation3], 4294959104 }
 0x5de   :  { %3746 = vsyncpa [#allocation3], 1 }

</bundles_post_ra>
